<compile_context>
chip_gen: v5e
topology: v5e:2x2
jax: 0.10.0
libtpu: 0.0.40
codegen_flags: <defaults>
</compile_context>

<pallas_src>
import functools

import jax
import jax.numpy as jnp
from jax.experimental import pallas as pl
from jax.experimental.pallas import tpu as pltpu


_VMEM_LIMIT = 32 * 1024 * 1024   # explicit scoped-VMEM budget, safe on v5e/v6e/v7x


def _round_up(x, m):
    return (x + m - 1) // m * m


def _pad2(a, shape):
    return jnp.pad(a, [(0, t - s) for s, t in zip(a.shape, shape)])


# --------------------------------------------------------------------------- #
# GCNConv layer: out = A_norm @ (sum_f H_f @ W_f) + b, optional ReLU.
# Grid = (A row blocks, A contraction blocks); A streamed as bf16 tiles.
# --------------------------------------------------------------------------- #
def _make_gcn_layer_kernel(n_feat, apply_relu):
    def kernel(*refs):
        h_refs = refs[:n_feat]                      # (TK, C_f) feature row-blocks
        a_ref = refs[n_feat]                        # (TM, TK)  bf16 adjacency tile
        w_refs = refs[n_feat + 1:2 * n_feat + 1]    # (C_f, CP) resident weights
        b_ref = refs[2 * n_feat + 1]                # (1, CP)
        out_ref = refs[2 * n_feat + 2]              # (TM, CP)
        acc_ref = refs[2 * n_feat + 3]              # (TM, CP) f32 scratch

        k = pl.program_id(1)

        @pl.when(k == 0)
        def _init():
            acc_ref[...] = jnp.zeros_like(acc_ref)

        # z_k = sum_f H_f[k-block] @ W_f  (small-K matmul, f32)
        z = jnp.dot(h_refs[0][...].astype(jnp.float32), w_refs[0][...],
                    preferred_element_type=jnp.float32)
        for f in range(1, n_feat):
            z = z + jnp.dot(h_refs[f][...].astype(jnp.float32), w_refs[f][...],
                            preferred_element_type=jnp.float32)

        # A[i-block, k-block] @ z_k on the MXU: bf16 inputs, f32 accumulation.
        acc_ref[...] += jnp.dot(a_ref[...], z.astype(jnp.bfloat16),
                                preferred_element_type=jnp.float32)

        @pl.when(k == pl.num_programs(1) - 1)
        def _finalize():
            r = acc_ref[...] + b_ref[...]
            if apply_relu:
                r = jnp.maximum(r, 0.0)
            out_ref[...] = r.astype(out_ref.dtype)

    return kernel


def _gcn_conv(feats, weights, bias, a_bf16, *, relu, tile, out_dtype):
    n_pad = a_bf16.shape[0]
    cp = weights[0].shape[1]
    n_feat = len(feats)
    grid = (n_pad // tile, n_pad // tile)

    in_specs = []
    for h in feats:                                    # stream K-block rows of H_f
        in_specs.append(pl.BlockSpec((tile, h.shape[1]), lambda i, k: (k, 0)))
    in_specs.append(pl.BlockSpec((tile, tile), lambda i, k: (i, k)))   # A tiles
    # NOTE (v5e): A's spec can additionally use pipeline_mode=pl.Buffered(3) to
    # hide DMA latency behind the small per-tile compute on low-bandwidth parts.
    for w in weights:                                  # weights / bias stay resident
        in_specs.append(pl.BlockSpec(w.shape, lambda i, k: (0, 0)))
    in_specs.append(pl.BlockSpec(bias.shape, lambda i, k: (0, 0)))

    return pl.pallas_call(
        _make_gcn_layer_kernel(n_feat, relu),
        out_shape=jax.ShapeDtypeStruct((n_pad, cp), out_dtype),
        grid=grid,
        in_specs=in_specs,
        out_specs=pl.BlockSpec((tile, cp), lambda i, k: (i, 0)),
        scratch_shapes=[pltpu.VMEM((tile, cp), jnp.float32)],
        compiler_params=pltpu.CompilerParams(
            dimension_semantics=("parallel", "arbitrary"),
            vmem_limit_bytes=_VMEM_LIMIT),
    )(*feats, a_bf16, *weights, bias)


# --------------------------------------------------------------------------- #
# GlobalAttention pooling (segment softmax of gate scores) + masked log_softmax.
# --------------------------------------------------------------------------- #
def _attention_pool_kernel(h_ref, s_ref, st_ref, gw_ref, gb_ref, out_ref, *,
                           n_classes):
    h3 = h_ref[...]                                   # (N, CP) f32
    member = st_ref[...] > 0.0                        # (N, G) graph membership

    # Gate scores on the VPU (no 1-lane-wide MXU matmul).
    g = jnp.sum(h3 * gw_ref[...], axis=-1, keepdims=True) + gb_ref[...]   # (N, 1)

    neg_big = jnp.float32(-1e30)
    # Per-graph softmax of the gate scores, entirely in the (N, G) layout:
    # sublane reduce for per-graph stats, lane select/sum to broadcast back.
    scores = jnp.where(member, g, neg_big)                                 # (N, G)
    m_g = jnp.max(scores, axis=0, keepdims=True)                           # (1, G)
    m_node = jnp.sum(jnp.where(member, m_g, 0.0), axis=1, keepdims=True)   # (N, 1)
    alpha = jnp.exp(g - m_node)                                            # (N, 1)
    denom_g = jnp.sum(jnp.where(member, alpha, 0.0), axis=0, keepdims=True)
    denom_node = jnp.sum(jnp.where(member, denom_g, 0.0), axis=1, keepdims=True)
    denom_node = jnp.where(denom_node > 0.0, denom_node, 1.0)  # guard padded nodes
    gate = alpha / denom_node                                              # (N, 1)

    # Segment-sum of gated features: (G, N) @ (N, CP).
    pooled = jnp.dot(s_ref[...], gate * h3, preferred_element_type=jnp.float32)

    # log_softmax over the real class columns only (padding columns masked out).
    col = jax.lax.broadcasted_iota(jnp.int32, pooled.shape, 1)
    logits = jnp.where(col < n_classes, pooled, neg_big)
    mx = jnp.max(logits, axis=1, keepdims=True)
    z = logits - mx
    lse = jnp.log(jnp.sum(jnp.exp(z), axis=1, keepdims=True))
    out_ref[...] = z - lse


def _attention_pool(h3, S, ST, gw_row, gb, *, n_classes):
    g_count = S.shape[0]
    cp = h3.shape[1]
    return pl.pallas_call(
        functools.partial(_attention_pool_kernel, n_classes=n_classes),
        out_shape=jax.ShapeDtypeStruct((g_count, cp), jnp.float32),
        in_specs=[pl.BlockSpec(memory_space=pltpu.MemorySpace.VMEM)] * 5,
        out_specs=pl.BlockSpec(memory_space=pltpu.MemorySpace.VMEM),
        compiler_params=pltpu.CompilerParams(vmem_limit_bytes=_VMEM_LIMIT),
    )(h3, S, ST, gw_row, gb)


# --------------------------------------------------------------------------- #
# Full forward.
# --------------------------------------------------------------------------- #
@functools.partial(jax.jit, static_argnames=("tile",))
def gcn_forward(x, a_norm, S, ST, params, *, tile=128):
    """3x GCNConv (+ReLU, concat skip) -> GlobalAttention pool -> log_softmax."""
    (w1, b1, w2, b2, w3a, w3b, b3, gw, gb) = params
    n, c_in = x.shape
    g_count = S.shape[0]
    h1_w, h2_w, c_out = w1.shape[1], w2.shape[1], w3a.shape[1]

    cp = _round_up(max(h1_w, h2_w, c_out, 128), 128)   # lane-dense channel width
    n_pad = _round_up(n, tile)

    # Pad node count to the tile and channel widths to a multiple of 128.
    xp = _pad2(x, (n_pad, c_in))
    ap = _pad2(a_norm, (n_pad, n_pad)).astype(jnp.bfloat16)   # bf16 adjacency stream
    sp = _pad2(S, (g_count, n_pad))
    stp = _pad2(ST, (n_pad, g_count))

    w1p, b1p = _pad2(w1, (c_in, cp)), _pad2(b1, (1, cp))
    w2p, b2p = _pad2(w2, (cp, cp)), _pad2(b2, (1, cp))
    w3ap, w3bp = _pad2(w3a, (cp, cp)), _pad2(w3b, (c_in, cp))
    b3p = _pad2(b3, (1, cp))
    gw_row = _pad2(gw.T, (1, cp))                              # (1, CP) gate weight

    # conv1 / conv2 (ReLU, bf16 activations); conv3 on [h2 | x0] via the
    # split-weight identity concat([h2, x]) @ W3 == h2 @ W3a + x @ W3b.
    h1 = _gcn_conv([xp], [w1p], b1p, ap, relu=True, tile=tile,
                   out_dtype=jnp.bfloat16)
    h2 = _gcn_conv([h1], [w2p], b2p, ap, relu=True, tile=tile,
                   out_dtype=jnp.bfloat16)
    h3 = _gcn_conv([h2, xp], [w3ap, w3bp], b3p, ap, relu=False, tile=tile,
                   out_dtype=jnp.float32)

    out = _attention_pool(h3, sp, stp, gw_row, gb, n_classes=c_out)
    return out[:, :c_out]


# --------------------------------------------------------------------------- #
# Graph utilities + pure-JAX reference (module semantics, full f32).
# --------------------------------------------------------------------------- #
def build_norm_adjacency(edge_index, num_nodes):
    """Dense D^-1/2 (A + I) D^-1/2, GCNConv semantics (edges j->i aggregate at i)."""
    src, dst = edge_index[0], edge_index[1]
    A = jnp.zeros((num_nodes, num_nodes), jnp.float32)
    A = A.at[dst, src].set(1.0)
    A = A.at[jnp.arange(num_nodes), jnp.arange(num_nodes)].set(1.0)  # self loops
    deg = jnp.sum(A, axis=1)
    dinv = 1.0 / jnp.sqrt(jnp.maximum(deg, 1e-12))
    return A * dinv[:, None] * dinv[None, :]


def reference_forward(x, a_norm, params, S):
    (w1, b1, w2, b2, w3a, w3b, b3, gw, gb) = params
    h = jnp.maximum(a_norm @ (x @ w1) + b1, 0.0)
    h2 = jnp.maximum(a_norm @ (h @ w2) + b2, 0.0)
    h3 = a_norm @ (h2 @ w3a + x @ w3b) + b3
    g = h3 @ gw + gb
    scores = jnp.where(S > 0, g[:, 0][None, :], -jnp.inf)
    m_g = jnp.max(scores, axis=1, keepdims=True)
    m_node = S.T @ m_g
    alpha = jnp.exp(g - m_node)
    denom_node = S.T @ (S @ alpha)
    gate = alpha / denom_node
    pooled = S @ (gate * h3)
    return jax.nn.log_softmax(pooled, axis=1)


if __name__ == "__main__":
    # 2 graphs x 128 nodes (ring topology each) => N=256 exercises a (2, 2) A-tile grid.
    G = 2
    NODES_PER_GRAPH = 128
    N = G * NODES_PER_GRAPH
    C_IN, H1, H2, C_OUT = 8, 16, 16, 8

    key = jax.random.PRNGKey(0)
    keys = jax.random.split(key, 8)

    x = jax.random.normal(keys[0], (N, C_IN), jnp.float32)

    edges = []
    for g in range(G):
        base = g * NODES_PER_GRAPH
        for i in range(NODES_PER_GRAPH):
            a, b = base + i, base + (i + 1) % NODES_PER_GRAPH
            edges.append((a, b))
            edges.append((b, a))
    edge_index = jnp.array(edges, jnp.int32).T            # (2, E)
    a_norm = build_norm_adjacency(edge_index, N)

    batch = jnp.repeat(jnp.arange(G, dtype=jnp.int32), NODES_PER_GRAPH)  # (N,)
    S = jax.nn.one_hot(batch, G, dtype=jnp.float32).T                    # (G, N)
    ST = S.T                                                             # (N, G)

    def glorot(k, shape):
        lim = jnp.sqrt(6.0 / (shape[0] + shape[1]))
        return jax.random.uniform(k, shape, jnp.float32, -lim, lim)

    w1 = glorot(keys[1], (C_IN, H1));              b1 = jnp.zeros((1, H1), jnp.float32)
    w2 = glorot(keys[2], (H1, H2));                b2 = jnp.zeros((1, H2), jnp.float32)
    w3 = glorot(keys[3], (H2 + C_IN, C_OUT));      b3 = jnp.zeros((1, C_OUT), jnp.float32)
    w3a, w3b = w3[:H2], w3[H2:]                    # split of concat([h2, x0]) weight
    gw = glorot(keys[4], (C_OUT, 1))
    gb = jnp.zeros((1, 1), jnp.float32)
    params = (w1, b1, w2, b2, w3a, w3b, b3, gw, gb)

    out = jax.block_until_ready(gcn_forward(x, a_norm, S, ST, params))
    ref = reference_forward(x, a_norm, params, S)

    assert out.shape == (G, C_OUT)
    # bf16 adjacency / activation stream with f32 accumulation => slightly looser
    # tolerance than the pure-f32 reference.
    assert jnp.allclose(out, ref, atol=5e-2, rtol=5e-2), (out, ref)

    print("KERNEL_OK")
</pallas_src>

<mosaic_0001>
module attributes {stable_mosaic.version = 11 : i64} {
  func.func @kernel(%arg0: i32, %arg1: i32, %arg2: memref<128x128xbf16, #tpu.memory_space<vmem>>, %arg3: memref<128x128xbf16, #tpu.memory_space<vmem>>, %arg4: memref<128x128xf32, #tpu.memory_space<vmem>>, %arg5: memref<1x128xf32, #tpu.memory_space<vmem>>, %arg6: memref<128x128xbf16, #tpu.memory_space<vmem>>, %arg7: memref<128x128xf32, #tpu.memory_space<vmem>>) attributes {dimension_semantics = [#tpu.dimension_semantics<parallel>, #tpu.dimension_semantics<arbitrary>], iteration_bounds = array<i64: 2, 2>, scalar_prefetch = 0 : i64, scratch_operands = 1 : i64, tpu.core_type = #tpu.core_type<tc>, window_params = [{transform_indices = @transform_0, window_bounds = array<i64: 128, 128>}, {transform_indices = @transform_1, window_bounds = array<i64: 128, 128>}, {pipeline_mode = #tpu.pipeline_mode<synchronous>, transform_indices = @transform_2, window_bounds = array<i64: 128, 128>}, {pipeline_mode = #tpu.pipeline_mode<synchronous>, transform_indices = @transform_3, window_bounds = array<i64: 1, 128>}, {transform_indices = @transform_4, window_bounds = array<i64: 128, 128>}]} {
    %c0_i32 = arith.constant 0 : i32
    %0 = arith.cmpi eq, %arg1, %c0_i32 : i32
    %1 = arith.extui %0 : i1 to i32
    %c0_i32_0 = arith.constant 0 : i32
    %2 = arith.cmpi ne, %1, %c0_i32_0 : i32
    scf.if %2 {
      %cst_12 = arith.constant 0.000000e+00 : f32
      %16 = vector.broadcast %cst_12 : f32 to vector<128x128xf32>
      %c0_13 = arith.constant 0 : index
      %c0_14 = arith.constant 0 : index
      %17 = vector.load %arg7[%c0_13, %c0_14] : memref<128x128xf32, #tpu.memory_space<vmem>>, vector<128x128xf32>
      tpu.vector_store %arg7[%c0_13, %c0_14], %16 {strides = array<i32>} : memref<128x128xf32, #tpu.memory_space<vmem>>, vector<128x128xf32>,
    } else {
    }
    %c0 = arith.constant 0 : index
    %c0_1 = arith.constant 0 : index
    %3 = vector.load %arg2[%c0, %c0_1] : memref<128x128xbf16, #tpu.memory_space<vmem>>, vector<128x128xbf16>
    %4 = arith.extf %3 : vector<128x128xbf16> to vector<128x128xf32>
    %c0_2 = arith.constant 0 : index
    %c0_3 = arith.constant 0 : index
    %5 = vector.load %arg4[%c0_2, %c0_3] : memref<128x128xf32, #tpu.memory_space<vmem>>, vector<128x128xf32>
    %cst = arith.constant dense<0.000000e+00> : vector<128x128xf32>
    %6 = tpu.matmul %4, %5, %cst {dimension_numbers = #tpu.dot_dimension_numbers<[1], [0], [0], [1], [0, 0, 1, 1], [], []>} : vector<128x128xf32>, vector<128x128xf32>, vector<128x128xf32> -> vector<128x128xf32>
    %c0_4 = arith.constant 0 : index
    %c0_5 = arith.constant 0 : index
    %7 = vector.load %arg7[%c0_4, %c0_5] : memref<128x128xf32, #tpu.memory_space<vmem>>, vector<128x128xf32>
    %c0_6 = arith.constant 0 : index
    %c0_7 = arith.constant 0 : index
    %8 = vector.load %arg3[%c0_6, %c0_7] : memref<128x128xbf16, #tpu.memory_space<vmem>>, vector<128x128xbf16>
    %9 = arith.truncf %6 : vector<128x128xf32> to vector<128x128xbf16>
    %cst_8 = arith.constant dense<0.000000e+00> : vector<128x128xf32>
    %10 = tpu.matmul %8, %9, %cst_8 {dimension_numbers = #tpu.dot_dimension_numbers<[1], [0], [0], [1], [0, 0, 1, 1], [], []>} : vector<128x128xbf16>, vector<128x128xbf16>, vector<128x128xf32> -> vector<128x128xf32>
    %11 = arith.addf %7, %10 : vector<128x128xf32>
    %c0_9 = arith.constant 0 : index
    %c0_10 = arith.constant 0 : index
    %12 = vector.load %arg7[%c0_9, %c0_10] : memref<128x128xf32, #tpu.memory_space<vmem>>, vector<128x128xf32>
    tpu.vector_store %arg7[%c0_9, %c0_10], %11 {strides = array<i32>} : memref<128x128xf32, #tpu.memory_space<vmem>>, vector<128x128xf32>,
    %c1_i32 = arith.constant 1 : i32
    %13 = arith.cmpi eq, %arg1, %c1_i32 : i32
    %14 = arith.extui %13 : i1 to i32
    %c0_i32_11 = arith.constant 0 : i32
    %15 = arith.cmpi ne, %14, %c0_i32_11 : i32
    scf.if %15 {
      %c0_12 = arith.constant 0 : index
      %c0_13 = arith.constant 0 : index
      %16 = vector.load %arg7[%c0_12, %c0_13] : memref<128x128xf32, #tpu.memory_space<vmem>>, vector<128x128xf32>
      %c0_14 = arith.constant 0 : index
      %c0_15 = arith.constant 0 : index
      %17 = vector.load %arg5[%c0_14, %c0_15] : memref<1x128xf32, #tpu.memory_space<vmem>>, vector<1x128xf32>
      %18 = vector.broadcast %17 : vector<1x128xf32> to vector<128x128xf32>
      %19 = arith.addf %16, %18 : vector<128x128xf32>
      %cst_16 = arith.constant 0.000000e+00 : f32
      %20 = vector.broadcast %cst_16 : f32 to vector<128x128xf32>
      %21 = arith.maximumf %19, %20 : vector<128x128xf32>
      %22 = arith.truncf %21 : vector<128x128xf32> to vector<128x128xbf16>
      %c0_17 = arith.constant 0 : index
      %c0_18 = arith.constant 0 : index
      %23 = vector.load %arg6[%c0_17, %c0_18] : memref<128x128xbf16, #tpu.memory_space<vmem>>, vector<128x128xbf16>
      tpu.vector_store %arg6[%c0_17, %c0_18], %22 {strides = array<i32>} : memref<128x128xbf16, #tpu.memory_space<vmem>>, vector<128x128xbf16>,
    } else {
    }
    return
  }
  func.func @transform_0(%arg0: i32, %arg1: i32) -> (i32, i32) {
    %c0_i32 = arith.constant 0 : i32
    %c0_i32_0 = arith.constant 0 : i32
    return %arg1, %c0_i32 : i32, i32
  }
  func.func @transform_1(%arg0: i32, %arg1: i32) -> (i32, i32) {
    %c0_i32 = arith.constant 0 : i32
    return %arg0, %arg1 : i32, i32
  }
  func.func @transform_2(%arg0: i32, %arg1: i32) -> (i32, i32) {
    %c0_i32 = arith.constant 0 : i32
    %c0_i32_0 = arith.constant 0 : i32
    %c0_i32_1 = arith.constant 0 : i32
    return %c0_i32, %c0_i32_0 : i32, i32
  }
  func.func @transform_3(%arg0: i32, %arg1: i32) -> (i32, i32) {
    %c0_i32 = arith.constant 0 : i32
    %c0_i32_0 = arith.constant 0 : i32
    %c0_i32_1 = arith.constant 0 : i32
    return %c0_i32, %c0_i32_0 : i32, i32
  }
  func.func @transform_4(%arg0: i32, %arg1: i32) -> (i32, i32) {
    %c0_i32 = arith.constant 0 : i32
    %c0_i32_0 = arith.constant 0 : i32
    return %arg0, %c0_i32 : i32, i32
  }
}

module attributes {stable_mosaic.version = 11 : i64} {
  func.func @kernel(%arg0: i32, %arg1: i32, %arg2: memref<128x8xf32, #tpu.memory_space<vmem>>, %arg3: memref<128x128xbf16, #tpu.memory_space<vmem>>, %arg4: memref<8x128xf32, #tpu.memory_space<vmem>>, %arg5: memref<1x128xf32, #tpu.memory_space<vmem>>, %arg6: memref<128x128xbf16, #tpu.memory_space<vmem>>, %arg7: memref<128x128xf32, #tpu.memory_space<vmem>>) attributes {dimension_semantics = [#tpu.dimension_semantics<parallel>, #tpu.dimension_semantics<arbitrary>], iteration_bounds = array<i64: 2, 2>, scalar_prefetch = 0 : i64, scratch_operands = 1 : i64, tpu.core_type = #tpu.core_type<tc>, window_params = [{transform_indices = @transform_0, window_bounds = array<i64: 128, 8>}, {transform_indices = @transform_1, window_bounds = array<i64: 128, 128>}, {pipeline_mode = #tpu.pipeline_mode<synchronous>, transform_indices = @transform_2, window_bounds = array<i64: 8, 128>}, {pipeline_mode = #tpu.pipeline_mode<synchronous>, transform_indices = @transform_3, window_bounds = array<i64: 1, 128>}, {transform_indices = @transform_4, window_bounds = array<i64: 128, 128>}]} {
    %c0_i32 = arith.constant 0 : i32
    %0 = arith.cmpi eq, %arg1, %c0_i32 : i32
    %1 = arith.extui %0 : i1 to i32
    %c0_i32_0 = arith.constant 0 : i32
    %2 = arith.cmpi ne, %1, %c0_i32_0 : i32
    scf.if %2 {
      %cst_12 = arith.constant 0.000000e+00 : f32
      %15 = vector.broadcast %cst_12 : f32 to vector<128x128xf32>
      %c0_13 = arith.constant 0 : index
      %c0_14 = arith.constant 0 : index
      %16 = vector.load %arg7[%c0_13, %c0_14] : memref<128x128xf32, #tpu.memory_space<vmem>>, vector<128x128xf32>
      tpu.vector_store %arg7[%c0_13, %c0_14], %15 {strides = array<i32>} : memref<128x128xf32, #tpu.memory_space<vmem>>, vector<128x128xf32>,
    } else {
    }
    %c0 = arith.constant 0 : index
    %c0_1 = arith.constant 0 : index
    %3 = vector.load %arg2[%c0, %c0_1] : memref<128x8xf32, #tpu.memory_space<vmem>>, vector<128x8xf32>
    %c0_2 = arith.constant 0 : index
    %c0_3 = arith.constant 0 : index
    %4 = vector.load %arg4[%c0_2, %c0_3] : memref<8x128xf32, #tpu.memory_space<vmem>>, vector<8x128xf32>
    %cst = arith.constant dense<0.000000e+00> : vector<128x128xf32>
    %5 = tpu.matmul %3, %4, %cst {dimension_numbers = #tpu.dot_dimension_numbers<[1], [0], [0], [1], [0, 0, 1, 1], [], []>} : vector<128x8xf32>, vector<8x128xf32>, vector<128x128xf32> -> vector<128x128xf32>
    %c0_4 = arith.constant 0 : index
    %c0_5 = arith.constant 0 : index
    %6 = vector.load %arg7[%c0_4, %c0_5] : memref<128x128xf32, #tpu.memory_space<vmem>>, vector<128x128xf32>
    %c0_6 = arith.constant 0 : index
    %c0_7 = arith.constant 0 : index
    %7 = vector.load %arg3[%c0_6, %c0_7] : memref<128x128xbf16, #tpu.memory_space<vmem>>, vector<128x128xbf16>
    %8 = arith.truncf %5 : vector<128x128xf32> to vector<128x128xbf16>
    %cst_8 = arith.constant dense<0.000000e+00> : vector<128x128xf32>
    %9 = tpu.matmul %7, %8, %cst_8 {dimension_numbers = #tpu.dot_dimension_numbers<[1], [0], [0], [1], [0, 0, 1, 1], [], []>} : vector<128x128xbf16>, vector<128x128xbf16>, vector<128x128xf32> -> vector<128x128xf32>
    %10 = arith.addf %6, %9 : vector<128x128xf32>
    %c0_9 = arith.constant 0 : index
    %c0_10 = arith.constant 0 : index
    %11 = vector.load %arg7[%c0_9, %c0_10] : memref<128x128xf32, #tpu.memory_space<vmem>>, vector<128x128xf32>
    tpu.vector_store %arg7[%c0_9, %c0_10], %10 {strides = array<i32>} : memref<128x128xf32, #tpu.memory_space<vmem>>, vector<128x128xf32>,
    %c1_i32 = arith.constant 1 : i32
    %12 = arith.cmpi eq, %arg1, %c1_i32 : i32
    %13 = arith.extui %12 : i1 to i32
    %c0_i32_11 = arith.constant 0 : i32
    %14 = arith.cmpi ne, %13, %c0_i32_11 : i32
    scf.if %14 {
      %c0_12 = arith.constant 0 : index
      %c0_13 = arith.constant 0 : index
      %15 = vector.load %arg7[%c0_12, %c0_13] : memref<128x128xf32, #tpu.memory_space<vmem>>, vector<128x128xf32>
      %c0_14 = arith.constant 0 : index
      %c0_15 = arith.constant 0 : index
      %16 = vector.load %arg5[%c0_14, %c0_15] : memref<1x128xf32, #tpu.memory_space<vmem>>, vector<1x128xf32>
      %17 = vector.broadcast %16 : vector<1x128xf32> to vector<128x128xf32>
      %18 = arith.addf %15, %17 : vector<128x128xf32>
      %cst_16 = arith.constant 0.000000e+00 : f32
      %19 = vector.broadcast %cst_16 : f32 to vector<128x128xf32>
      %20 = arith.maximumf %18, %19 : vector<128x128xf32>
      %21 = arith.truncf %20 : vector<128x128xf32> to vector<128x128xbf16>
      %c0_17 = arith.constant 0 : index
      %c0_18 = arith.constant 0 : index
      %22 = vector.load %arg6[%c0_17, %c0_18] : memref<128x128xbf16, #tpu.memory_space<vmem>>, vector<128x128xbf16>
      tpu.vector_store %arg6[%c0_17, %c0_18], %21 {strides = array<i32>} : memref<128x128xbf16, #tpu.memory_space<vmem>>, vector<128x128xbf16>,
    } else {
    }
    return
  }
  func.func @transform_0(%arg0: i32, %arg1: i32) -> (i32, i32) {
    %c0_i32 = arith.constant 0 : i32
    %c0_i32_0 = arith.constant 0 : i32
    return %arg1, %c0_i32 : i32, i32
  }
  func.func @transform_1(%arg0: i32, %arg1: i32) -> (i32, i32) {
    %c0_i32 = arith.constant 0 : i32
    return %arg0, %arg1 : i32, i32
  }
  func.func @transform_2(%arg0: i32, %arg1: i32) -> (i32, i32) {
    %c0_i32 = arith.constant 0 : i32
    %c0_i32_0 = arith.constant 0 : i32
    %c0_i32_1 = arith.constant 0 : i32
    return %c0_i32, %c0_i32_0 : i32, i32
  }
  func.func @transform_3(%arg0: i32, %arg1: i32) -> (i32, i32) {
    %c0_i32 = arith.constant 0 : i32
    %c0_i32_0 = arith.constant 0 : i32
    %c0_i32_1 = arith.constant 0 : i32
    return %c0_i32, %c0_i32_0 : i32, i32
  }
  func.func @transform_4(%arg0: i32, %arg1: i32) -> (i32, i32) {
    %c0_i32 = arith.constant 0 : i32
    %c0_i32_0 = arith.constant 0 : i32
    return %arg0, %c0_i32 : i32, i32
  }
}

module attributes {stable_mosaic.version = 11 : i64} {
  func.func @kernel(%arg0: i32, %arg1: i32, %arg2: memref<128x128xbf16, #tpu.memory_space<vmem>>, %arg3: memref<128x8xf32, #tpu.memory_space<vmem>>, %arg4: memref<128x128xbf16, #tpu.memory_space<vmem>>, %arg5: memref<128x128xf32, #tpu.memory_space<vmem>>, %arg6: memref<8x128xf32, #tpu.memory_space<vmem>>, %arg7: memref<1x128xf32, #tpu.memory_space<vmem>>, %arg8: memref<128x128xf32, #tpu.memory_space<vmem>>, %arg9: memref<128x128xf32, #tpu.memory_space<vmem>>) attributes {dimension_semantics = [#tpu.dimension_semantics<parallel>, #tpu.dimension_semantics<arbitrary>], iteration_bounds = array<i64: 2, 2>, scalar_prefetch = 0 : i64, scratch_operands = 1 : i64, tpu.core_type = #tpu.core_type<tc>, window_params = [{transform_indices = @transform_0, window_bounds = array<i64: 128, 128>}, {transform_indices = @transform_1, window_bounds = array<i64: 128, 8>}, {transform_indices = @transform_2, window_bounds = array<i64: 128, 128>}, {pipeline_mode = #tpu.pipeline_mode<synchronous>, transform_indices = @transform_3, window_bounds = array<i64: 128, 128>}, {pipeline_mode = #tpu.pipeline_mode<synchronous>, transform_indices = @transform_4, window_bounds = array<i64: 8, 128>}, {pipeline_mode = #tpu.pipeline_mode<synchronous>, transform_indices = @transform_5, window_bounds = array<i64: 1, 128>}, {transform_indices = @transform_6, window_bounds = array<i64: 128, 128>}]} {
    %c0_i32 = arith.constant 0 : i32
    %0 = arith.cmpi eq, %arg1, %c0_i32 : i32
    %1 = arith.extui %0 : i1 to i32
    %c0_i32_0 = arith.constant 0 : i32
    %2 = arith.cmpi ne, %1, %c0_i32_0 : i32
    scf.if %2 {
      %cst_17 = arith.constant 0.000000e+00 : f32
      %20 = vector.broadcast %cst_17 : f32 to vector<128x128xf32>
      %c0_18 = arith.constant 0 : index
      %c0_19 = arith.constant 0 : index
      %21 = vector.load %arg9[%c0_18, %c0_19] : memref<128x128xf32, #tpu.memory_space<vmem>>, vector<128x128xf32>
      tpu.vector_store %arg9[%c0_18, %c0_19], %20 {strides = array<i32>} : memref<128x128xf32, #tpu.memory_space<vmem>>, vector<128x128xf32>,
    } else {
    }
    %c0 = arith.constant 0 : index
    %c0_1 = arith.constant 0 : index
    %3 = vector.load %arg2[%c0, %c0_1] : memref<128x128xbf16, #tpu.memory_space<vmem>>, vector<128x128xbf16>
    %4 = arith.extf %3 : vector<128x128xbf16> to vector<128x128xf32>
    %c0_2 = arith.constant 0 : index
    %c0_3 = arith.constant 0 : index
    %5 = vector.load %arg5[%c0_2, %c0_3] : memref<128x128xf32, #tpu.memory_space<vmem>>, vector<128x128xf32>
    %cst = arith.constant dense<0.000000e+00> : vector<128x128xf32>
    %6 = tpu.matmul %4, %5, %cst {dimension_numbers = #tpu.dot_dimension_numbers<[1], [0], [0], [1], [0, 0, 1, 1], [], []>} : vector<128x128xf32>, vector<128x128xf32>, vector<128x128xf32> -> vector<128x128xf32>
    %c0_4 = arith.constant 0 : index
    %c0_5 = arith.constant 0 : index
    %7 = vector.load %arg3[%c0_4, %c0_5] : memref<128x8xf32, #tpu.memory_space<vmem>>, vector<128x8xf32>
    %c0_6 = arith.constant 0 : index
    %c0_7 = arith.constant 0 : index
    %8 = vector.load %arg6[%c0_6, %c0_7] : memref<8x128xf32, #tpu.memory_space<vmem>>, vector<8x128xf32>
    %cst_8 = arith.constant dense<0.000000e+00> : vector<128x128xf32>
    %9 = tpu.matmul %7, %8, %cst_8 {dimension_numbers = #tpu.dot_dimension_numbers<[1], [0], [0], [1], [0, 0, 1, 1], [], []>} : vector<128x8xf32>, vector<8x128xf32>, vector<128x128xf32> -> vector<128x128xf32>
    %10 = arith.addf %6, %9 : vector<128x128xf32>
    %c0_9 = arith.constant 0 : index
    %c0_10 = arith.constant 0 : index
    %11 = vector.load %arg9[%c0_9, %c0_10] : memref<128x128xf32, #tpu.memory_space<vmem>>, vector<128x128xf32>
    %c0_11 = arith.constant 0 : index
    %c0_12 = arith.constant 0 : index
    %12 = vector.load %arg4[%c0_11, %c0_12] : memref<128x128xbf16, #tpu.memory_space<vmem>>, vector<128x128xbf16>
    %13 = arith.truncf %10 : vector<128x128xf32> to vector<128x128xbf16>
    %cst_13 = arith.constant dense<0.000000e+00> : vector<128x128xf32>
    %14 = tpu.matmul %12, %13, %cst_13 {dimension_numbers = #tpu.dot_dimension_numbers<[1], [0], [0], [1], [0, 0, 1, 1], [], []>} : vector<128x128xbf16>, vector<128x128xbf16>, vector<128x128xf32> -> vector<128x128xf32>
    %15 = arith.addf %11, %14 : vector<128x128xf32>
    %c0_14 = arith.constant 0 : index
    %c0_15 = arith.constant 0 : index
    %16 = vector.load %arg9[%c0_14, %c0_15] : memref<128x128xf32, #tpu.memory_space<vmem>>, vector<128x128xf32>
    tpu.vector_store %arg9[%c0_14, %c0_15], %15 {strides = array<i32>} : memref<128x128xf32, #tpu.memory_space<vmem>>, vector<128x128xf32>,
    %c1_i32 = arith.constant 1 : i32
    %17 = arith.cmpi eq, %arg1, %c1_i32 : i32
    %18 = arith.extui %17 : i1 to i32
    %c0_i32_16 = arith.constant 0 : i32
    %19 = arith.cmpi ne, %18, %c0_i32_16 : i32
    scf.if %19 {
      %c0_17 = arith.constant 0 : index
      %c0_18 = arith.constant 0 : index
      %20 = vector.load %arg9[%c0_17, %c0_18] : memref<128x128xf32, #tpu.memory_space<vmem>>, vector<128x128xf32>
      %c0_19 = arith.constant 0 : index
      %c0_20 = arith.constant 0 : index
      %21 = vector.load %arg7[%c0_19, %c0_20] : memref<1x128xf32, #tpu.memory_space<vmem>>, vector<1x128xf32>
      %22 = vector.broadcast %21 : vector<1x128xf32> to vector<128x128xf32>
      %23 = arith.addf %20, %22 : vector<128x128xf32>
      %c0_21 = arith.constant 0 : index
      %c0_22 = arith.constant 0 : index
      %24 = vector.load %arg8[%c0_21, %c0_22] : memref<128x128xf32, #tpu.memory_space<vmem>>, vector<128x128xf32>
      tpu.vector_store %arg8[%c0_21, %c0_22], %23 {strides = array<i32>} : memref<128x128xf32, #tpu.memory_space<vmem>>, vector<128x128xf32>,
    } else {
    }
    return
  }
  func.func @transform_0(%arg0: i32, %arg1: i32) -> (i32, i32) {
    %c0_i32 = arith.constant 0 : i32
    %c0_i32_0 = arith.constant 0 : i32
    return %arg1, %c0_i32 : i32, i32
  }
  func.func @transform_1(%arg0: i32, %arg1: i32) -> (i32, i32) {
    %c0_i32 = arith.constant 0 : i32
    %c0_i32_0 = arith.constant 0 : i32
    return %arg1, %c0_i32 : i32, i32
  }
  func.func @transform_2(%arg0: i32, %arg1: i32) -> (i32, i32) {
    %c0_i32 = arith.constant 0 : i32
    return %arg0, %arg1 : i32, i32
  }
  func.func @transform_3(%arg0: i32, %arg1: i32) -> (i32, i32) {
    %c0_i32 = arith.constant 0 : i32
    %c0_i32_0 = arith.constant 0 : i32
    %c0_i32_1 = arith.constant 0 : i32
    return %c0_i32, %c0_i32_0 : i32, i32
  }
  func.func @transform_4(%arg0: i32, %arg1: i32) -> (i32, i32) {
    %c0_i32 = arith.constant 0 : i32
    %c0_i32_0 = arith.constant 0 : i32
    %c0_i32_1 = arith.constant 0 : i32
    return %c0_i32, %c0_i32_0 : i32, i32
  }
  func.func @transform_5(%arg0: i32, %arg1: i32) -> (i32, i32) {
    %c0_i32 = arith.constant 0 : i32
    %c0_i32_0 = arith.constant 0 : i32
    %c0_i32_1 = arith.constant 0 : i32
    return %c0_i32, %c0_i32_0 : i32, i32
  }
  func.func @transform_6(%arg0: i32, %arg1: i32) -> (i32, i32) {
    %c0_i32 = arith.constant 0 : i32
    %c0_i32_0 = arith.constant 0 : i32
    return %arg0, %c0_i32 : i32, i32
  }
}

module attributes {stable_mosaic.version = 11 : i64} {
  func.func @_attention_pool_kernel(%arg0: memref<256x128xf32, #tpu.memory_space<vmem>>, %arg1: memref<2x256xf32, #tpu.memory_space<vmem>>, %arg2: memref<256x2xf32, #tpu.memory_space<vmem>>, %arg3: memref<1x128xf32, #tpu.memory_space<vmem>>, %arg4: memref<1x1xf32, #tpu.memory_space<vmem>>, %arg5: memref<2x128xf32, #tpu.memory_space<vmem>>) attributes {dimension_semantics = [], scalar_prefetch = 0 : i64, scratch_operands = 0 : i64, tpu.core_type = #tpu.core_type<tc>} {
    %c0 = arith.constant 0 : index
    %c0_0 = arith.constant 0 : index
    %0 = vector.load %arg0[%c0, %c0_0] : memref<256x128xf32, #tpu.memory_space<vmem>>, vector<256x128xf32>
    %c0_1 = arith.constant 0 : index
    %c0_2 = arith.constant 0 : index
    %1 = vector.load %arg2[%c0_1, %c0_2] : memref<256x2xf32, #tpu.memory_space<vmem>>, vector<256x2xf32>
    %cst = arith.constant 0.000000e+00 : f32
    %2 = vector.broadcast %cst : f32 to vector<256x2xf32>
    %3 = arith.cmpf ogt, %1, %2 : vector<256x2xf32>
    %c0_3 = arith.constant 0 : index
    %c0_4 = arith.constant 0 : index
    %4 = vector.load %arg3[%c0_3, %c0_4] : memref<1x128xf32, #tpu.memory_space<vmem>>, vector<1x128xf32>
    %5 = vector.broadcast %4 : vector<1x128xf32> to vector<256x128xf32>
    %6 = arith.mulf %0, %5 : vector<256x128xf32>
    %cst_5 = arith.constant dense<0.000000e+00> : vector<256xf32>
    %7 = vector.multi_reduction <add>, %6, %cst_5 [1] : vector<256x128xf32> to vector<256xf32>
    %8 = vector.shape_cast %7 : vector<256xf32> to vector<256x1xf32>
    %c0_6 = arith.constant 0 : index
    %c0_7 = arith.constant 0 : index
    %9 = vector.load %arg4[%c0_6, %c0_7] : memref<1x1xf32, #tpu.memory_space<vmem>>, vector<1x1xf32>
    %10 = vector.broadcast %9 : vector<1x1xf32> to vector<256x1xf32>
    %11 = arith.addf %8, %10 : vector<256x1xf32>
    %cst_8 = arith.constant -1.000000e+30 : f32
    %12 = vector.shape_cast %11 : vector<256x1xf32> to vector<256x1xf32>
    %13 = vector.broadcast %12 : vector<256x1xf32> to vector<256x2xf32>
    %14 = vector.broadcast %cst_8 : f32 to vector<256x2xf32>
    %15 = arith.select %3, %13, %14 : vector<256x2xi1>, vector<256x2xf32>
    %cst_9 = arith.constant dense<0xFF800000> : vector<2xf32>
    %16 = vector.multi_reduction <maximumf>, %15, %cst_9 [0] : vector<256x2xf32> to vector<2xf32>
    %17 = vector.shape_cast %16 : vector<2xf32> to vector<1x2xf32>
    %cst_10 = arith.constant 0.000000e+00 : f32
    %18 = vector.shape_cast %17 : vector<1x2xf32> to vector<1x2xf32>
    %19 = vector.broadcast %18 : vector<1x2xf32> to vector<256x2xf32>
    %20 = vector.broadcast %cst_10 : f32 to vector<256x2xf32>
    %21 = arith.select %3, %19, %20 : vector<256x2xi1>, vector<256x2xf32>
    %cst_11 = arith.constant dense<0.000000e+00> : vector<256xf32>
    %22 = vector.multi_reduction <add>, %21, %cst_11 [1] : vector<256x2xf32> to vector<256xf32>
    %23 = vector.shape_cast %22 : vector<256xf32> to vector<256x1xf32>
    %24 = arith.subf %11, %23 : vector<256x1xf32>
    %25 = math.exp %24 : vector<256x1xf32>
    %cst_12 = arith.constant 0.000000e+00 : f32
    %26 = vector.shape_cast %25 : vector<256x1xf32> to vector<256x1xf32>
    %27 = vector.broadcast %26 : vector<256x1xf32> to vector<256x2xf32>
    %28 = vector.broadcast %cst_12 : f32 to vector<256x2xf32>
    %29 = arith.select %3, %27, %28 : vector<256x2xi1>, vector<256x2xf32>
    %cst_13 = arith.constant dense<0.000000e+00> : vector<2xf32>
    %30 = vector.multi_reduction <add>, %29, %cst_13 [0] : vector<256x2xf32> to vector<2xf32>
    %31 = vector.shape_cast %30 : vector<2xf32> to vector<1x2xf32>
    %cst_14 = arith.constant 0.000000e+00 : f32
    %32 = vector.shape_cast %31 : vector<1x2xf32> to vector<1x2xf32>
    %33 = vector.broadcast %32 : vector<1x2xf32> to vector<256x2xf32>
    %34 = vector.broadcast %cst_14 : f32 to vector<256x2xf32>
    %35 = arith.select %3, %33, %34 : vector<256x2xi1>, vector<256x2xf32>
    %cst_15 = arith.constant dense<0.000000e+00> : vector<256xf32>
    %36 = vector.multi_reduction <add>, %35, %cst_15 [1] : vector<256x2xf32> to vector<256xf32>
    %37 = vector.shape_cast %36 : vector<256xf32> to vector<256x1xf32>
    %cst_16 = arith.constant 0.000000e+00 : f32
    %38 = vector.broadcast %cst_16 : f32 to vector<256x1xf32>
    %39 = arith.cmpf ogt, %37, %38 : vector<256x1xf32>
    %cst_17 = arith.constant 1.000000e+00 : f32
    %40 = vector.broadcast %cst_17 : f32 to vector<256x1xf32>
    %41 = arith.select %39, %37, %40 : vector<256x1xi1>, vector<256x1xf32>
    %42 = arith.divf %25, %41 : vector<256x1xf32>
    %c0_18 = arith.constant 0 : index
    %c0_19 = arith.constant 0 : index
    %43 = vector.load %arg1[%c0_18, %c0_19] : memref<2x256xf32, #tpu.memory_space<vmem>>, vector<2x256xf32>
    %44 = vector.broadcast %42 : vector<256x1xf32> to vector<256x128xf32>
    %45 = arith.mulf %44, %0 : vector<256x128xf32>
    %cst_20 = arith.constant dense<0.000000e+00> : vector<2x128xf32>
    %46 = tpu.matmul %43, %45, %cst_20 {dimension_numbers = #tpu.dot_dimension_numbers<[1], [0], [0], [1], [0, 0, 1, 1], [], []>} : vector<2x256xf32>, vector<256x128xf32>, vector<2x128xf32> -> vector<2x128xf32>
    %47 = tpu.iota {dimensions = array<i32: 1>} : vector<2x128xi32>
    %c8_i32 = arith.constant 8 : i32
    %48 = vector.broadcast %c8_i32 : i32 to vector<2x128xi32>
    %49 = arith.cmpi slt, %47, %48 : vector<2x128xi32>
    %cst_21 = arith.constant -1.000000e+30 : f32
    %50 = vector.broadcast %cst_21 : f32 to vector<2x128xf32>
    %51 = arith.select %49, %46, %50 : vector<2x128xi1>, vector<2x128xf32>
    %cst_22 = arith.constant dense<0xFF800000> : vector<2xf32>
    %52 = vector.multi_reduction <maximumf>, %51, %cst_22 [1] : vector<2x128xf32> to vector<2xf32>
    %53 = vector.shape_cast %52 : vector<2xf32> to vector<2x1xf32>
    %54 = vector.broadcast %53 : vector<2x1xf32> to vector<2x128xf32>
    %55 = arith.subf %51, %54 : vector<2x128xf32>
    %56 = math.exp %55 : vector<2x128xf32>
    %cst_23 = arith.constant dense<0.000000e+00> : vector<2xf32>
    %57 = vector.multi_reduction <add>, %56, %cst_23 [1] : vector<2x128xf32> to vector<2xf32>
    %58 = vector.shape_cast %57 : vector<2xf32> to vector<2x1xf32>
    %59 = math.log %58 : vector<2x1xf32>
    %60 = vector.broadcast %59 : vector<2x1xf32> to vector<2x128xf32>
    %61 = arith.subf %55, %60 : vector<2x128xf32>
    %c0_24 = arith.constant 0 : index
    %c0_25 = arith.constant 0 : index
    %62 = vector.load %arg5[%c0_24, %c0_25] : memref<2x128xf32, #tpu.memory_space<vmem>>, vector<2x128xf32>
    tpu.vector_store %arg5[%c0_24, %c0_25], %61 {strides = array<i32>} : memref<2x128xf32, #tpu.memory_space<vmem>>, vector<2x128xf32>,
    return
  }
}

</mosaic_0001>

<bundles_post_ra>
// kernel: gcn_forward.6
= control target key start
LH: loop header
LB: loop body
LE: loop exit
PB: predicated region body
PF: predicated region fallthrough
CT: control target
= control target key end

     0   :  { %s1297_s21 = smov 0   ;;  %s1299_s22 = smov 0   ;;  %s1538_s0 = inlined_call_operand.vmem [shape: bf16[256,128], index: 0, kind: input, shape index: {}]   ;;  %s1539_s1 = inlined_call_operand.vmem [shape: f32[256,8], index: 1, kind: input, shape index: {}]   ;;  %s1540_s2 = inlined_call_operand.vmem [shape: bf16[256,256], index: 2, kind: input, shape index: {}]   ;;  %s1541_s3 = inlined_call_operand.vmem [shape: f32[128,128], index: 3, kind: input, shape index: {}]   ;;  %s1542_s4 = inlined_call_operand.vmem [shape: f32[8,128], index: 4, kind: input, shape index: {}]   ;;  %s1543_s5 = inlined_call_operand.vmem [shape: f32[1,128], index: 5, kind: input, shape index: {}]   ;;  %s1544_s6 = inlined_call_operand.vmem [shape: f32[256,128], index: 6, kind: output, shape index: {}]  }
   0x1   :  { %s1301_s23 = smov 0   ;;  %s1303_s24 = smov 0  }
   0x2   :  { %s1305_s25 = smov 0   ;;  %s1307_s26 = smov 0  }
   0x3   :  { %s1309_s27 = smov 0  }
   0x4 LB: > { %s25_s28 = sadd.s32 1, %s1251_s25  ;;  %s28_s29 = sadd.s32 1, %s1255_s26  ;;  %s1259_s27 = sphi %s1309_s27, %s16_s27   ;;  %s1255_s26 = sphi %s1307_s26, %s1550_s26   ;;  %s1251_s25 = sphi %s1305_s25, %s1549_s25   ;;  %s1247_s24 = sphi %s1303_s24, %s1548_s24   ;;  %s1243_s23 = sphi %s1301_s23, %s1547_s23   ;;  %s1239_s22 = sphi %s1299_s22, %s1546_s22   ;;  %s1235_s21 = sphi %s1297_s21, %s1545_s21  }
   0x5   : > { %p26_p0 = scmp.ge.s32.totalorder %s25_s28, 2  ;;  %p96_p1 = scmp.ne.s32.totalorder %s1239_s22, %s1235_s21 }
   0x6   : > { %p97_p2 = scmp.eq.s32.totalorder %s1259_s27, 0  ;;  %s89_s9 = sadd.s32 1, %s1239_s22 }
   0x7   : > { %s1552_s28 = smov (%p26_p0, %s25_s28), 0  ;;  %s1554_s29 = smov (!%p26_p0, %s28_s29), %s1255_s26 }
   0x8   : > { %p98_p3 = por %p97_p2, %p96_p1  ;;  %p30_p4 = scmp.ge.s32.totalorder %s1554_s29, 2 }
   0x9   : > { %s85_s30 = ssub.s32 %s1251_s25, %s1552_s28  ;;  %p1010_p6 = scmp.ge.s32.totalorder %s1259_s27, 4 }
   0xa   : > { %s1556_s29 = smov (%p30_p4, %s1554_s29), 0 }
   0xb   : > { %s84_s7 = ssub.s32 %s1255_s26, %s1556_s29  ;;  %220 = sbr.rel (%p1010_p6) target bundleno = 38 (0x26), region = 28 }
   0xc   : > { %s86_s8 = sor.u32 %s85_s30, %s84_s7 }
   0xd   : > { %p87_p5 = scmp.eq.s32.totalorder %s86_s8, 0 }
   0xf   : > { %s1348_s10 = scalar_select %p87_p5, %s1239_s22, %s89_s9  }
  0x10   : > { %241 = sbr.rel (!%p98_p3) target bundleno = 38 (0x26), region = 40  ;;  %s243_s11 = sand.u32 (%p98_p3), 1, %s1239_s22  }
  0x11   : > { %s1075_s12 = sshll.u32 (%p98_p3), %s1255_s26, 5  ;;  %s1011_s13 = sshll.u32 (%p98_p3), %s243_s11, 6 }
  0x12   : > { %s248_s14 = sadd.s32 (%p98_p3), %s1251_s25, %s1075_s12  ;;  %s245_s19 = scalar_lea.vmem (%p98_p3), [#allocation3], %s1011_s13 }
  0x13   : > { %s1014_s15 = sshll.u32 (%p98_p3), %s248_s14, 2 }
  0x14   : > { %s1357_s18 = scalar_lea.vmem (%p98_p3), %s1540_s2, %s1014_s15 }
  0x15   : > { %v267_v0 = vld [vmem:[%s1357_s18] sm:$0xf]  ;;  %v269_v1 = vld [vmem:[%s1357_s18 + $0x8] sm:$0xf]  ;;  %v271_v2 = vld [vmem:[%s1357_s18 + $0x10] sm:$0xf] }
  0x16   : > { %268 = vst [vmem:[%s245_s19] sm:$0xf] %v267_v0  ;;  %v273_v3 = vld [vmem:[%s1357_s18 + $0x18] sm:$0xf]  ;;  %v275_v4 = vld [vmem:[%s1357_s18 + $0x20] sm:$0xf] }
  0x17   : > { %270 = vst [vmem:[%s245_s19 + $0x4] sm:$0xf] %v269_v1  ;;  %v277_v5 = vld [vmem:[%s1357_s18 + $0x28] sm:$0xf]  ;;  %v279_v6 = vld [vmem:[%s1357_s18 + $0x30] sm:$0xf] }
  0x18   : > { %272 = vst [vmem:[%s245_s19 + $0x8] sm:$0xf] %v271_v2  ;;  %v281_v7 = vld [vmem:[%s1357_s18 + $0x38] sm:$0xf]  ;;  %v283_v8 = vld [vmem:[%s1357_s18 + $0x40] sm:$0xf] }
  0x19   : > { %274 = vst [vmem:[%s245_s19 + $0xc] sm:$0xf] %v273_v3  ;;  %v285_v9 = vld [vmem:[%s1357_s18 + $0x48] sm:$0xf]  ;;  %v287_v10 = vld [vmem:[%s1357_s18 + $0x50] sm:$0xf] }
  0x1a   : > { %276 = vst [vmem:[%s245_s19 + $0x10] sm:$0xf] %v275_v4  ;;  %v289_v11 = vld [vmem:[%s1357_s18 + $0x58] sm:$0xf]  ;;  %v291_v12 = vld [vmem:[%s1357_s18 + $0x60] sm:$0xf] }
  0x1b   : > { %278 = vst [vmem:[%s245_s19 + $0x14] sm:$0xf] %v277_v5  ;;  %v293_v13 = vld [vmem:[%s1357_s18 + $0x68] sm:$0xf]  ;;  %v295_v14 = vld [vmem:[%s1357_s18 + $0x70] sm:$0xf] }
  0x1c   : > { %280 = vst [vmem:[%s245_s19 + $0x18] sm:$0xf] %v279_v6  ;;  %v297_v15 = vld [vmem:[%s1357_s18 + $0x78] sm:$0xf] }
  0x1d   : > { %282 = vst [vmem:[%s245_s19 + $0x1c] sm:$0xf] %v281_v7 }
  0x1e   : > { %284 = vst [vmem:[%s245_s19 + $0x20] sm:$0xf] %v283_v8 }
  0x1f   : > { %286 = vst [vmem:[%s245_s19 + $0x24] sm:$0xf] %v285_v9 }
  0x20   : > { %288 = vst [vmem:[%s245_s19 + $0x28] sm:$0xf] %v287_v10 }
  0x21   : > { %290 = vst [vmem:[%s245_s19 + $0x2c] sm:$0xf] %v289_v11 }
  0x22   : > { %292 = vst [vmem:[%s245_s19 + $0x30] sm:$0xf] %v291_v12 }
  0x23   : > { %294 = vst [vmem:[%s245_s19 + $0x34] sm:$0xf] %v293_v13 }
  0x24   : > { %296 = vst [vmem:[%s245_s19 + $0x38] sm:$0xf] %v295_v14 }
  0x25   : > { %298 = vst [vmem:[%s245_s19 + $0x3c] sm:$0xf] %v297_v15 }
  0x26 PF: > { %p1015_p7 = scmp.ge.s32.totalorder %s1259_s27, 1  ;;  %p353_p8 = scmp.lt.s32.totalorder %s1259_s27, 5 }
  0x28   : > { %p354_p9 = pnand %p1015_p7, %p353_p8 }
  0x29   : > { %s360_s20 = sand.u32 (!%p354_p9), 1, %s1235_s21   ;;  %s1017_s30 = sshll.u32 (!%p354_p9), %s1243_s23, 4 }
  0x2a   : > { %357 = sbr.rel (%p354_p9) target bundleno = 597 (0x255), region = 81  ;;  %s1016_s7 = sshll.u32 (!%p354_p9), %s360_s20, 6 }
  0x2b   : > { %p400_p10 = scmp.lt.s32.totalorder (!%p354_p9), %s1017_s30, 31  ;;  %s1021_s8 = sshll.u32 (!%p354_p9), %s1247_s24, 4 }
  0x2c   : > { %p413_p11 = scmp.lt.s32.totalorder (!%p354_p9), %s1021_s8, 31  ;;  %s1395_s20 = scalar_lea.vmem (!%p354_p9), [#allocation3], %s1016_s7 }
  0x2d   : > { %p1023_p12 = scmp.ne.s32.totalorder (!%p354_p9), %s1243_s23, 0 }
  0x2f   : > { %s1558_s30 = smov (!%p400_p10, %s1017_s30), 31  ;;  %s1560_s8 = smov (!%p413_p11, %s1021_s8), 31 }
  0x30   : > { %s1018_s9 = sshll.u32 %s1558_s30, 2  ;;  %s1020_s11 = sshll.u32 %s1558_s30, 3 }
  0x31   : > { %s1383_s14 = scalar_lea.vmem %s1538_s0, %s1018_s9  ;;  %s1388_s17 = scalar_lea.vmem %s1539_s1, %s1020_s11 }
  0x32   : > { %s1022_s21 = sshll.u32 %s1560_s8, 3  ;;  %421 = sbr.rel (%p1023_p12) target bundleno = 72 (0x48), region = 89 }
  0x33   : > { %s1393_s24 = scalar_lea.vmem %s1544_s6, %s1022_s21 }
  0x37   : > { %v1261_v16 = vmov 0.0  }
  0x38   : > { %422 = vst [vmem:[#allocation2 + $0x30] sm:$0xff] %v1261_v16 }
  0x39   : > { %423 = vst [vmem:[#allocation2] sm:$0xff] %v1261_v16 }
  0x3a   : > { %424 = vst [vmem:[#allocation2 + $0x58] sm:$0xff] %v1261_v16 }
  0x3b   : > { %425 = vst [vmem:[#allocation2 + $0x18] sm:$0xff] %v1261_v16 }
  0x3c   : > { %426 = vst [vmem:[#allocation2 + $0x50] sm:$0xff] %v1261_v16 }
  0x3d   : > { %427 = vst [vmem:[#allocation2 + $0x68] sm:$0xff] %v1261_v16 }
  0x3e   : > { %428 = vst [vmem:[#allocation2 + $0x8] sm:$0xff] %v1261_v16 }
  0x3f   : > { %429 = vst [vmem:[#allocation2 + $0x48] sm:$0xff] %v1261_v16 }
  0x40   : > { %430 = vst [vmem:[#allocation2 + $0x40] sm:$0xff] %v1261_v16 }
  0x41   : > { %431 = vst [vmem:[#allocation2 + $0x20] sm:$0xff] %v1261_v16 }
  0x42   : > { %432 = vst [vmem:[#allocation2 + $0x10] sm:$0xff] %v1261_v16 }
  0x43   : > { %433 = vst [vmem:[#allocation2 + $0x38] sm:$0xff] %v1261_v16 }
  0x44   : > { %434 = vst [vmem:[#allocation2 + $0x60] sm:$0xff] %v1261_v16 }
  0x45   : > { %435 = vst [vmem:[#allocation2 + $0x70] sm:$0xff] %v1261_v16 }
  0x46   : > { %436 = vst [vmem:[#allocation2 + $0x78] sm:$0xff] %v1261_v16 }
  0x47   : > { %437 = vst [vmem:[#allocation2 + $0x28] sm:$0xff] %v1261_v16 }
  0x48 PF: > { %v502_v17 = vld [vmem:[%s1542_s4] sm:$0xff]  ;;  %v485_v18 = vld [vmem:[%s1541_s3 + $0x78] sm:$0xff]  ;;  %vm503_vm0 = vcmask 64512   ;;  %v484_v20 = vld [vmem:[%s1541_s3 + $0x70] sm:$0xff]  ;;  %p1072_p13 = scmp.ne.s32.totalorder %s1243_s23, 1 }
  0x49   : > { %v486_v19 = vld [vmem:[%s1388_s17] sm:$0xff]  ;;  %567 = vmatpush.msra.mxu0 %v502_v17  ;;  %617 = vmatpush.msra.mxu1 %v485_v18  ;;  %v483_v21 = vld [vmem:[%s1541_s3 + $0x68] sm:$0xff]  ;;  %v481_v23 = vld [vmem:[%s1541_s3 + $0x58] sm:$0xff] }
  0x4a   : > { %1024 = vmatmul.msk.f32.vlgmr.msra.gmra.mxu0 %vm503_vm0, %v486_v19  ;;  %1123 = vmatpush.msra.mxu3 %v485_v18  ;;  %v482_v22 = vld [vmem:[%s1541_s3 + $0x60] sm:$0xff]  ;;  %v487_v24 = vld [vmem:[%s1388_s17 + $0x8] sm:$0xff]  ;;  %v480_v25 = vld [vmem:[%s1541_s3 + $0x50] sm:$0xff] }
  0x4b   : > { %618 = vmatpush.msra.mxu1 %v484_v20  ;;  %v479_v26 = vld [vmem:[%s1541_s3 + $0x48] sm:$0xff]  ;;  %v478_v27 = vld [vmem:[%s1541_s3 + $0x40] sm:$0xff]  ;;  %v477_v28 = vld [vmem:[%s1541_s3 + $0x38] sm:$0xff] }
  0x4c   : > { %1124 = vmatpush.msra.mxu3 %v484_v20  ;;  %v488_v29 = vld [vmem:[%s1388_s17 + $0x10] sm:$0xff]  ;;  %v475_v31 = vld [vmem:[%s1541_s3 + $0x28] sm:$0xff]  ;;  %v474_v32 = vld [vmem:[%s1541_s3 + $0x20] sm:$0xff] }
  0x4d   : > { %619 = vmatpush.msra.mxu1 %v483_v21  ;;  %v476_v30 = vld [vmem:[%s1541_s3 + $0x30] sm:$0xff]  ;;  %v473_v33 = vld [vmem:[%s1541_s3 + $0x18] sm:$0xff]  ;;  %v1085_v36 = vld [vmem:[%s1383_s14] sm:$0xff]  }
  0x4e   : > { %1125 = vmatpush.msra.mxu3 %v483_v21  ;;  %v489_v34 = vld [vmem:[%s1388_s17 + $0x18] sm:$0xff]  ;;  %v472_v35 = vld [vmem:[%s1541_s3 + $0x10] sm:$0xff]  ;;  %v471_v37 = vld [vmem:[%s1541_s3 + $0x8] sm:$0xff]  ;;  %v1086_v39 = vunpack.c.l.bf16 %v1085_v36  ;;  %v1087_v41 = vunpack.c.h.bf16 %v1085_v36 }
  0x4f   : > { %620 = vmatpush.msra.mxu1 %v482_v22  ;;  %v470_v38 = vld [vmem:[%s1541_s3] sm:$0xff]  ;;  %v491_v42 = vld [vmem:[%s1388_s17 + $0x28] sm:$0xff]  ;;  %v492_v45 = vld [vmem:[%s1388_s17 + $0x30] sm:$0xff] }
  0x50   : > { %1126 = vmatpush.msra.mxu3 %v482_v22  ;;  %v490_v40 = vld [vmem:[%s1388_s17 + $0x20] sm:$0xff]  ;;  %v1116_v43 = vld [vmem:[%s1383_s14 + $0x8] sm:$0xff]   ;;  %v493_v49 = vld [vmem:[%s1388_s17 + $0x38] sm:$0xff] }
  0x51   : > { %621 = vmatpush.msra.mxu1 %v481_v23  ;;  %v1090_v44 = vunpack.c.l.bf16 %v1116_v43  ;;  %v1120_v46 = vld [vmem:[%s1383_s14 + $0x28] sm:$0xff]   ;;  %v1091_v48 = vunpack.c.h.bf16 %v1116_v43  ;;  %v1117_v50 = vld [vmem:[%s1383_s14 + $0x10] sm:$0xff]   ;;  %v494_v54 = vld [vmem:[%s1388_s17 + $0x40] sm:$0xff] }
  0x52   : > { %1025 = vmatmul.msk.f32.gmra.mxu0 %vm503_vm0, %v487_v24  ;;  %1127 = vmatpush.msra.mxu3 %v481_v23  ;;  %v1107_v47 = vunpack.c.h.bf16 %v1120_v46  ;;  %v1121_v51 = vld [vmem:[%s1383_s14 + $0x30] sm:$0xff]   ;;  %v1094_v53 = vunpack.c.l.bf16 %v1117_v50  ;;  %v1095_v56 = vunpack.c.h.bf16 %v1117_v50  ;;  %v495_v57 = vld [vmem:[%s1388_s17 + $0x48] sm:$0xff]  ;;  %v1118_v58 = vld [vmem:[%s1383_s14 + $0x18] sm:$0xff]   ;;  %v1106_v7 = vunpack.c.l.bf16 %v1120_v46 }
  0x53   : > { %622 = vmatpush.msra.mxu1 %v480_v25  ;;  %v1110_v52 = vunpack.c.l.bf16 %v1121_v51  ;;  %v1111_v55 = vunpack.c.h.bf16 %v1121_v51  ;;  %v1122_v59 = vld [vmem:[%s1383_s14 + $0x38] sm:$0xff]   ;;  %v1098_v61 = vunpack.c.l.bf16 %v1118_v58  ;;  %v496_v62 = vld [vmem:[%s1388_s17 + $0x50] sm:$0xff]  ;;  %v1099_v0 = vunpack.c.h.bf16 %v1118_v58  ;;  %v1119_v2 = vld [vmem:[%s1383_s14 + $0x20] sm:$0xff]  }
  0x54   : > { %1128 = vmatpush.msra.mxu3 %v480_v25  ;;  %v1114_v60 = vunpack.c.l.bf16 %v1122_v59  ;;  %v1115_v63 = vunpack.c.h.bf16 %v1122_v59  ;;  %v497_v1 = vld [vmem:[%s1388_s17 + $0x58] sm:$0xff]  ;;  %v1102_v3 = vunpack.c.l.bf16 %v1119_v2  ;;  %v498_v4 = vld [vmem:[%s1388_s17 + $0x60] sm:$0xff]  ;;  %v1103_v5 = vunpack.c.h.bf16 %v1119_v2  ;;  %v499_v6 = vld [vmem:[%s1388_s17 + $0x68] sm:$0xff] }
  0x55   : > { %623 = vmatpush.msra.mxu1 %v479_v26  ;;  %v500_v8 = vld [vmem:[%s1388_s17 + $0x70] sm:$0xff]  ;;  %v501_v9 = vld [vmem:[%s1388_s17 + $0x78] sm:$0xff]  ;;  %v1076_v2 = vld [vmem:[%s1395_s20] sm:$0xff] }
  0x56   : > { %1129 = vmatpush.msra.mxu3 %v479_v26 }
  0x57   : > { %624 = vmatpush.msra.mxu1 %v478_v27 }
  0x58   : > { %1130 = vmatpush.msra.mxu3 %v478_v27 }
  0x59   : > { %625 = vmatpush.msra.mxu1 %v477_v28 }
  0x5a   : > { %1026 = vmatmul.msk.f32.gmra.mxu0 %vm503_vm0, %v488_v29  ;;  %1131 = vmatpush.msra.mxu3 %v477_v28 }
  0x5b   : > { %626 = vmatpush.msra.mxu1 %v476_v30 }
  0x5c   : > { %1132 = vmatpush.msra.mxu3 %v476_v30 }
  0x5d   : > { %627 = vmatpush.msra.mxu1 %v475_v31 }
  0x5e   : > { %1133 = vmatpush.msra.mxu3 %v475_v31 }
  0x5f   : > { %628 = vmatpush.msra.mxu1 %v474_v32 }
  0x60   : > { %1134 = vmatpush.msra.mxu3 %v474_v32 }
  0x61   : > { %629 = vmatpush.msra.mxu1 %v473_v33 }
  0x62   : > { %1027 = vmatmul.msk.f32.gmra.mxu0 %vm503_vm0, %v489_v34  ;;  %1135 = vmatpush.msra.mxu3 %v473_v33 }
  0x63   : > { %630 = vmatpush.msra.mxu1 %v472_v35 }
  0x64   : > { %1136 = vmatpush.msra.mxu3 %v472_v35 }
  0x65   : > { %631 = vmatpush.msra.mxu1 %v471_v37 }
  0x66   : > { %1137 = vmatpush.msra.mxu3 %v471_v37 }
  0x67   : > { %632 = vmatpush.msra.mxu1 %v470_v38 }
  0x68   : > { %633 = vmatmul.f32.vlgmr.msra.gmra.mxu1 %v1086_v39  ;;  %1138 = vmatpush.msra.mxu3 %v470_v38 }
  0x69   : > { %666 = vmatmul.f32.vlgmr.msra.gmra.mxu3 %v1107_v47 }
  0x6a   : > { %1028 = vmatmul.msk.f32.gmra.mxu0 %vm503_vm0, %v490_v40 }
  0x70   : > { %636 = vmatmul.f32.gmra.mxu1 %v1087_v41 }
  0x71   : > { %669 = vmatmul.f32.gmra.mxu3 %v1110_v52 }
  0x72   : > { %1029 = vmatmul.msk.f32.gmra.mxu0 %vm503_vm0, %v491_v42 }
  0x78   : > { %639 = vmatmul.f32.gmra.mxu1 %v1090_v44 }
  0x79   : > { %672 = vmatmul.f32.gmra.mxu3 %v1111_v55 }
  0x7a   : > { %1030 = vmatmul.msk.f32.gmra.mxu0 %vm503_vm0, %v492_v45 }
  0x80   : > { %642 = vmatmul.f32.gmra.mxu1 %v1091_v48 }
  0x81   : > { %675 = vmatmul.f32.gmra.mxu3 %v1114_v60 }
  0x82   : > { %1031 = vmatmul.msk.f32.gmra.mxu0 %vm503_vm0, %v493_v49 }
  0x88   : > { %645 = vmatmul.f32.gmra.mxu1 %v1094_v53 }
  0x89   : > { %678 = vmatmul.f32.gmra.mxu3 %v1115_v63 }
  0x8a   : > { %1032 = vmatmul.msk.f32.gmra.mxu0 %vm503_vm0, %v494_v54 }
  0x90   : > { %648 = vmatmul.f32.gmra.mxu1 %v1095_v56 }
  0x92   : > { %1033 = vmatmul.msk.f32.gmra.mxu0 %vm503_vm0, %v495_v57 }
  0x98   : > { %651 = vmatmul.f32.gmra.mxu1 %v1098_v61 }
  0x9a   : > { %1034 = vmatmul.msk.f32.gmra.mxu0 %vm503_vm0, %v496_v62 }
  0xa0   : > { %654 = vmatmul.f32.gmra.mxu1 %v1099_v0 }
  0xa2   : > { %1035 = vmatmul.msk.f32.gmra.mxu0 %vm503_vm0, %v497_v1 }
  0xa8   : > { %657 = vmatmul.f32.gmra.mxu1 %v1102_v3  ;;  %v1077_v3 = vld [vmem:[%s1395_s20 + $0x8] sm:$0xff] }
  0xaa   : > { %1036 = vmatmul.msk.f32.gmra.mxu0 %vm503_vm0, %v498_v4  ;;  %v1082_v4 = vld [vmem:[%s1395_s20 + $0x30] sm:$0xff] }
  0xb0   : > { %660 = vmatmul.f32.gmra.mxu1 %v1103_v5  ;;  %v1078_v5 = vld [vmem:[%s1395_s20 + $0x10] sm:$0xff] }
  0xb2   : > { %1037 = vmatmul.msk.f32.gmra.mxu0 %vm503_vm0, %v499_v6  ;;  %v1083_v6 = vld [vmem:[%s1395_s20 + $0x38] sm:$0xff] }
  0xb8   : > { %663 = vmatmul.f32.gmra.mxu1 %v1106_v7  ;;  %v1079_v7 = vld [vmem:[%s1395_s20 + $0x18] sm:$0xff] }
  0xba   : > { %1038 = vmatmul.msk.f32.gmra.mxu0 %vm503_vm0, %v500_v8  ;;  %v1080_v8 = vld [vmem:[%s1395_s20 + $0x20] sm:$0xff] }
  0xc2   : > { %1039 = vmatmul.msk.f32.gmra.mxu0 %vm503_vm0, %v501_v9  ;;  %v1081_v9 = vld [vmem:[%s1395_s20 + $0x28] sm:$0xff] }
  0xc7   : > { %v569_v10 = vpop.f32.mrf.mxu0 }
  0xcf   : > { %v572_v11 = vpop.f32.mrf.mxu0 }
  0xd7   : > { %v575_v12 = vpop.f32.mrf.mxu0 }
  0xdf   : > { %v578_v13 = vpop.f32.mrf.mxu0 }
  0xe5   : > { %v634_v14 = vpop.f32.mrf.mxu1 }
  0xe6   : > { %v635_v15 = vadd.f32 %v634_v14, %v569_v10  ;;  %v682_v10 = vld [vmem:[#allocation2 + $0x30] sm:$0xff] }
  0xe7   : > { %v581_v16 = vpop.f32.mrf.mxu0 }
  0xec   : > { %v667_v36 = vpop.f32.mrf.mxu3 }
  0xed   : > { %v637_v17 = vpop.f32.mrf.mxu1 }
  0xee   : > { %v638_v18 = vadd.f32 %v637_v17, %v572_v11 }
  0xef   : > { %v584_v19 = vpop.f32.mrf.mxu0 }
  0xf0   : > { %v714_v20 = vpack.c.bf16 %v638_v18, %v635_v15 }
  0xf4   : > { %v670_v42 = vpop.f32.mrf.mxu3 }
  0xf5   : > { %v640_v21 = vpop.f32.mrf.mxu1 }
  0xf6   : > { %v641_v22 = vadd.f32 %v640_v21, %v575_v12 }
  0xf7   : > { %v587_v23 = vpop.f32.mrf.mxu0 }
  0xfc   : > { %v673_v45 = vpop.f32.mrf.mxu3 }
  0xfd   : > { %v643_v24 = vpop.f32.mrf.mxu1 }
  0xfe   : > { %v644_v25 = vadd.f32 %v643_v24, %v578_v13  ;;  %v683_v13 = vld [vmem:[#allocation2] sm:$0xff] }
  0xff   : > { %v590_v26 = vpop.f32.mrf.mxu0 }
 0x100   : > { %v715_v27 = vpack.c.bf16 %v644_v25, %v641_v22  ;;  %v686_v25 = vld [vmem:[#allocation2 + $0x50] sm:$0xff] }
 0x104   : > { %v676_v48 = vpop.f32.mrf.mxu3 }
 0x105   : > { %v646_v28 = vpop.f32.mrf.mxu1 }
 0x106   : > { %v647_v31 = vadd.f32 %v646_v28, %v581_v16  ;;  %v684_v16 = vld [vmem:[#allocation2 + $0x58] sm:$0xff] }
 0x107   : > { %v593_v29 = vpop.f32.mrf.mxu0 }
 0x10c   : > { %v679_v51 = vpop.f32.mrf.mxu3 }
 0x10d   : > { %v649_v30 = vpop.f32.mrf.mxu1 }
 0x10e   : > { %v650_v32 = vadd.f32 %v649_v30, %v584_v19  ;;  %v685_v19 = vld [vmem:[#allocation2 + $0x18] sm:$0xff] }
 0x10f   : > { %v596_v33 = vpop.f32.mrf.mxu0 }
 0x110   : > { %v716_v34 = vpack.c.bf16 %v650_v32, %v647_v31  ;;  %v687_v31 = vld [vmem:[#allocation2 + $0x68] sm:$0xff] }
 0x115   : > { %v652_v35 = vpop.f32.mrf.mxu1 }
 0x116   : > { %v653_v39 = vadd.f32 %v652_v35, %v587_v23  ;;  %v694_v23 = vld [vmem:[#allocation2 + $0x60] sm:$0xff]  ;;  %v696_v35 = vld [vmem:[#allocation2 + $0x78] sm:$0xff] }
 0x117   : > { %v599_v37 = vpop.f32.mrf.mxu0 }
 0x11d   : > { %v655_v38 = vpop.f32.mrf.mxu1 }
 0x11e   : > { %v656_v40 = vadd.f32 %v655_v38, %v590_v26 }
 0x11f   : > { %v602_v41 = vpop.f32.mrf.mxu0 }
 0x120   : > { %v717_v43 = vpack.c.bf16 %v656_v40, %v653_v39  ;;  %v668_v61 = vadd.f32 %v667_v36, %v602_v41  ;;  %v697_v39 = vld [vmem:[#allocation2 + $0x28] sm:$0xff] }
 0x125   : > { %v658_v46 = vpop.f32.mrf.mxu1 }
 0x126   : > { %v659_v0 = vadd.f32 %v658_v46, %v593_v29  ;;  %v690_v46 = vld [vmem:[#allocation2 + $0x40] sm:$0xff] }
 0x127   : > { %v605_v44 = vpop.f32.mrf.mxu0 }
 0x128   : > { %v671_v58 = vadd.f32 %v670_v42, %v605_v44 }
 0x12d   : > { %v661_v50 = vpop.f32.mrf.mxu1 }
 0x12e   : > { %v662_v62 = vadd.f32 %v661_v50, %v596_v33 }
 0x12f   : > { %v608_v47 = vpop.f32.mrf.mxu0 }
 0x130   : > { %v674_v55 = vadd.f32 %v673_v45, %v608_v47  ;;  %v718_v1 = vpack.c.bf16 %v662_v62, %v659_v0 }
 0x132   : > { %v720_v60 = vpack.c.bf16 %v674_v55, %v671_v58  ;;  %v693_v55 = vld [vmem:[#allocation2 + $0x38] sm:$0xff] }
 0x135   : > { %v664_v57 = vpop.f32.mrf.mxu1 }
 0x136   : > { %v665_v59 = vadd.f32 %v664_v57, %v599_v37  ;;  %v688_v37 = vld [vmem:[#allocation2 + $0x8] sm:$0xff] }
 0x137   : > { %v611_v49 = vpop.f32.mrf.mxu0 }
 0x138   : > { %v677_v53 = vadd.f32 %v676_v48, %v611_v49  ;;  %v719_v63 = vpack.c.bf16 %v668_v61, %v665_v59  ;;  %v691_v49 = vld [vmem:[#allocation2 + $0x20] sm:$0xff] }
 0x13f   : > { %v614_v52 = vpop.f32.mrf.mxu0 }
 0x140   : > { %v680_v54 = vadd.f32 %v679_v51, %v614_v52  ;;  %v692_v52 = vld [vmem:[#allocation2 + $0x10] sm:$0xff] }
 0x142   : > { %v721_v56 = vpack.c.bf16 %v680_v54, %v677_v53 }
 0x144   : > { %770 = vmatpush.bf16.msra.mxu2 %v721_v56  ;;  %1139 = vmatpush.bf16.msrb.mxu3 %v721_v56 }
 0x148   : > { %771 = vmatpush.bf16.msra.mxu2 %v720_v60  ;;  %1140 = vmatpush.bf16.msrb.mxu3 %v720_v60 }
 0x14c   : > { %772 = vmatpush.bf16.msra.mxu2 %v719_v63  ;;  %1141 = vmatpush.bf16.msrb.mxu3 %v719_v63 }
 0x150   : > { %773 = vmatpush.bf16.msra.mxu2 %v718_v1  ;;  %1142 = vmatpush.bf16.msrb.mxu3 %v718_v1 }
 0x154   : > { %774 = vmatpush.bf16.msra.mxu2 %v717_v43  ;;  %1143 = vmatpush.bf16.msrb.mxu3 %v717_v43  ;;  %v689_v43 = vld [vmem:[#allocation2 + $0x48] sm:$0xff] }
 0x158   : > { %775 = vmatpush.bf16.msra.mxu2 %v716_v34  ;;  %1144 = vmatpush.bf16.msrb.mxu3 %v716_v34 }
 0x15c   : > { %776 = vmatpush.bf16.msra.mxu2 %v715_v27  ;;  %1145 = vmatpush.bf16.msrb.mxu3 %v715_v27  ;;  %v695_v27 = vld [vmem:[#allocation2 + $0x70] sm:$0xff] }
 0x160   : > { %777 = vmatpush.bf16.msra.mxu2 %v714_v20  ;;  %1146 = vmatpush.bf16.msrb.mxu3 %v714_v20 }
 0x163   : > { %778 = vmatmul.bf16.vlgmr.msra.gmra.mxu2 %v1076_v2  ;;  %808 = vmatmul.bf16.vlgmr.msrb.gmra.mxu3 %v1082_v4 }
 0x173   : > { %783 = vmatmul.bf16.gmra.mxu2 %v1077_v3  ;;  %813 = vmatmul.bf16.gmra.mxu3 %v1083_v6 }
 0x183   : > { %788 = vmatmul.bf16.gmra.mxu2 %v1078_v5 }
 0x193   : > { %793 = vmatmul.bf16.gmra.mxu2 %v1079_v7 }
 0x1a3   : > { %798 = vmatmul.bf16.gmra.mxu2 %v1080_v8 }
 0x1b3   : > { %803 = vmatmul.bf16.gmra.mxu2 %v1081_v9 }
 0x1e6   : > { %v779_v11 = vpop.f32.mrf.mxu2  ;;  %v809_v21 = vpop.f32.mrf.mxu3 }
 0x1e7   : > { %v819_v12 = vadd.f32 %v779_v11, %v682_v10  ;;  %v831_v24 = vadd.f32 %v809_v21, %v694_v23 }
 0x1e9   : > { %835 = vst [vmem:[#allocation2 + $0x30] sm:$0xff] %v819_v12 }
 0x1ea   : > { %847 = vst [vmem:[#allocation2 + $0x60] sm:$0xff] %v831_v24 }
 0x1ee   : > { %v781_v14 = vpop.f32.mrf.mxu2  ;;  %v811_v28 = vpop.f32.mrf.mxu3 }
 0x1ef   : > { %v820_v15 = vadd.f32 %v781_v14, %v683_v13  ;;  %v832_v30 = vadd.f32 %v811_v28, %v695_v27 }
 0x1f1   : > { %836 = vst [vmem:[#allocation2] sm:$0xff] %v820_v15 }
 0x1f2   : > { %848 = vst [vmem:[#allocation2 + $0x70] sm:$0xff] %v832_v30 }
 0x1f6   : > { %v784_v17 = vpop.f32.mrf.mxu2  ;;  %v814_v33 = vpop.f32.mrf.mxu3 }
 0x1f7   : > { %v821_v18 = vadd.f32 %v784_v17, %v684_v16  ;;  %v833_v36 = vadd.f32 %v814_v33, %v696_v35 }
 0x1f9   : > { %837 = vst [vmem:[#allocation2 + $0x58] sm:$0xff] %v821_v18 }
 0x1fa   : > { %849 = vst [vmem:[#allocation2 + $0x78] sm:$0xff] %v833_v36 }
 0x1fe   : > { %v786_v20 = vpop.f32.mrf.mxu2  ;;  %v816_v40 = vpop.f32.mrf.mxu3 }
 0x1ff   : > { %v822_v22 = vadd.f32 %v786_v20, %v685_v19  ;;  %v834_v42 = vadd.f32 %v816_v40, %v697_v39 }
 0x201   : > { %838 = vst [vmem:[#allocation2 + $0x18] sm:$0xff] %v822_v22 }
 0x202   : > { %850 = vst [vmem:[#allocation2 + $0x28] sm:$0xff] %v834_v42 }
 0x206   : > { %v789_v26 = vpop.f32.mrf.mxu2 }
 0x207   : > { %v823_v29 = vadd.f32 %v789_v26, %v686_v25 }
 0x209   : > { %839 = vst [vmem:[#allocation2 + $0x50] sm:$0xff] %v823_v29 }
 0x20e   : > { %v791_v32 = vpop.f32.mrf.mxu2 }
 0x20f   : > { %v824_v34 = vadd.f32 %v791_v32, %v687_v31 }
 0x211   : > { %840 = vst [vmem:[#allocation2 + $0x68] sm:$0xff] %v824_v34 }
 0x216   : > { %v794_v38 = vpop.f32.mrf.mxu2 }
 0x217   : > { %v825_v41 = vadd.f32 %v794_v38, %v688_v37 }
 0x219   : > { %841 = vst [vmem:[#allocation2 + $0x8] sm:$0xff] %v825_v41 }
 0x21e   : > { %v796_v44 = vpop.f32.mrf.mxu2 }
 0x21f   : > { %v826_v45 = vadd.f32 %v796_v44, %v689_v43 }
 0x221   : > { %842 = vst [vmem:[#allocation2 + $0x48] sm:$0xff] %v826_v45 }
 0x226   : > { %v799_v47 = vpop.f32.mrf.mxu2 }
 0x227   : > { %v827_v48 = vadd.f32 %v799_v47, %v690_v46 }
 0x229   : > { %843 = vst [vmem:[#allocation2 + $0x40] sm:$0xff] %v827_v48 }
 0x22e   : > { %v801_v50 = vpop.f32.mrf.mxu2 }
 0x22f   : > { %v828_v51 = vadd.f32 %v801_v50, %v691_v49 }
 0x231   : > { %844 = vst [vmem:[#allocation2 + $0x20] sm:$0xff] %v828_v51 }
 0x236   : > { %v804_v53 = vpop.f32.mrf.mxu2 }
 0x237   : > { %v829_v54 = vadd.f32 %v804_v53, %v692_v52 }
 0x239   : > { %845 = vst [vmem:[#allocation2 + $0x10] sm:$0xff] %v829_v54 }
 0x23d   : > { %854 = sbr.rel (%p1072_p13) target bundleno = 597 (0x255), region = 93 }
 0x23e   : > { %v806_v56 = vpop.f32.mrf.mxu2 }
 0x23f   : > { %v830_v57 = vadd.f32 %v806_v56, %v693_v55 }
 0x241   : > { %846 = vst [vmem:[#allocation2 + $0x38] sm:$0xff] %v830_v57 }
 0x242   : > { %v855_v58 = vld [vmem:[#allocation2 + $0x30] sm:$0xff]  ;;  %v1204_v59 = vld [vmem:[%s1543_s5] ss:$0 sm:$0xff]  ;;  %v857_v61 = vld [vmem:[#allocation2 + $0x58] sm:$0xff] }
 0x243   : > { %v856_v60 = vld [vmem:[#allocation2] sm:$0xff]  ;;  %v858_v62 = vld [vmem:[#allocation2 + $0x18] sm:$0xff]  ;;  %v875_v63 = vadd.f32 %v1204_v59, %v855_v58  ;;  %v877_v1 = vadd.f32 %v1204_v59, %v857_v61  ;;  %v859_v2 = vld [vmem:[#allocation2 + $0x50] sm:$0xff] }
 0x244   : > { %v876_v0 = vadd.f32 %v1204_v59, %v856_v60  ;;  %v860_v3 = vld [vmem:[#allocation2 + $0x68] sm:$0xff]  ;;  %v878_v4 = vadd.f32 %v1204_v59, %v858_v62  ;;  %v879_v6 = vadd.f32 %v1204_v59, %v859_v2  ;;  %v863_v9 = vld [vmem:[#allocation2 + $0x40] sm:$0xff]  ;;  %v865_v13 = vld [vmem:[#allocation2 + $0x10] sm:$0xff] }
 0x245   : > { %v861_v5 = vld [vmem:[#allocation2 + $0x8] sm:$0xff]  ;;  %891 = vst [vmem:[%s1393_s24] sm:$0xff] %v875_v63  ;;  %v880_v8 = vadd.f32 %v1204_v59, %v860_v3  ;;  %v864_v11 = vld [vmem:[#allocation2 + $0x20] sm:$0xff]  ;;  %v883_v14 = vadd.f32 %v1204_v59, %v863_v9  ;;  %v885_v18 = vadd.f32 %v1204_v59, %v865_v13  ;;  %v868_v19 = vld [vmem:[#allocation2 + $0x70] sm:$0xff] }
 0x246   : > { %v862_v7 = vld [vmem:[#allocation2 + $0x48] sm:$0xff]  ;;  %892 = vst [vmem:[%s1393_s24 + $0x8] sm:$0xff] %v876_v0  ;;  %v881_v10 = vadd.f32 %v1204_v59, %v861_v5  ;;  %v884_v16 = vadd.f32 %v1204_v59, %v864_v11  ;;  %v867_v17 = vld [vmem:[#allocation2 + $0x60] sm:$0xff]  ;;  %v869_v21 = vld [vmem:[#allocation2 + $0x78] sm:$0xff]  ;;  %v888_v24 = vadd.f32 %v1204_v59, %v868_v19 }
 0x247   : > { %893 = vst [vmem:[%s1393_s24 + $0x10] sm:$0xff] %v877_v1  ;;  %v882_v12 = vadd.f32 %v1204_v59, %v862_v7  ;;  %v887_v22 = vadd.f32 %v1204_v59, %v867_v17  ;;  %v870_v23 = vld [vmem:[#allocation2 + $0x28] sm:$0xff]  ;;  %v889_v25 = vadd.f32 %v1204_v59, %v869_v21 }
 0x248   : > { %894 = vst [vmem:[%s1393_s24 + $0x18] sm:$0xff] %v878_v4  ;;  %v866_v15 = vld [vmem:[#allocation2 + $0x38] sm:$0xff]  ;;  %v890_v26 = vadd.f32 %v1204_v59, %v870_v23 }
 0x249   : > { %895 = vst [vmem:[%s1393_s24 + $0x20] sm:$0xff] %v879_v6  ;;  %v886_v20 = vadd.f32 %v1204_v59, %v866_v15 }
 0x24a   : > { %896 = vst [vmem:[%s1393_s24 + $0x28] sm:$0xff] %v880_v8 }
 0x24b   : > { %897 = vst [vmem:[%s1393_s24 + $0x30] sm:$0xff] %v881_v10 }
 0x24c   : > { %898 = vst [vmem:[%s1393_s24 + $0x38] sm:$0xff] %v882_v12 }
 0x24d   : > { %899 = vst [vmem:[%s1393_s24 + $0x40] sm:$0xff] %v883_v14 }
 0x24e   : > { %900 = vst [vmem:[%s1393_s24 + $0x48] sm:$0xff] %v884_v16 }
 0x24f   : > { %901 = vst [vmem:[%s1393_s24 + $0x50] sm:$0xff] %v885_v18 }
 0x250   : > { %902 = vst [vmem:[%s1393_s24 + $0x58] sm:$0xff] %v886_v20 }
 0x251   : > { %903 = vst [vmem:[%s1393_s24 + $0x60] sm:$0xff] %v887_v22 }
 0x252   : > { %904 = vst [vmem:[%s1393_s24 + $0x68] sm:$0xff] %v888_v24 }
 0x253   : > { %905 = vst [vmem:[%s1393_s24 + $0x70] sm:$0xff] %v889_v25 }
 0x254   : > { %906 = vst [vmem:[%s1393_s24 + $0x78] sm:$0xff] %v890_v26 }
 0x255 PF: > { %s16_s27 = sadd.s32 1, %s1259_s27   ;;  %s1545_s21 = smov %s1239_s22 }
 0x256   : > { %p13_p0 = scmp.ge.s32.totalorder %s16_s27, 6   ;;  %s1546_s22 = smov %s1348_s10 }
 0x257   : > { %s1547_s23 = smov %s1251_s25  ;;  %s1548_s24 = smov %s1255_s26 }
 0x258   : > { %s1549_s25 = smov %s1552_s28  ;;  %s1550_s26 = smov %s1556_s29 }
 0x259   :  { %15 = sbr.rel (!%p13_p0) target bundleno = 4 (0x4), region = 134 }

// kernel: gcn_forward.5
= control target key start
LH: loop header
LB: loop body
LE: loop exit
PB: predicated region body
PF: predicated region fallthrough
CT: control target
= control target key end

     0   :  { %s1129_s15 = smov 0   ;;  %s1131_s16 = smov 0   ;;  %s1322_s0 = inlined_call_operand.vmem [shape: bf16[256,128], index: 0, kind: input, shape index: {}]   ;;  %s1323_s1 = inlined_call_operand.vmem [shape: bf16[256,256], index: 1, kind: input, shape index: {}]   ;;  %s1324_s2 = inlined_call_operand.vmem [shape: f32[128,128], index: 2, kind: input, shape index: {}]   ;;  %s1325_s3 = inlined_call_operand.vmem [shape: f32[1,128], index: 3, kind: input, shape index: {}]   ;;  %s1326_s4 = inlined_call_operand.vmem [shape: bf16[256,128], index: 4, kind: output, shape index: {}]  }
   0x1   :  { %s1133_s17 = smov 0   ;;  %s1135_s18 = smov 0  }
   0x2   :  { %s1137_s19 = smov 0   ;;  %s1139_s20 = smov 0  }
   0x3   :  { %s1141_s21 = smov 0  }
   0x4 LB: > { %s23_s22 = sadd.s32 1, %s1093_s19  ;;  %s26_s23 = sadd.s32 1, %s1097_s20  ;;  %s1101_s21 = sphi %s1141_s21, %s14_s21   ;;  %s1097_s20 = sphi %s1139_s20, %s1332_s20   ;;  %s1093_s19 = sphi %s1137_s19, %s1331_s19   ;;  %s1089_s18 = sphi %s1135_s18, %s1330_s18   ;;  %s1085_s17 = sphi %s1133_s17, %s1329_s17   ;;  %s1081_s16 = sphi %s1131_s16, %s1328_s16   ;;  %s1077_s15 = sphi %s1129_s15, %s1327_s15  }
   0x5   : > { %p24_p0 = scmp.ge.s32.totalorder %s23_s22, 2  ;;  %p68_p1 = scmp.ne.s32.totalorder %s1081_s16, %s1077_s15 }
   0x6   : > { %p69_p2 = scmp.eq.s32.totalorder %s1101_s21, 0  ;;  %s61_s27 = sadd.s32 1, %s1081_s16 }
   0x7   : > { %s1334_s22 = smov (%p24_p0, %s23_s22), 0  ;;  %s1336_s23 = smov (!%p24_p0, %s26_s23), %s1097_s20 }
   0x8   : > { %p70_p3 = por %p69_p2, %p68_p1  ;;  %p28_p4 = scmp.ge.s32.totalorder %s1336_s23, 2 }
   0x9   : > { %s57_s24 = ssub.s32 %s1093_s19, %s1334_s22  ;;  %p823_p6 = scmp.ge.s32.totalorder %s1101_s21, 4 }
   0xa   : > { %s1338_s23 = smov (%p28_p4, %s1336_s23), 0 }
   0xb   : > { %s56_s25 = ssub.s32 %s1097_s20, %s1338_s23  ;;  %168 = sbr.rel (%p823_p6) target bundleno = 38 (0x26), region = 24 }
   0xc   : > { %s58_s26 = sor.u32 %s57_s24, %s56_s25 }
   0xd   : > { %p59_p5 = scmp.eq.s32.totalorder %s58_s26, 0 }
   0xf   : > { %s1180_s28 = scalar_select %p59_p5, %s1081_s16, %s61_s27  }
  0x10   : > { %180 = sbr.rel (!%p70_p3) target bundleno = 38 (0x26), region = 32  ;;  %s182_s29 = sand.u32 (%p70_p3), 1, %s1081_s16  }
  0x11   : > { %s870_s30 = sshll.u32 (%p70_p3), %s1097_s20, 5  ;;  %s824_s5 = sshll.u32 (%p70_p3), %s182_s29, 6 }
  0x12   : > { %s187_s6 = sadd.s32 (%p70_p3), %s1093_s19, %s870_s30  ;;  %s184_s11 = scalar_lea.vmem (%p70_p3), [#allocation3], %s824_s5 }
  0x13   : > { %s827_s7 = sshll.u32 (%p70_p3), %s187_s6, 2 }
  0x14   : > { %s1189_s10 = scalar_lea.vmem (%p70_p3), %s1323_s1, %s827_s7 }
  0x15   : > { %v206_v0 = vld [vmem:[%s1189_s10] sm:$0xf]  ;;  %v208_v1 = vld [vmem:[%s1189_s10 + $0x8] sm:$0xf]  ;;  %v210_v2 = vld [vmem:[%s1189_s10 + $0x10] sm:$0xf] }
  0x16   : > { %207 = vst [vmem:[%s184_s11] sm:$0xf] %v206_v0  ;;  %v212_v3 = vld [vmem:[%s1189_s10 + $0x18] sm:$0xf]  ;;  %v214_v4 = vld [vmem:[%s1189_s10 + $0x20] sm:$0xf] }
  0x17   : > { %209 = vst [vmem:[%s184_s11 + $0x4] sm:$0xf] %v208_v1  ;;  %v216_v5 = vld [vmem:[%s1189_s10 + $0x28] sm:$0xf]  ;;  %v218_v6 = vld [vmem:[%s1189_s10 + $0x30] sm:$0xf] }
  0x18   : > { %211 = vst [vmem:[%s184_s11 + $0x8] sm:$0xf] %v210_v2  ;;  %v220_v7 = vld [vmem:[%s1189_s10 + $0x38] sm:$0xf]  ;;  %v222_v8 = vld [vmem:[%s1189_s10 + $0x40] sm:$0xf] }
  0x19   : > { %213 = vst [vmem:[%s184_s11 + $0xc] sm:$0xf] %v212_v3  ;;  %v224_v9 = vld [vmem:[%s1189_s10 + $0x48] sm:$0xf]  ;;  %v226_v10 = vld [vmem:[%s1189_s10 + $0x50] sm:$0xf] }
  0x1a   : > { %215 = vst [vmem:[%s184_s11 + $0x10] sm:$0xf] %v214_v4  ;;  %v228_v11 = vld [vmem:[%s1189_s10 + $0x58] sm:$0xf]  ;;  %v230_v12 = vld [vmem:[%s1189_s10 + $0x60] sm:$0xf] }
  0x1b   : > { %217 = vst [vmem:[%s184_s11 + $0x14] sm:$0xf] %v216_v5  ;;  %v232_v13 = vld [vmem:[%s1189_s10 + $0x68] sm:$0xf]  ;;  %v234_v14 = vld [vmem:[%s1189_s10 + $0x70] sm:$0xf] }
  0x1c   : > { %219 = vst [vmem:[%s184_s11 + $0x18] sm:$0xf] %v218_v6  ;;  %v236_v15 = vld [vmem:[%s1189_s10 + $0x78] sm:$0xf] }
  0x1d   : > { %221 = vst [vmem:[%s184_s11 + $0x1c] sm:$0xf] %v220_v7 }
  0x1e   : > { %223 = vst [vmem:[%s184_s11 + $0x20] sm:$0xf] %v222_v8 }
  0x1f   : > { %225 = vst [vmem:[%s184_s11 + $0x24] sm:$0xf] %v224_v9 }
  0x20   : > { %227 = vst [vmem:[%s184_s11 + $0x28] sm:$0xf] %v226_v10 }
  0x21   : > { %229 = vst [vmem:[%s184_s11 + $0x2c] sm:$0xf] %v228_v11 }
  0x22   : > { %231 = vst [vmem:[%s184_s11 + $0x30] sm:$0xf] %v230_v12 }
  0x23   : > { %233 = vst [vmem:[%s184_s11 + $0x34] sm:$0xf] %v232_v13 }
  0x24   : > { %235 = vst [vmem:[%s184_s11 + $0x38] sm:$0xf] %v234_v14 }
  0x25   : > { %237 = vst [vmem:[%s184_s11 + $0x3c] sm:$0xf] %v236_v15 }
  0x26 PF: > { %p828_p7 = scmp.ge.s32.totalorder %s1101_s21, 1  ;;  %p292_p8 = scmp.lt.s32.totalorder %s1101_s21, 5 }
  0x28   : > { %p293_p9 = pnand %p828_p7, %p292_p8 }
  0x29   : > { %s299_s12 = sand.u32 (!%p293_p9), 1, %s1077_s15   ;;  %s830_s13 = sshll.u32 (!%p293_p9), %s1085_s17, 4 }
  0x2a   : > { %296 = sbr.rel (%p293_p9) target bundleno = 532 (0x214), region = 73  ;;  %s829_s14 = sshll.u32 (!%p293_p9), %s299_s12, 6 }
  0x2b   : > { %p330_p10 = scmp.lt.s32.totalorder (!%p293_p9), %s830_s13, 31  ;;  %s832_s24 = sshll.u32 (!%p293_p9), %s1089_s18, 4 }
  0x2c   : > { %p337_p11 = scmp.lt.s32.totalorder (!%p293_p9), %s832_s24, 31  ;;  %s1222_s15 = scalar_lea.vmem (!%p293_p9), [#allocation3], %s829_s14 }
  0x2d   : > { %p834_p12 = scmp.ne.s32.totalorder (!%p293_p9), %s1085_s17, 0 }
  0x2f   : > { %s1340_s13 = smov (!%p330_p10, %s830_s13), 31  ;;  %s1342_s24 = smov (!%p337_p11, %s832_s24), 31 }
  0x30   : > { %s831_s25 = sshll.u32 %s1340_s13, 2  ;;  %s833_s30 = sshll.u32 %s1342_s24, 2 }
  0x31   : > { %s1215_s29 = scalar_lea.vmem %s1322_s0, %s831_s25  ;;  %s1220_s7 = scalar_lea.vmem %s1326_s4, %s833_s30 }
  0x32   : > { %345 = sbr.rel (%p834_p12) target bundleno = 72 (0x48), region = 81 }
  0x37   : > { %v1103_v16 = vmov 0.0  }
  0x38   : > { %346 = vst [vmem:[#allocation2 + $0x30] sm:$0xff] %v1103_v16 }
  0x39   : > { %347 = vst [vmem:[#allocation2] sm:$0xff] %v1103_v16 }
  0x3a   : > { %348 = vst [vmem:[#allocation2 + $0x58] sm:$0xff] %v1103_v16 }
  0x3b   : > { %349 = vst [vmem:[#allocation2 + $0x18] sm:$0xff] %v1103_v16 }
  0x3c   : > { %350 = vst [vmem:[#allocation2 + $0x50] sm:$0xff] %v1103_v16 }
  0x3d   : > { %351 = vst [vmem:[#allocation2 + $0x68] sm:$0xff] %v1103_v16 }
  0x3e   : > { %352 = vst [vmem:[#allocation2 + $0x8] sm:$0xff] %v1103_v16 }
  0x3f   : > { %353 = vst [vmem:[#allocation2 + $0x48] sm:$0xff] %v1103_v16 }
  0x40   : > { %354 = vst [vmem:[#allocation2 + $0x40] sm:$0xff] %v1103_v16 }
  0x41   : > { %355 = vst [vmem:[#allocation2 + $0x20] sm:$0xff] %v1103_v16 }
  0x42   : > { %356 = vst [vmem:[#allocation2 + $0x10] sm:$0xff] %v1103_v16 }
  0x43   : > { %357 = vst [vmem:[#allocation2 + $0x38] sm:$0xff] %v1103_v16 }
  0x44   : > { %358 = vst [vmem:[#allocation2 + $0x60] sm:$0xff] %v1103_v16 }
  0x45   : > { %359 = vst [vmem:[#allocation2 + $0x70] sm:$0xff] %v1103_v16 }
  0x46   : > { %360 = vst [vmem:[#allocation2 + $0x78] sm:$0xff] %v1103_v16 }
  0x47   : > { %361 = vst [vmem:[#allocation2 + $0x28] sm:$0xff] %v1103_v16 }
  0x48 PF: > { %v409_v17 = vld [vmem:[%s1324_s2 + $0x78] sm:$0xff]  ;;  %v408_v18 = vld [vmem:[%s1324_s2 + $0x70] sm:$0xff]  ;;  %v407_v19 = vld [vmem:[%s1324_s2 + $0x68] sm:$0xff]  ;;  %p867_p13 = scmp.ne.s32.totalorder %s1085_s17, 1 }
  0x49   : > { %965 = vmatpush.msra.mxu2 %v409_v17  ;;  %410 = vmatpush.msra.mxu0 %v409_v17  ;;  %v406_v20 = vld [vmem:[%s1324_s2 + $0x60] sm:$0xff]  ;;  %v405_v21 = vld [vmem:[%s1324_s2 + $0x58] sm:$0xff]  ;;  %v404_v22 = vld [vmem:[%s1324_s2 + $0x50] sm:$0xff] }
  0x4a   : > { %v403_v23 = vld [vmem:[%s1324_s2 + $0x48] sm:$0xff]  ;;  %v402_v24 = vld [vmem:[%s1324_s2 + $0x40] sm:$0xff]  ;;  %v401_v25 = vld [vmem:[%s1324_s2 + $0x38] sm:$0xff] }
  0x4b   : > { %966 = vmatpush.msra.mxu2 %v408_v18  ;;  %411 = vmatpush.msra.mxu0 %v408_v18  ;;  %v400_v26 = vld [vmem:[%s1324_s2 + $0x30] sm:$0xff]  ;;  %v399_v27 = vld [vmem:[%s1324_s2 + $0x28] sm:$0xff]  ;;  %v398_v28 = vld [vmem:[%s1324_s2 + $0x20] sm:$0xff] }
  0x4c   : > { %v397_v29 = vld [vmem:[%s1324_s2 + $0x18] sm:$0xff]  ;;  %v396_v30 = vld [vmem:[%s1324_s2 + $0x10] sm:$0xff]  ;;  %v954_v31 = vld [vmem:[%s1215_s29 + $0x20] sm:$0xff]  }
  0x4d   : > { %967 = vmatpush.msra.mxu2 %v407_v19  ;;  %412 = vmatpush.msra.mxu0 %v407_v19  ;;  %v880_v32 = vld [vmem:[%s1215_s29] sm:$0xff]   ;;  %v395_v33 = vld [vmem:[%s1324_s2 + $0x8] sm:$0xff]  ;;  %v897_v35 = vunpack.c.l.bf16 %v954_v31  ;;  %v898_v37 = vunpack.c.h.bf16 %v954_v31  ;;  %v956_v45 = vld [vmem:[%s1215_s29 + $0x30] sm:$0xff]  }
  0x4e   : > { %v394_v34 = vld [vmem:[%s1324_s2] sm:$0xff]  ;;  %v881_v36 = vunpack.c.l.bf16 %v880_v32  ;;  %v882_v38 = vunpack.c.h.bf16 %v880_v32  ;;  %v955_v39 = vld [vmem:[%s1215_s29 + $0x28] sm:$0xff]   ;;  %v952_v46 = vld [vmem:[%s1215_s29 + $0x10] sm:$0xff]   ;;  %v905_v47 = vunpack.c.l.bf16 %v956_v45  ;;  %v906_v49 = vunpack.c.h.bf16 %v956_v45 }
  0x4f   : > { %968 = vmatpush.msra.mxu2 %v406_v20  ;;  %413 = vmatpush.msra.mxu0 %v406_v20  ;;  %v951_v40 = vld [vmem:[%s1215_s29 + $0x8] sm:$0xff]   ;;  %v901_v41 = vunpack.c.l.bf16 %v955_v39  ;;  %v902_v43 = vunpack.c.h.bf16 %v955_v39  ;;  %v889_v48 = vunpack.c.l.bf16 %v952_v46  ;;  %v890_v50 = vunpack.c.h.bf16 %v952_v46  ;;  %v957_v51 = vld [vmem:[%s1215_s29 + $0x38] sm:$0xff]   ;;  %v871_v17 = vld [vmem:[%s1222_s15] sm:$0xff] }
  0x50   : > { %v885_v42 = vunpack.c.l.bf16 %v951_v40  ;;  %v886_v44 = vunpack.c.h.bf16 %v951_v40  ;;  %v953_v52 = vld [vmem:[%s1215_s29 + $0x18] sm:$0xff]   ;;  %v909_v53 = vunpack.c.l.bf16 %v957_v51  ;;  %v910_v55 = vunpack.c.h.bf16 %v957_v51  ;;  %v875_v18 = vld [vmem:[%s1222_s15 + $0x20] sm:$0xff]  ;;  %v872_v19 = vld [vmem:[%s1222_s15 + $0x8] sm:$0xff] }
  0x51   : > { %969 = vmatpush.msra.mxu2 %v405_v21  ;;  %414 = vmatpush.msra.mxu0 %v405_v21  ;;  %v893_v54 = vunpack.c.l.bf16 %v953_v52  ;;  %v894_v56 = vunpack.c.h.bf16 %v953_v52  ;;  %v876_v20 = vld [vmem:[%s1222_s15 + $0x28] sm:$0xff]  ;;  %v873_v21 = vld [vmem:[%s1222_s15 + $0x10] sm:$0xff]  ;;  %v486_v46 = vld [vmem:[#allocation2 + $0x38] sm:$0xff] }
  0x52   : > { %v485_v40 = vld [vmem:[#allocation2 + $0x10] sm:$0xff]  ;;  %v487_v52 = vld [vmem:[#allocation2 + $0x60] sm:$0xff] }
  0x53   : > { %970 = vmatpush.msra.mxu2 %v404_v22  ;;  %415 = vmatpush.msra.mxu0 %v404_v22  ;;  %v877_v22 = vld [vmem:[%s1222_s15 + $0x30] sm:$0xff] }
  0x55   : > { %971 = vmatpush.msra.mxu2 %v403_v23  ;;  %416 = vmatpush.msra.mxu0 %v403_v23  ;;  %v874_v23 = vld [vmem:[%s1222_s15 + $0x18] sm:$0xff] }
  0x57   : > { %972 = vmatpush.msra.mxu2 %v402_v24  ;;  %417 = vmatpush.msra.mxu0 %v402_v24  ;;  %v878_v24 = vld [vmem:[%s1222_s15 + $0x38] sm:$0xff] }
  0x59   : > { %973 = vmatpush.msra.mxu2 %v401_v25  ;;  %418 = vmatpush.msra.mxu0 %v401_v25  ;;  %v475_v25 = vld [vmem:[#allocation2 + $0x30] sm:$0xff] }
  0x5b   : > { %974 = vmatpush.msra.mxu2 %v400_v26  ;;  %419 = vmatpush.msra.mxu0 %v400_v26 }
  0x5d   : > { %975 = vmatpush.msra.mxu2 %v399_v27  ;;  %420 = vmatpush.msra.mxu0 %v399_v27 }
  0x5f   : > { %976 = vmatpush.msra.mxu2 %v398_v28  ;;  %421 = vmatpush.msra.mxu0 %v398_v28  ;;  %v483_v28 = vld [vmem:[#allocation2 + $0x40] sm:$0xff] }
  0x61   : > { %977 = vmatpush.msra.mxu2 %v397_v29  ;;  %422 = vmatpush.msra.mxu0 %v397_v29 }
  0x63   : > { %978 = vmatpush.msra.mxu2 %v396_v30  ;;  %423 = vmatpush.msra.mxu0 %v396_v30  ;;  %v476_v30 = vld [vmem:[#allocation2] sm:$0xff] }
  0x65   : > { %979 = vmatpush.msra.mxu2 %v395_v33  ;;  %424 = vmatpush.msra.mxu0 %v395_v33 }
  0x67   : > { %980 = vmatpush.msra.mxu2 %v394_v34  ;;  %425 = vmatpush.msra.mxu0 %v394_v34  ;;  %v484_v34 = vld [vmem:[#allocation2 + $0x20] sm:$0xff] }
  0x68   : > { %450 = vmatmul.f32.vlgmr.msra.gmra.mxu2 %v897_v35  ;;  %426 = vmatmul.f32.vlgmr.msra.gmra.mxu0 %v881_v36  ;;  %v477_v36 = vld [vmem:[#allocation2 + $0x58] sm:$0xff] }
  0x70   : > { %453 = vmatmul.f32.gmra.mxu2 %v898_v37  ;;  %429 = vmatmul.f32.gmra.mxu0 %v882_v38 }
  0x78   : > { %456 = vmatmul.f32.gmra.mxu2 %v901_v41  ;;  %432 = vmatmul.f32.gmra.mxu0 %v885_v42  ;;  %v478_v42 = vld [vmem:[#allocation2 + $0x18] sm:$0xff] }
  0x80   : > { %459 = vmatmul.f32.gmra.mxu2 %v902_v43  ;;  %435 = vmatmul.f32.gmra.mxu0 %v886_v44 }
  0x88   : > { %462 = vmatmul.f32.gmra.mxu2 %v905_v47  ;;  %438 = vmatmul.f32.gmra.mxu0 %v889_v48  ;;  %v479_v48 = vld [vmem:[#allocation2 + $0x50] sm:$0xff] }
  0x90   : > { %465 = vmatmul.f32.gmra.mxu2 %v906_v49  ;;  %441 = vmatmul.f32.gmra.mxu0 %v890_v50 }
  0x98   : > { %468 = vmatmul.f32.gmra.mxu2 %v909_v53  ;;  %444 = vmatmul.f32.gmra.mxu0 %v893_v54  ;;  %v480_v54 = vld [vmem:[#allocation2 + $0x68] sm:$0xff] }
  0xa0   : > { %471 = vmatmul.f32.gmra.mxu2 %v910_v55  ;;  %447 = vmatmul.f32.gmra.mxu0 %v894_v56 }
  0xe5   : > { %v427_v58 = vpop.f32.mrf.mxu0 }
  0xeb   : > { %v451_v57 = vpop.f32.mrf.mxu2 }
  0xed   : > { %v430_v60 = vpop.f32.mrf.mxu0 }
  0xee   : > { %v507_v16 = vpack.c.bf16 %v430_v60, %v427_v58  ;;  %v488_v58 = vld [vmem:[#allocation2 + $0x70] sm:$0xff]  ;;  %v481_v60 = vld [vmem:[#allocation2 + $0x8] sm:$0xff] }
  0xf3   : > { %v454_v59 = vpop.f32.mrf.mxu2 }
  0xf4   : > { %v511_v11 = vpack.c.bf16 %v454_v59, %v451_v57 }
  0xf5   : > { %v433_v62 = vpop.f32.mrf.mxu0 }
  0xfb   : > { %v457_v61 = vpop.f32.mrf.mxu2 }
  0xfd   : > { %v436_v0 = vpop.f32.mrf.mxu0 }
  0xfe   : > { %v508_v15 = vpack.c.bf16 %v436_v0, %v433_v62  ;;  %v489_v0 = vld [vmem:[#allocation2 + $0x78] sm:$0xff] }
 0x103   : > { %v460_v63 = vpop.f32.mrf.mxu2 }
 0x104   : > { %v512_v10 = vpack.c.bf16 %v460_v63, %v457_v61 }
 0x105   : > { %v439_v2 = vpop.f32.mrf.mxu0 }
 0x10b   : > { %v463_v1 = vpop.f32.mrf.mxu2 }
 0x10d   : > { %v442_v5 = vpop.f32.mrf.mxu0 }
 0x10e   : > { %v509_v14 = vpack.c.bf16 %v442_v5, %v439_v2  ;;  %v482_v2 = vld [vmem:[#allocation2 + $0x48] sm:$0xff] }
 0x113   : > { %v466_v3 = vpop.f32.mrf.mxu2 }
 0x114   : > { %v513_v9 = vpack.c.bf16 %v466_v3, %v463_v1 }
 0x115   : > { %v445_v8 = vpop.f32.mrf.mxu0 }
 0x11b   : > { %v469_v4 = vpop.f32.mrf.mxu2 }
 0x11d   : > { %v448_v12 = vpop.f32.mrf.mxu0 }
 0x11e   : > { %v510_v13 = vpack.c.bf16 %v448_v12, %v445_v8 }
 0x123   : > { %v472_v6 = vpop.f32.mrf.mxu2 }
 0x124   : > { %v514_v7 = vpack.c.bf16 %v472_v6, %v469_v4  ;;  %v490_v6 = vld [vmem:[#allocation2 + $0x28] sm:$0xff] }
 0x126   : > { %563 = vmatpush.bf16.msra.mxu1 %v514_v7  ;;  %981 = vmatpush.bf16.msra.mxu3 %v514_v7 }
 0x12a   : > { %564 = vmatpush.bf16.msra.mxu1 %v513_v9  ;;  %982 = vmatpush.bf16.msra.mxu3 %v513_v9 }
 0x12e   : > { %565 = vmatpush.bf16.msra.mxu1 %v512_v10  ;;  %983 = vmatpush.bf16.msra.mxu3 %v512_v10 }
 0x132   : > { %566 = vmatpush.bf16.msra.mxu1 %v511_v11  ;;  %984 = vmatpush.bf16.msra.mxu3 %v511_v11 }
 0x136   : > { %567 = vmatpush.bf16.msra.mxu1 %v510_v13  ;;  %985 = vmatpush.bf16.msra.mxu3 %v510_v13 }
 0x13a   : > { %568 = vmatpush.bf16.msra.mxu1 %v509_v14  ;;  %986 = vmatpush.bf16.msra.mxu3 %v509_v14 }
 0x13e   : > { %569 = vmatpush.bf16.msra.mxu1 %v508_v15  ;;  %987 = vmatpush.bf16.msra.mxu3 %v508_v15 }
 0x142   : > { %570 = vmatpush.bf16.msra.mxu1 %v507_v16  ;;  %988 = vmatpush.bf16.msra.mxu3 %v507_v16 }
 0x145   : > { %571 = vmatmul.bf16.vlgmr.msra.gmra.mxu1 %v871_v17  ;;  %591 = vmatmul.bf16.vlgmr.msra.gmra.mxu3 %v875_v18 }
 0x155   : > { %576 = vmatmul.bf16.gmra.mxu1 %v872_v19  ;;  %596 = vmatmul.bf16.gmra.mxu3 %v876_v20 }
 0x165   : > { %581 = vmatmul.bf16.gmra.mxu1 %v873_v21  ;;  %601 = vmatmul.bf16.gmra.mxu3 %v877_v22 }
 0x175   : > { %586 = vmatmul.bf16.gmra.mxu1 %v874_v23  ;;  %606 = vmatmul.bf16.gmra.mxu3 %v878_v24 }
 0x1c2   : > { %v572_v26 = vpop.f32.mrf.mxu1 }
 0x1c3   : > { %v612_v27 = vadd.f32 %v572_v26, %v475_v25 }
 0x1c5   : > { %628 = vst [vmem:[#allocation2 + $0x30] sm:$0xff] %v612_v27 }
 0x1c8   : > { %v592_v29 = vpop.f32.mrf.mxu3 }
 0x1c9   : > { %v620_v31 = vadd.f32 %v592_v29, %v483_v28 }
 0x1ca   : > { %v574_v32 = vpop.f32.mrf.mxu1 }
 0x1cb   : > { %636 = vst [vmem:[#allocation2 + $0x40] sm:$0xff] %v620_v31  ;;  %v613_v33 = vadd.f32 %v574_v32, %v476_v30 }
 0x1cd   : > { %629 = vst [vmem:[#allocation2] sm:$0xff] %v613_v33 }
 0x1d0   : > { %v594_v35 = vpop.f32.mrf.mxu3 }
 0x1d1   : > { %v621_v37 = vadd.f32 %v594_v35, %v484_v34 }
 0x1d2   : > { %v577_v38 = vpop.f32.mrf.mxu1 }
 0x1d3   : > { %637 = vst [vmem:[#allocation2 + $0x20] sm:$0xff] %v621_v37  ;;  %v614_v39 = vadd.f32 %v577_v38, %v477_v36 }
 0x1d5   : > { %630 = vst [vmem:[#allocation2 + $0x58] sm:$0xff] %v614_v39 }
 0x1d8   : > { %v597_v41 = vpop.f32.mrf.mxu3 }
 0x1d9   : > { %v622_v43 = vadd.f32 %v597_v41, %v485_v40 }
 0x1da   : > { %v579_v44 = vpop.f32.mrf.mxu1 }
 0x1db   : > { %638 = vst [vmem:[#allocation2 + $0x10] sm:$0xff] %v622_v43  ;;  %v615_v45 = vadd.f32 %v579_v44, %v478_v42 }
 0x1dd   : > { %631 = vst [vmem:[#allocation2 + $0x18] sm:$0xff] %v615_v45 }
 0x1e0   : > { %v599_v47 = vpop.f32.mrf.mxu3 }
 0x1e1   : > { %v623_v49 = vadd.f32 %v599_v47, %v486_v46 }
 0x1e2   : > { %v582_v50 = vpop.f32.mrf.mxu1 }
 0x1e3   : > { %639 = vst [vmem:[#allocation2 + $0x38] sm:$0xff] %v623_v49  ;;  %v616_v51 = vadd.f32 %v582_v50, %v479_v48 }
 0x1e5   : > { %632 = vst [vmem:[#allocation2 + $0x50] sm:$0xff] %v616_v51 }
 0x1e8   : > { %v602_v53 = vpop.f32.mrf.mxu3 }
 0x1e9   : > { %v624_v55 = vadd.f32 %v602_v53, %v487_v52 }
 0x1ea   : > { %v584_v56 = vpop.f32.mrf.mxu1 }
 0x1eb   : > { %640 = vst [vmem:[#allocation2 + $0x60] sm:$0xff] %v624_v55  ;;  %v617_v57 = vadd.f32 %v584_v56, %v480_v54 }
 0x1ed   : > { %633 = vst [vmem:[#allocation2 + $0x68] sm:$0xff] %v617_v57 }
 0x1f0   : > { %v604_v59 = vpop.f32.mrf.mxu3 }
 0x1f1   : > { %v625_v61 = vadd.f32 %v604_v59, %v488_v58 }
 0x1f2   : > { %v587_v62 = vpop.f32.mrf.mxu1 }
 0x1f3   : > { %641 = vst [vmem:[#allocation2 + $0x70] sm:$0xff] %v625_v61  ;;  %v618_v63 = vadd.f32 %v587_v62, %v481_v60 }
 0x1f5   : > { %634 = vst [vmem:[#allocation2 + $0x8] sm:$0xff] %v618_v63 }
 0x1f8   : > { %v607_v1 = vpop.f32.mrf.mxu3 }
 0x1f9   : > { %v626_v3 = vadd.f32 %v607_v1, %v489_v0 }
 0x1fa   : > { %v589_v4 = vpop.f32.mrf.mxu1 }
 0x1fb   : > { %642 = vst [vmem:[#allocation2 + $0x78] sm:$0xff] %v626_v3  ;;  %v619_v5 = vadd.f32 %v589_v4, %v482_v2 }
 0x1fd   : > { %635 = vst [vmem:[#allocation2 + $0x48] sm:$0xff] %v619_v5 }
 0x1ff   : > { %647 = sbr.rel (%p867_p13) target bundleno = 532 (0x214), region = 85 }
 0x200   : > { %v609_v7 = vpop.f32.mrf.mxu3 }
 0x201   : > { %v627_v8 = vadd.f32 %v609_v7, %v490_v6 }
 0x203   : > { %643 = vst [vmem:[#allocation2 + $0x28] sm:$0xff] %v627_v8 }
 0x204   : > { %v648_v9 = vld [vmem:[#allocation2 + $0x30] sm:$0xff]  ;;  %v649_v10 = vld [vmem:[#allocation2] sm:$0xff]  ;;  %v650_v12 = vld [vmem:[#allocation2 + $0x58] sm:$0xff] }
 0x205   : > { %v1046_v11 = vld [vmem:[%s1325_s3] ss:$0 sm:$0xff]  ;;  %v651_v13 = vld [vmem:[#allocation2 + $0x18] sm:$0xff]  ;;  %v652_v14 = vld [vmem:[#allocation2 + $0x50] sm:$0xff] }
 0x206   : > { %v653_v15 = vld [vmem:[#allocation2 + $0x68] sm:$0xff]  ;;  %v668_v17 = vadd.f32 %v1046_v11, %v648_v9  ;;  %v669_v18 = vadd.f32 %v1046_v11, %v649_v10  ;;  %v670_v19 = vadd.f32 %v1046_v11, %v650_v12  ;;  %v671_v20 = vadd.f32 %v1046_v11, %v651_v13  ;;  %v656_v26 = vld [vmem:[#allocation2 + $0x40] sm:$0xff]  ;;  %v658_v32 = vld [vmem:[#allocation2 + $0x10] sm:$0xff] }
 0x207   : > { %v654_v16 = vld [vmem:[#allocation2 + $0x8] sm:$0xff]  ;;  %v672_v22 = vadd.f32 %v1046_v11, %v652_v14  ;;  %v673_v23 = vadd.f32 %v1046_v11, %v653_v15  ;;  %v657_v27 = vld [vmem:[#allocation2 + $0x20] sm:$0xff]  ;;  %v659_v33 = vld [vmem:[#allocation2 + $0x38] sm:$0xff]  ;;  %v676_v42 = vadd.f32 %v1046_v11, %v656_v26  ;;  %v678_v48 = vadd.f32 %v1046_v11, %v658_v32 }
 0x208   : > { %v655_v21 = vld [vmem:[#allocation2 + $0x48] sm:$0xff]  ;;  %v674_v24 = vadd.f32 %v1046_v11, %v654_v16  ;;  %v684_v28 = vmax.f32 %v668_v17, 0.0  ;;  %v685_v29 = vmax.f32 %v669_v18, 0.0  ;;  %v686_v30 = vmax.f32 %v670_v19, 0.0  ;;  %v660_v38 = vld [vmem:[#allocation2 + $0x60] sm:$0xff]  ;;  %v661_v39 = vld [vmem:[#allocation2 + $0x70] sm:$0xff] }
 0x209   : > { %v675_v25 = vadd.f32 %v1046_v11, %v655_v21  ;;  %v687_v31 = vmax.f32 %v671_v20, 0.0  ;;  %v688_v34 = vmax.f32 %v672_v22, 0.0  ;;  %v689_v35 = vmax.f32 %v673_v23, 0.0  ;;  %v662_v44 = vld [vmem:[#allocation2 + $0x78] sm:$0xff] }
 0x20a   : > { %v690_v36 = vmax.f32 %v674_v24, 0.0  ;;  %v914_v40 = vpack.c.bf16 %v685_v29, %v684_v28  ;;  %v677_v43 = vadd.f32 %v1046_v11, %v657_v27  ;;  %v663_v45 = vld [vmem:[#allocation2 + $0x28] sm:$0xff]  ;;  %v679_v49 = vadd.f32 %v1046_v11, %v659_v33 }
 0x20b   : > { %v691_v37 = vmax.f32 %v675_v25, 0.0  ;;  %v919_v41 = vpack.c.bf16 %v687_v31, %v686_v30  ;;  %v924_v46 = vpack.c.bf16 %v689_v35, %v688_v34  ;;  %v692_v50 = vmax.f32 %v676_v42, 0.0 }
 0x20c   : > { %915 = vst [vmem:[%s1220_s7] sm:$0xff] %v914_v40   ;;  %v693_v51 = vmax.f32 %v677_v43, 0.0  ;;  %v680_v52 = vadd.f32 %v1046_v11, %v660_v38  ;;  %v681_v53 = vadd.f32 %v1046_v11, %v661_v39  ;;  %v694_v54 = vmax.f32 %v678_v48, 0.0 }
 0x20d   : > { %v929_v47 = vpack.c.bf16 %v691_v37, %v690_v36  ;;  %958 = vst [vmem:[%s1220_s7 + $0x8] sm:$0xff] %v919_v41   ;;  %v695_v55 = vmax.f32 %v679_v49, 0.0  ;;  %v682_v56 = vadd.f32 %v1046_v11, %v662_v44  ;;  %v683_v57 = vadd.f32 %v1046_v11, %v663_v45 }
 0x20e   : > { %959 = vst [vmem:[%s1220_s7 + $0x10] sm:$0xff] %v924_v46   ;;  %v934_v58 = vpack.c.bf16 %v693_v51, %v692_v50  ;;  %v696_v59 = vmax.f32 %v680_v52, 0.0  ;;  %v697_v60 = vmax.f32 %v681_v53, 0.0 }
 0x20f   : > { %960 = vst [vmem:[%s1220_s7 + $0x18] sm:$0xff] %v929_v47   ;;  %v939_v61 = vpack.c.bf16 %v695_v55, %v694_v54  ;;  %v698_v62 = vmax.f32 %v682_v56, 0.0  ;;  %v699_v63 = vmax.f32 %v683_v57, 0.0 }
 0x210   : > { %961 = vst [vmem:[%s1220_s7 + $0x20] sm:$0xff] %v934_v58   ;;  %v944_v0 = vpack.c.bf16 %v697_v60, %v696_v59 }
 0x211   : > { %962 = vst [vmem:[%s1220_s7 + $0x28] sm:$0xff] %v939_v61   ;;  %v949_v1 = vpack.c.bf16 %v699_v63, %v698_v62 }
 0x212   : > { %963 = vst [vmem:[%s1220_s7 + $0x30] sm:$0xff] %v944_v0  }
 0x213   : > { %964 = vst [vmem:[%s1220_s7 + $0x38] sm:$0xff] %v949_v1  }
 0x214 PF: > { %s14_s21 = sadd.s32 1, %s1101_s21   ;;  %s1327_s15 = smov %s1081_s16 }
 0x215   : > { %p11_p0 = scmp.ge.s32.totalorder %s14_s21, 6   ;;  %s1328_s16 = smov %s1180_s28 }
 0x216   : > { %s1329_s17 = smov %s1093_s19  ;;  %s1330_s18 = smov %s1097_s20 }
 0x217   : > { %s1331_s19 = smov %s1334_s22  ;;  %s1332_s20 = smov %s1338_s23 }
 0x218   :  { %13 = sbr.rel (!%p11_p0) target bundleno = 4 (0x4), region = 123 }

// kernel: gcn_forward.4
= control target key start
LH: loop header
LB: loop body
LE: loop exit
PB: predicated region body
PF: predicated region fallthrough
CT: control target
= control target key end

     0   :  { %s1117_s15 = smov 0   ;;  %s1119_s16 = smov 0   ;;  %s1289_s0 = inlined_call_operand.vmem [shape: f32[256,8], index: 0, kind: input, shape index: {}]   ;;  %s1290_s1 = inlined_call_operand.vmem [shape: bf16[256,256], index: 1, kind: input, shape index: {}]   ;;  %s1291_s2 = inlined_call_operand.vmem [shape: f32[8,128], index: 2, kind: input, shape index: {}]   ;;  %s1292_s3 = inlined_call_operand.vmem [shape: f32[1,128], index: 3, kind: input, shape index: {}]   ;;  %s1293_s4 = inlined_call_operand.vmem [shape: bf16[256,128], index: 4, kind: output, shape index: {}]  }
   0x1   :  { %s1121_s17 = smov 0   ;;  %s1123_s18 = smov 0  }
   0x2   :  { %s1125_s19 = smov 0   ;;  %s1127_s20 = smov 0  }
   0x3   :  { %s1129_s21 = smov 0  }
   0x4 LB: > { %s23_s22 = sadd.s32 1, %s1081_s19  ;;  %s26_s23 = sadd.s32 1, %s1085_s20  ;;  %s1089_s21 = sphi %s1129_s21, %s14_s21   ;;  %s1085_s20 = sphi %s1127_s20, %s1299_s20   ;;  %s1081_s19 = sphi %s1125_s19, %s1298_s19   ;;  %s1077_s18 = sphi %s1123_s18, %s1297_s18   ;;  %s1073_s17 = sphi %s1121_s17, %s1296_s17   ;;  %s1069_s16 = sphi %s1119_s16, %s1295_s16   ;;  %s1065_s15 = sphi %s1117_s15, %s1294_s15  }
   0x5   : > { %p24_p0 = scmp.ge.s32.totalorder %s23_s22, 2  ;;  %p68_p1 = scmp.ne.s32.totalorder %s1069_s16, %s1065_s15 }
   0x6   : > { %p69_p2 = scmp.eq.s32.totalorder %s1089_s21, 0  ;;  %s61_s27 = sadd.s32 1, %s1069_s16 }
   0x7   : > { %s1301_s22 = smov (%p24_p0, %s23_s22), 0  ;;  %s1303_s23 = smov (!%p24_p0, %s26_s23), %s1085_s20 }
   0x8   : > { %p70_p3 = por %p69_p2, %p68_p1  ;;  %p28_p4 = scmp.ge.s32.totalorder %s1303_s23, 2 }
   0x9   : > { %s57_s24 = ssub.s32 %s1081_s19, %s1301_s22  ;;  %p841_p6 = scmp.ge.s32.totalorder %s1089_s21, 4 }
   0xa   : > { %s1305_s23 = smov (%p28_p4, %s1303_s23), 0 }
   0xb   : > { %s56_s25 = ssub.s32 %s1085_s20, %s1305_s23  ;;  %168 = sbr.rel (%p841_p6) target bundleno = 38 (0x26), region = 24 }
   0xc   : > { %s58_s26 = sor.u32 %s57_s24, %s56_s25 }
   0xd   : > { %p59_p5 = scmp.eq.s32.totalorder %s58_s26, 0 }
   0xf   : > { %s1168_s28 = scalar_select %p59_p5, %s1069_s16, %s61_s27  }
  0x10   : > { %180 = sbr.rel (!%p70_p3) target bundleno = 38 (0x26), region = 32  ;;  %s182_s29 = sand.u32 (%p70_p3), 1, %s1069_s16  }
  0x11   : > { %s904_s30 = sshll.u32 (%p70_p3), %s1085_s20, 5  ;;  %s842_s5 = sshll.u32 (%p70_p3), %s182_s29, 6 }
  0x12   : > { %s187_s6 = sadd.s32 (%p70_p3), %s1081_s19, %s904_s30  ;;  %s184_s11 = scalar_lea.vmem (%p70_p3), [#allocation3], %s842_s5 }
  0x13   : > { %s845_s7 = sshll.u32 (%p70_p3), %s187_s6, 2 }
  0x14   : > { %s1177_s10 = scalar_lea.vmem (%p70_p3), %s1290_s1, %s845_s7 }
  0x15   : > { %v206_v0 = vld [vmem:[%s1177_s10] sm:$0xf]  ;;  %v208_v1 = vld [vmem:[%s1177_s10 + $0x8] sm:$0xf]  ;;  %v210_v2 = vld [vmem:[%s1177_s10 + $0x10] sm:$0xf] }
  0x16   : > { %207 = vst [vmem:[%s184_s11] sm:$0xf] %v206_v0  ;;  %v212_v3 = vld [vmem:[%s1177_s10 + $0x18] sm:$0xf]  ;;  %v214_v4 = vld [vmem:[%s1177_s10 + $0x20] sm:$0xf] }
  0x17   : > { %209 = vst [vmem:[%s184_s11 + $0x4] sm:$0xf] %v208_v1  ;;  %v216_v5 = vld [vmem:[%s1177_s10 + $0x28] sm:$0xf]  ;;  %v218_v6 = vld [vmem:[%s1177_s10 + $0x30] sm:$0xf] }
  0x18   : > { %211 = vst [vmem:[%s184_s11 + $0x8] sm:$0xf] %v210_v2  ;;  %v220_v7 = vld [vmem:[%s1177_s10 + $0x38] sm:$0xf]  ;;  %v222_v8 = vld [vmem:[%s1177_s10 + $0x40] sm:$0xf] }
  0x19   : > { %213 = vst [vmem:[%s184_s11 + $0xc] sm:$0xf] %v212_v3  ;;  %v224_v9 = vld [vmem:[%s1177_s10 + $0x48] sm:$0xf]  ;;  %v226_v10 = vld [vmem:[%s1177_s10 + $0x50] sm:$0xf] }
  0x1a   : > { %215 = vst [vmem:[%s184_s11 + $0x10] sm:$0xf] %v214_v4  ;;  %v228_v11 = vld [vmem:[%s1177_s10 + $0x58] sm:$0xf]  ;;  %v230_v12 = vld [vmem:[%s1177_s10 + $0x60] sm:$0xf] }
  0x1b   : > { %217 = vst [vmem:[%s184_s11 + $0x14] sm:$0xf] %v216_v5  ;;  %v232_v13 = vld [vmem:[%s1177_s10 + $0x68] sm:$0xf]  ;;  %v234_v14 = vld [vmem:[%s1177_s10 + $0x70] sm:$0xf] }
  0x1c   : > { %219 = vst [vmem:[%s184_s11 + $0x18] sm:$0xf] %v218_v6  ;;  %v236_v15 = vld [vmem:[%s1177_s10 + $0x78] sm:$0xf] }
  0x1d   : > { %221 = vst [vmem:[%s184_s11 + $0x1c] sm:$0xf] %v220_v7 }
  0x1e   : > { %223 = vst [vmem:[%s184_s11 + $0x20] sm:$0xf] %v222_v8 }
  0x1f   : > { %225 = vst [vmem:[%s184_s11 + $0x24] sm:$0xf] %v224_v9 }
  0x20   : > { %227 = vst [vmem:[%s184_s11 + $0x28] sm:$0xf] %v226_v10 }
  0x21   : > { %229 = vst [vmem:[%s184_s11 + $0x2c] sm:$0xf] %v228_v11 }
  0x22   : > { %231 = vst [vmem:[%s184_s11 + $0x30] sm:$0xf] %v230_v12 }
  0x23   : > { %233 = vst [vmem:[%s184_s11 + $0x34] sm:$0xf] %v232_v13 }
  0x24   : > { %235 = vst [vmem:[%s184_s11 + $0x38] sm:$0xf] %v234_v14 }
  0x25   : > { %237 = vst [vmem:[%s184_s11 + $0x3c] sm:$0xf] %v236_v15 }
  0x26 PF: > { %p846_p7 = scmp.ge.s32.totalorder %s1089_s21, 1  ;;  %p292_p8 = scmp.lt.s32.totalorder %s1089_s21, 5 }
  0x28   : > { %p293_p9 = pnand %p846_p7, %p292_p8 }
  0x29   : > { %s299_s12 = sand.u32 (!%p293_p9), 1, %s1065_s15   ;;  %s848_s13 = sshll.u32 (!%p293_p9), %s1073_s17, 4 }
  0x2a   : > { %296 = sbr.rel (%p293_p9) target bundleno = 500 (0x1f4), region = 73  ;;  %s847_s14 = sshll.u32 (!%p293_p9), %s299_s12, 6 }
  0x2b   : > { %p330_p10 = scmp.lt.s32.totalorder (!%p293_p9), %s848_s13, 31  ;;  %s850_s24 = sshll.u32 (!%p293_p9), %s1077_s18, 4 }
  0x2c   : > { %p337_p11 = scmp.lt.s32.totalorder (!%p293_p9), %s850_s24, 31  ;;  %s1210_s15 = scalar_lea.vmem (!%p293_p9), [#allocation3], %s847_s14 }
  0x2d   : > { %p852_p12 = scmp.ne.s32.totalorder (!%p293_p9), %s1073_s17, 0 }
  0x2f   : > { %s1307_s13 = smov (!%p330_p10, %s848_s13), 31  ;;  %s1309_s24 = smov (!%p337_p11, %s850_s24), 31 }
  0x30   : > { %s849_s25 = sshll.u32 %s1307_s13, 3  ;;  %s851_s30 = sshll.u32 %s1309_s24, 2 }
  0x31   : > { %s1203_s29 = scalar_lea.vmem %s1289_s0, %s849_s25  ;;  %s1208_s7 = scalar_lea.vmem %s1293_s4, %s851_s30 }
  0x32   : > { %345 = sbr.rel (%p852_p12) target bundleno = 72 (0x48), region = 81 }
  0x37   : > { %v1091_v16 = vmov 0.0  }
  0x38   : > { %346 = vst [vmem:[#allocation2 + $0x30] sm:$0xff] %v1091_v16 }
  0x39   : > { %347 = vst [vmem:[#allocation2] sm:$0xff] %v1091_v16 }
  0x3a   : > { %348 = vst [vmem:[#allocation2 + $0x58] sm:$0xff] %v1091_v16 }
  0x3b   : > { %349 = vst [vmem:[#allocation2 + $0x18] sm:$0xff] %v1091_v16 }
  0x3c   : > { %350 = vst [vmem:[#allocation2 + $0x50] sm:$0xff] %v1091_v16 }
  0x3d   : > { %351 = vst [vmem:[#allocation2 + $0x68] sm:$0xff] %v1091_v16 }
  0x3e   : > { %352 = vst [vmem:[#allocation2 + $0x8] sm:$0xff] %v1091_v16 }
  0x3f   : > { %353 = vst [vmem:[#allocation2 + $0x48] sm:$0xff] %v1091_v16 }
  0x40   : > { %354 = vst [vmem:[#allocation2 + $0x40] sm:$0xff] %v1091_v16 }
  0x41   : > { %355 = vst [vmem:[#allocation2 + $0x20] sm:$0xff] %v1091_v16 }
  0x42   : > { %356 = vst [vmem:[#allocation2 + $0x10] sm:$0xff] %v1091_v16 }
  0x43   : > { %357 = vst [vmem:[#allocation2 + $0x38] sm:$0xff] %v1091_v16 }
  0x44   : > { %358 = vst [vmem:[#allocation2 + $0x60] sm:$0xff] %v1091_v16 }
  0x45   : > { %359 = vst [vmem:[#allocation2 + $0x70] sm:$0xff] %v1091_v16 }
  0x46   : > { %360 = vst [vmem:[#allocation2 + $0x78] sm:$0xff] %v1091_v16 }
  0x47   : > { %361 = vst [vmem:[#allocation2 + $0x28] sm:$0xff] %v1091_v16 }
  0x48 PF: > { %v378_v17 = vld [vmem:[%s1291_s2] sm:$0xff]  ;;  %vm379_vm0 = vcmask 64512   ;;  %v372_v19 = vld [vmem:[%s1203_s29 + $0x50] sm:$0xff]  ;;  %v363_v20 = vld [vmem:[%s1203_s29 + $0x8] sm:$0xff]  ;;  %p901_p13 = scmp.ne.s32.totalorder %s1073_s17, 1 }
  0x49   : > { %v362_v18 = vld [vmem:[%s1203_s29] sm:$0xff]  ;;  %443 = vmatpush.msra.mxu0 %v378_v17  ;;  %960 = vmatpush.msra.mxu3 %v378_v17  ;;  %v373_v21 = vld [vmem:[%s1203_s29 + $0x58] sm:$0xff]  ;;  %v364_v22 = vld [vmem:[%s1203_s29 + $0x10] sm:$0xff] }
  0x4a   : > { %853 = vmatmul.msk.f32.vlgmr.msra.gmra.mxu0 %vm379_vm0, %v362_v18  ;;  %863 = vmatmul.msk.f32.vlgmr.msra.gmra.mxu3 %vm379_vm0, %v372_v19  ;;  %v374_v23 = vld [vmem:[%s1203_s29 + $0x60] sm:$0xff]  ;;  %v365_v24 = vld [vmem:[%s1203_s29 + $0x18] sm:$0xff]  ;;  %v375_v25 = vld [vmem:[%s1203_s29 + $0x68] sm:$0xff] }
  0x4b   : > { %v366_v26 = vld [vmem:[%s1203_s29 + $0x20] sm:$0xff]  ;;  %v376_v27 = vld [vmem:[%s1203_s29 + $0x70] sm:$0xff]  ;;  %v367_v28 = vld [vmem:[%s1203_s29 + $0x28] sm:$0xff] }
  0x4c   : > { %v377_v29 = vld [vmem:[%s1203_s29 + $0x78] sm:$0xff]  ;;  %v368_v30 = vld [vmem:[%s1203_s29 + $0x30] sm:$0xff]  ;;  %v370_v32 = vld [vmem:[%s1203_s29 + $0x40] sm:$0xff] }
  0x4d   : > { %v369_v31 = vld [vmem:[%s1203_s29 + $0x38] sm:$0xff]  ;;  %v371_v33 = vld [vmem:[%s1203_s29 + $0x48] sm:$0xff]  ;;  %v905_v59 = vld [vmem:[%s1210_s15] sm:$0xff] }
  0x4e   : > { %v908_v58 = vld [vmem:[%s1210_s15 + $0x18] sm:$0xff]  ;;  %v909_v61 = vld [vmem:[%s1210_s15 + $0x20] sm:$0xff]  ;;  %v906_v62 = vld [vmem:[%s1210_s15 + $0x8] sm:$0xff] }
  0x4f   : > { %v912_v60 = vld [vmem:[%s1210_s15 + $0x38] sm:$0xff]  ;;  %v910_v63 = vld [vmem:[%s1210_s15 + $0x28] sm:$0xff]  ;;  %v907_v0 = vld [vmem:[%s1210_s15 + $0x10] sm:$0xff] }
  0x50   : > { %v911_v1 = vld [vmem:[%s1210_s15 + $0x30] sm:$0xff]  ;;  %v499_v5 = vld [vmem:[#allocation2 + $0x8] sm:$0xff]  ;;  %v494_v7 = vld [vmem:[#allocation2] sm:$0xff] }
  0x51   : > { %v493_v2 = vld [vmem:[#allocation2 + $0x30] sm:$0xff]  ;;  %v500_v11 = vld [vmem:[#allocation2 + $0x48] sm:$0xff]  ;;  %v495_v13 = vld [vmem:[#allocation2 + $0x58] sm:$0xff] }
  0x52   : > { %854 = vmatmul.msk.f32.gmra.mxu0 %vm379_vm0, %v363_v20  ;;  %864 = vmatmul.msk.f32.gmra.mxu3 %vm379_vm0, %v373_v21  ;;  %v507_v18 = vld [vmem:[#allocation2 + $0x78] sm:$0xff]  ;;  %v501_v20 = vld [vmem:[#allocation2 + $0x40] sm:$0xff] }
  0x5a   : > { %855 = vmatmul.msk.f32.gmra.mxu0 %vm379_vm0, %v364_v22  ;;  %865 = vmatmul.msk.f32.gmra.mxu3 %vm379_vm0, %v374_v23  ;;  %v496_v22 = vld [vmem:[#allocation2 + $0x18] sm:$0xff] }
  0x62   : > { %856 = vmatmul.msk.f32.gmra.mxu0 %vm379_vm0, %v365_v24  ;;  %866 = vmatmul.msk.f32.gmra.mxu3 %vm379_vm0, %v375_v25  ;;  %v508_v24 = vld [vmem:[#allocation2 + $0x28] sm:$0xff] }
  0x6a   : > { %857 = vmatmul.msk.f32.gmra.mxu0 %vm379_vm0, %v366_v26  ;;  %867 = vmatmul.msk.f32.gmra.mxu3 %vm379_vm0, %v376_v27 }
  0x72   : > { %858 = vmatmul.msk.f32.gmra.mxu0 %vm379_vm0, %v367_v28  ;;  %868 = vmatmul.msk.f32.gmra.mxu3 %vm379_vm0, %v377_v29  ;;  %v502_v29 = vld [vmem:[#allocation2 + $0x20] sm:$0xff] }
  0x7a   : > { %859 = vmatmul.msk.f32.gmra.mxu0 %vm379_vm0, %v368_v30 }
  0x82   : > { %860 = vmatmul.msk.f32.gmra.mxu0 %vm379_vm0, %v369_v31  ;;  %v497_v31 = vld [vmem:[#allocation2 + $0x50] sm:$0xff] }
  0x8a   : > { %861 = vmatmul.msk.f32.gmra.mxu0 %vm379_vm0, %v370_v32 }
  0x92   : > { %862 = vmatmul.msk.f32.gmra.mxu0 %vm379_vm0, %v371_v33 }
  0xc7   : > { %v445_v34 = vpop.f32.mrf.mxu0 }
  0xcd   : > { %v475_v35 = vpop.f32.mrf.mxu3 }
  0xcf   : > { %v448_v36 = vpop.f32.mrf.mxu0 }
  0xd0   : > { %v525_v37 = vpack.c.bf16 %v448_v36, %v445_v34 }
  0xd5   : > { %v478_v38 = vpop.f32.mrf.mxu3 }
  0xd6   : > { %v530_v50 = vpack.c.bf16 %v478_v38, %v475_v35  ;;  %v503_v35 = vld [vmem:[#allocation2 + $0x10] sm:$0xff] }
  0xd7   : > { %v451_v39 = vpop.f32.mrf.mxu0 }
  0xdd   : > { %v481_v40 = vpop.f32.mrf.mxu3 }
  0xdf   : > { %v454_v41 = vpop.f32.mrf.mxu0 }
  0xe0   : > { %v526_v57 = vpack.c.bf16 %v454_v41, %v451_v39  ;;  %v504_v41 = vld [vmem:[#allocation2 + $0x38] sm:$0xff] }
  0xe5   : > { %v484_v42 = vpop.f32.mrf.mxu3 }
  0xe6   : > { %v531_v49 = vpack.c.bf16 %v484_v42, %v481_v40 }
  0xe7   : > { %v457_v43 = vpop.f32.mrf.mxu0 }
  0xed   : > { %v487_v44 = vpop.f32.mrf.mxu3 }
  0xef   : > { %v460_v45 = vpop.f32.mrf.mxu0 }
  0xf0   : > { %v527_v56 = vpack.c.bf16 %v460_v45, %v457_v43 }
  0xf5   : > { %v490_v46 = vpop.f32.mrf.mxu3 }
  0xf6   : > { %v532_v47 = vpack.c.bf16 %v490_v46, %v487_v44  ;;  %v505_v44 = vld [vmem:[#allocation2 + $0x60] sm:$0xff] }
  0xf7   : > { %v463_v48 = vpop.f32.mrf.mxu0 }
  0xf8   : > { %581 = vmatpush.bf16.msra.mxu1 %v532_v47  ;;  %961 = vmatpush.bf16.msra.mxu2 %v532_v47 }
  0xf9   : > { %962 = vmatpush.bf16.msrb.mxu3 %v532_v47  ;;  %v506_v47 = vld [vmem:[#allocation2 + $0x70] sm:$0xff] }
  0xfc   : > { %582 = vmatpush.bf16.msra.mxu1 %v531_v49  ;;  %963 = vmatpush.bf16.msra.mxu2 %v531_v49 }
  0xfd   : > { %964 = vmatpush.bf16.msrb.mxu3 %v531_v49 }
  0xff   : > { %v466_v51 = vpop.f32.mrf.mxu0 }
 0x100   : > { %583 = vmatpush.bf16.msra.mxu1 %v530_v50  ;;  %965 = vmatpush.bf16.msra.mxu2 %v530_v50  ;;  %v528_v55 = vpack.c.bf16 %v466_v51, %v463_v48 }
 0x101   : > { %966 = vmatpush.bf16.msrb.mxu3 %v530_v50 }
 0x107   : > { %v469_v52 = vpop.f32.mrf.mxu0 }
 0x10f   : > { %v472_v53 = vpop.f32.mrf.mxu0 }
 0x110   : > { %v529_v54 = vpack.c.bf16 %v472_v53, %v469_v52 }
 0x112   : > { %584 = vmatpush.bf16.msra.mxu1 %v529_v54  ;;  %967 = vmatpush.bf16.msra.mxu2 %v529_v54 }
 0x113   : > { %968 = vmatpush.bf16.msrb.mxu3 %v529_v54 }
 0x116   : > { %585 = vmatpush.bf16.msra.mxu1 %v528_v55  ;;  %969 = vmatpush.bf16.msra.mxu2 %v528_v55 }
 0x117   : > { %970 = vmatpush.bf16.msrb.mxu3 %v528_v55 }
 0x11a   : > { %586 = vmatpush.bf16.msra.mxu1 %v527_v56  ;;  %971 = vmatpush.bf16.msra.mxu2 %v527_v56 }
 0x11b   : > { %972 = vmatpush.bf16.msrb.mxu3 %v527_v56 }
 0x11e   : > { %587 = vmatpush.bf16.msra.mxu1 %v526_v57  ;;  %973 = vmatpush.bf16.msra.mxu2 %v526_v57 }
 0x11f   : > { %974 = vmatpush.bf16.msrb.mxu3 %v526_v57 }
 0x122   : > { %588 = vmatpush.bf16.msra.mxu1 %v525_v37  ;;  %975 = vmatpush.bf16.msra.mxu2 %v525_v37 }
 0x123   : > { %976 = vmatpush.bf16.msrb.mxu3 %v525_v37  ;;  %v498_v37 = vld [vmem:[#allocation2 + $0x68] sm:$0xff] }
 0x125   : > { %604 = vmatmul.bf16.vlgmr.msra.gmra.mxu2 %v908_v58  ;;  %589 = vmatmul.bf16.vlgmr.msra.gmra.mxu1 %v905_v59 }
 0x126   : > { %624 = vmatmul.bf16.vlgmr.msrb.gmra.mxu3 %v912_v60 }
 0x135   : > { %609 = vmatmul.bf16.gmra.mxu2 %v909_v61  ;;  %594 = vmatmul.bf16.gmra.mxu1 %v906_v62 }
 0x145   : > { %614 = vmatmul.bf16.gmra.mxu2 %v910_v63  ;;  %599 = vmatmul.bf16.gmra.mxu1 %v907_v0 }
 0x155   : > { %619 = vmatmul.bf16.gmra.mxu2 %v911_v1 }
 0x1a2   : > { %v590_v3 = vpop.f32.mrf.mxu1 }
 0x1a3   : > { %v630_v4 = vadd.f32 %v590_v3, %v493_v2 }
 0x1a5   : > { %646 = vst [vmem:[#allocation2 + $0x30] sm:$0xff] %v630_v4 }
 0x1a8   : > { %v605_v6 = vpop.f32.mrf.mxu2 }
 0x1a9   : > { %v636_v8 = vadd.f32 %v605_v6, %v499_v5  ;;  %v625_v15 = vpop.f32.mrf.mxu3 }
 0x1aa   : > { %v592_v9 = vpop.f32.mrf.mxu1  ;;  %v644_v19 = vadd.f32 %v625_v15, %v507_v18 }
 0x1ab   : > { %652 = vst [vmem:[#allocation2 + $0x8] sm:$0xff] %v636_v8  ;;  %v631_v10 = vadd.f32 %v592_v9, %v494_v7 }
 0x1ac   : > { %660 = vst [vmem:[#allocation2 + $0x78] sm:$0xff] %v644_v19 }
 0x1ad   : > { %647 = vst [vmem:[#allocation2] sm:$0xff] %v631_v10 }
 0x1b0   : > { %v607_v12 = vpop.f32.mrf.mxu2 }
 0x1b1   : > { %v637_v14 = vadd.f32 %v607_v12, %v500_v11  ;;  %v627_v25 = vpop.f32.mrf.mxu3 }
 0x1b2   : > { %v595_v16 = vpop.f32.mrf.mxu1  ;;  %v645_v27 = vadd.f32 %v627_v25, %v508_v24 }
 0x1b3   : > { %653 = vst [vmem:[#allocation2 + $0x48] sm:$0xff] %v637_v14  ;;  %v632_v17 = vadd.f32 %v595_v16, %v495_v13 }
 0x1b4   : > { %661 = vst [vmem:[#allocation2 + $0x28] sm:$0xff] %v645_v27 }
 0x1b5   : > { %648 = vst [vmem:[#allocation2 + $0x58] sm:$0xff] %v632_v17 }
 0x1b8   : > { %v610_v21 = vpop.f32.mrf.mxu2 }
 0x1b9   : > { %v638_v23 = vadd.f32 %v610_v21, %v501_v20 }
 0x1ba   : > { %v597_v26 = vpop.f32.mrf.mxu1 }
 0x1bb   : > { %654 = vst [vmem:[#allocation2 + $0x40] sm:$0xff] %v638_v23  ;;  %v633_v28 = vadd.f32 %v597_v26, %v496_v22 }
 0x1bd   : > { %649 = vst [vmem:[#allocation2 + $0x18] sm:$0xff] %v633_v28 }
 0x1c0   : > { %v612_v30 = vpop.f32.mrf.mxu2 }
 0x1c1   : > { %v639_v32 = vadd.f32 %v612_v30, %v502_v29 }
 0x1c2   : > { %v600_v33 = vpop.f32.mrf.mxu1 }
 0x1c3   : > { %655 = vst [vmem:[#allocation2 + $0x20] sm:$0xff] %v639_v32  ;;  %v634_v34 = vadd.f32 %v600_v33, %v497_v31 }
 0x1c5   : > { %650 = vst [vmem:[#allocation2 + $0x50] sm:$0xff] %v634_v34 }
 0x1c8   : > { %v615_v36 = vpop.f32.mrf.mxu2 }
 0x1c9   : > { %v640_v38 = vadd.f32 %v615_v36, %v503_v35 }
 0x1ca   : > { %v602_v39 = vpop.f32.mrf.mxu1 }
 0x1cb   : > { %656 = vst [vmem:[#allocation2 + $0x10] sm:$0xff] %v640_v38  ;;  %v635_v40 = vadd.f32 %v602_v39, %v498_v37 }
 0x1cd   : > { %651 = vst [vmem:[#allocation2 + $0x68] sm:$0xff] %v635_v40 }
 0x1d0   : > { %v617_v42 = vpop.f32.mrf.mxu2 }
 0x1d1   : > { %v641_v43 = vadd.f32 %v617_v42, %v504_v41 }
 0x1d3   : > { %657 = vst [vmem:[#allocation2 + $0x38] sm:$0xff] %v641_v43 }
 0x1d8   : > { %v620_v45 = vpop.f32.mrf.mxu2 }
 0x1d9   : > { %v642_v46 = vadd.f32 %v620_v45, %v505_v44 }
 0x1db   : > { %658 = vst [vmem:[#allocation2 + $0x60] sm:$0xff] %v642_v46 }
 0x1df   : > { %665 = sbr.rel (%p901_p13) target bundleno = 500 (0x1f4), region = 85 }
 0x1e0   : > { %v622_v48 = vpop.f32.mrf.mxu2 }
 0x1e1   : > { %v643_v49 = vadd.f32 %v622_v48, %v506_v47 }
 0x1e3   : > { %659 = vst [vmem:[#allocation2 + $0x70] sm:$0xff] %v643_v49 }
 0x1e4   : > { %v666_v50 = vld [vmem:[#allocation2 + $0x30] sm:$0xff]  ;;  %v667_v51 = vld [vmem:[#allocation2] sm:$0xff]  ;;  %v668_v53 = vld [vmem:[#allocation2 + $0x58] sm:$0xff] }
 0x1e5   : > { %v1034_v52 = vld [vmem:[%s1292_s3] ss:$0 sm:$0xff]  ;;  %v669_v54 = vld [vmem:[#allocation2 + $0x18] sm:$0xff]  ;;  %v670_v55 = vld [vmem:[#allocation2 + $0x50] sm:$0xff] }
 0x1e6   : > { %v671_v56 = vld [vmem:[#allocation2 + $0x68] sm:$0xff]  ;;  %v686_v58 = vadd.f32 %v1034_v52, %v666_v50  ;;  %v687_v59 = vadd.f32 %v1034_v52, %v667_v51  ;;  %v688_v60 = vadd.f32 %v1034_v52, %v668_v53  ;;  %v689_v61 = vadd.f32 %v1034_v52, %v669_v54  ;;  %v674_v3 = vld [vmem:[#allocation2 + $0x40] sm:$0xff]  ;;  %v676_v9 = vld [vmem:[#allocation2 + $0x10] sm:$0xff] }
 0x1e7   : > { %v672_v57 = vld [vmem:[#allocation2 + $0x8] sm:$0xff]  ;;  %v690_v63 = vadd.f32 %v1034_v52, %v670_v55  ;;  %v691_v0 = vadd.f32 %v1034_v52, %v671_v56  ;;  %v675_v4 = vld [vmem:[#allocation2 + $0x20] sm:$0xff]  ;;  %v677_v10 = vld [vmem:[#allocation2 + $0x38] sm:$0xff]  ;;  %v694_v19 = vadd.f32 %v1034_v52, %v674_v3  ;;  %v696_v25 = vadd.f32 %v1034_v52, %v676_v9 }
 0x1e8   : > { %v673_v62 = vld [vmem:[#allocation2 + $0x48] sm:$0xff]  ;;  %v692_v1 = vadd.f32 %v1034_v52, %v672_v57  ;;  %v702_v5 = vmax.f32 %v686_v58, 0.0  ;;  %v703_v6 = vmax.f32 %v687_v59, 0.0  ;;  %v704_v7 = vmax.f32 %v688_v60, 0.0  ;;  %v678_v15 = vld [vmem:[#allocation2 + $0x60] sm:$0xff]  ;;  %v680_v21 = vld [vmem:[#allocation2 + $0x78] sm:$0xff] }
 0x1e9   : > { %v693_v2 = vadd.f32 %v1034_v52, %v673_v62  ;;  %v705_v8 = vmax.f32 %v689_v61, 0.0  ;;  %v706_v11 = vmax.f32 %v690_v63, 0.0  ;;  %v707_v12 = vmax.f32 %v691_v0, 0.0  ;;  %v681_v22 = vld [vmem:[#allocation2 + $0x28] sm:$0xff] }
 0x1ea   : > { %v708_v13 = vmax.f32 %v692_v1, 0.0  ;;  %v679_v16 = vld [vmem:[#allocation2 + $0x70] sm:$0xff]  ;;  %v916_v17 = vpack.c.bf16 %v703_v6, %v702_v5  ;;  %v695_v20 = vadd.f32 %v1034_v52, %v675_v4  ;;  %v697_v26 = vadd.f32 %v1034_v52, %v677_v10 }
 0x1eb   : > { %v709_v14 = vmax.f32 %v693_v2, 0.0  ;;  %v921_v18 = vpack.c.bf16 %v705_v8, %v704_v7  ;;  %v926_v23 = vpack.c.bf16 %v707_v12, %v706_v11  ;;  %v710_v27 = vmax.f32 %v694_v19, 0.0 }
 0x1ec   : > { %917 = vst [vmem:[%s1208_s7] sm:$0xff] %v916_v17   ;;  %v711_v28 = vmax.f32 %v695_v20, 0.0  ;;  %v698_v29 = vadd.f32 %v1034_v52, %v678_v15  ;;  %v699_v30 = vadd.f32 %v1034_v52, %v679_v16  ;;  %v712_v31 = vmax.f32 %v696_v25, 0.0 }
 0x1ed   : > { %v931_v24 = vpack.c.bf16 %v709_v14, %v708_v13  ;;  %953 = vst [vmem:[%s1208_s7 + $0x8] sm:$0xff] %v921_v18   ;;  %v713_v32 = vmax.f32 %v697_v26, 0.0  ;;  %v700_v33 = vadd.f32 %v1034_v52, %v680_v21  ;;  %v701_v34 = vadd.f32 %v1034_v52, %v681_v22 }
 0x1ee   : > { %954 = vst [vmem:[%s1208_s7 + $0x10] sm:$0xff] %v926_v23   ;;  %v936_v35 = vpack.c.bf16 %v711_v28, %v710_v27  ;;  %v714_v36 = vmax.f32 %v698_v29, 0.0  ;;  %v715_v37 = vmax.f32 %v699_v30, 0.0 }
 0x1ef   : > { %955 = vst [vmem:[%s1208_s7 + $0x18] sm:$0xff] %v931_v24   ;;  %v941_v38 = vpack.c.bf16 %v713_v32, %v712_v31  ;;  %v716_v39 = vmax.f32 %v700_v33, 0.0  ;;  %v717_v40 = vmax.f32 %v701_v34, 0.0 }
 0x1f0   : > { %956 = vst [vmem:[%s1208_s7 + $0x20] sm:$0xff] %v936_v35   ;;  %v946_v41 = vpack.c.bf16 %v715_v37, %v714_v36 }
 0x1f1   : > { %957 = vst [vmem:[%s1208_s7 + $0x28] sm:$0xff] %v941_v38   ;;  %v951_v42 = vpack.c.bf16 %v717_v40, %v716_v39 }
 0x1f2   : > { %958 = vst [vmem:[%s1208_s7 + $0x30] sm:$0xff] %v946_v41  }
 0x1f3   : > { %959 = vst [vmem:[%s1208_s7 + $0x38] sm:$0xff] %v951_v42  }
 0x1f4 PF: > { %s14_s21 = sadd.s32 1, %s1089_s21   ;;  %s1294_s15 = smov %s1069_s16 }
 0x1f5   : > { %p11_p0 = scmp.ge.s32.totalorder %s14_s21, 6   ;;  %s1295_s16 = smov %s1168_s28 }
 0x1f6   : > { %s1296_s17 = smov %s1081_s19  ;;  %s1297_s18 = smov %s1085_s20 }
 0x1f7   : > { %s1298_s19 = smov %s1301_s22  ;;  %s1299_s20 = smov %s1305_s23 }
 0x1f8   :  { %13 = sbr.rel (!%p11_p0) target bundleno = 4 (0x4), region = 123 }

// kernel: gcn_forward.7
= control target key start
LH: loop header
LB: loop body
LE: loop exit
PB: predicated region body
PF: predicated region fallthrough
CT: control target
= control target key end

     0   :  { %s4276_s0 = inlined_call_operand.vmem [shape: f32[256,128], index: 0, kind: input, shape index: {}]   ;;  %s4277_s1 = inlined_call_operand.vmem [shape: f32[2,256], index: 1, kind: input, shape index: {}]   ;;  %s4278_s2 = inlined_call_operand.vmem [shape: f32[256,2], index: 2, kind: input, shape index: {}]   ;;  %s4279_s3 = inlined_call_operand.vmem [shape: f32[1,128], index: 3, kind: input, shape index: {}]   ;;  %s4280_s4 = inlined_call_operand.<no memory space> [shape: f32[1,1], index: 4, kind: input, shape index: {}]   ;;  %s4281_s5 = inlined_call_operand.hbm [shape: f32[2,128], index: 5, kind: output, shape index: {}]  }
   0x1   :  { %v10_v0 = vstv %s4280_s4 }
   0x2   :  { %11 = vst [vmem:[#allocation2] sm:$0x1] %v10_v0 }
   0x3   :  { %v27_v1 = vld [vmem:[%s4276_s0 + $0x20] sm:$0xff]  ;;  %v25_v3 = vld [vmem:[%s4276_s0 + $0x10] sm:$0xff]  ;;  %v28_v8 = vld [vmem:[%s4276_s0 + $0x28] sm:$0xff] }
   0x4   :  { %v2185_v2 = vld [vmem:[%s4279_s3] ss:$0 sm:$0xff]  ;;  %v26_v9 = vld [vmem:[%s4276_s0 + $0x18] sm:$0xff]  ;;  %v24_v10 = vld [vmem:[%s4276_s0 + $0x8] sm:$0xff] }
   0x5   :  { %v23_v4 = vld [vmem:[%s4276_s0] sm:$0xff]  ;;  %v127_v5 = vmul.f32 %v2185_v2, %v27_v1  ;;  %v125_v6 = vmul.f32 %v2185_v2, %v25_v3 }
   0x6   :  { %v123_v7 = vmul.f32 %v2185_v2, %v23_v4 }
   0x7   :  { %163 = vadd.xlane.f32.xlu2 %v127_v5  ;;  %159 = vadd.xlane.f32.xlu1 %v125_v6 }
   0x8   :  { %155 = vadd.xlane.f32.xlu0 %v123_v7 }
   0x9   :  { %12 = vsyncpa [#allocation4], 0  ;;  %v128_v11 = vmul.f32 %v2185_v2, %v28_v8  ;;  %v126_v12 = vmul.f32 %v2185_v2, %v26_v9  ;;  %v124_v13 = vmul.f32 %v2185_v2, %v24_v10  ;;  %v31_v14 = vld [vmem:[%s4276_s0 + $0x40] sm:$0xff]  ;;  %v30_v15 = vld [vmem:[%s4276_s0 + $0x38] sm:$0xff]  ;;  %v2144_v3 = vmov 0   ;;  %s1938_s26 = sshll.u32 %s4281_s5, 4  ;;  %s1939_s26 = int_to_ptr.hbm [resolvable:$true] %s1938_s26 }
   0xa   :  { %v29_v16 = vld [vmem:[%s4276_s0 + $0x30] sm:$0xff]  ;;  %v131_v17 = vmul.f32 %v2185_v2, %v31_v14  ;;  %v130_v18 = vmul.f32 %v2185_v2, %v30_v15  ;;  %v34_v20 = vld [vmem:[%s4276_s0 + $0x58] sm:$0xff]  ;;  %v32_v22 = vld [vmem:[%s4276_s0 + $0x48] sm:$0xff]  ;;  %1951 = vset.pattern.permute.xlu1 %v2144_v3  ;;  %1949 = vset.pattern.permute.xlu2 %v2144_v3  ;;  %vm447_vm2 = vcmask 15360  }
   0xb   :  { %v129_v19 = vmul.f32 %v2185_v2, %v29_v16  ;;  %v33_v21 = vld [vmem:[%s4276_s0 + $0x50] sm:$0xff]  ;;  %v134_v23 = vmul.f32 %v2185_v2, %v34_v20  ;;  %v132_v25 = vmul.f32 %v2185_v2, %v32_v22  ;;  %v36_v27 = vld [vmem:[%s4276_s0 + $0x68] sm:$0xff]  ;;  %v35_v28 = vld [vmem:[%s4276_s0 + $0x60] sm:$0xff]  ;;  %1950 = vset.pattern.permute.xlu0 %v2144_v3 }
   0xc   :  { %v133_v24 = vmul.f32 %v2185_v2, %v33_v21  ;;  %v37_v26 = vld [vmem:[%s4276_s0 + $0x70] sm:$0xff]  ;;  %v136_v30 = vmul.f32 %v2185_v2, %v36_v27  ;;  %v135_v31 = vmul.f32 %v2185_v2, %v35_v28  ;;  %v40_v32 = vld [vmem:[%s4276_s0 + $0x88] sm:$0xff]  ;;  %v39_v33 = vld [vmem:[%s4276_s0 + $0x80] sm:$0xff] }
   0xd   :  { %v137_v29 = vmul.f32 %v2185_v2, %v37_v26  ;;  %v38_v34 = vld [vmem:[%s4276_s0 + $0x78] sm:$0xff]  ;;  %v140_v35 = vmul.f32 %v2185_v2, %v40_v32  ;;  %v139_v36 = vmul.f32 %v2185_v2, %v39_v33  ;;  %v43_v38 = vld [vmem:[%s4276_s0 + $0xa0] sm:$0xff]  ;;  %v41_v40 = vld [vmem:[%s4276_s0 + $0x90] sm:$0xff] }
   0xe   :  { %v138_v37 = vmul.f32 %v2185_v2, %v38_v34  ;;  %v42_v39 = vld [vmem:[%s4276_s0 + $0x98] sm:$0xff]  ;;  %v143_v41 = vmul.f32 %v2185_v2, %v43_v38  ;;  %v141_v43 = vmul.f32 %v2185_v2, %v41_v40  ;;  %v45_v45 = vld [vmem:[%s4276_s0 + $0xb0] sm:$0xff]  ;;  %v44_v46 = vld [vmem:[%s4276_s0 + $0xa8] sm:$0xff] }
   0xf   :  { %165 = vadd.xlane.f32.xlu2 %v128_v11  ;;  %161 = vadd.xlane.f32.xlu1 %v126_v12  ;;  %v142_v42 = vmul.f32 %v2185_v2, %v42_v39  ;;  %v46_v44 = vld [vmem:[%s4276_s0 + $0xb8] sm:$0xff]  ;;  %v145_v48 = vmul.f32 %v2185_v2, %v45_v45  ;;  %v144_v49 = vmul.f32 %v2185_v2, %v44_v46  ;;  %v49_v50 = vld [vmem:[%s4276_s0 + $0xd0] sm:$0xff]  ;;  %v48_v51 = vld [vmem:[%s4276_s0 + $0xc8] sm:$0xff] }
  0x10   :  { %157 = vadd.xlane.f32.xlu0 %v124_v13  ;;  %v146_v47 = vmul.f32 %v2185_v2, %v46_v44  ;;  %v47_v52 = vld [vmem:[%s4276_s0 + $0xc0] sm:$0xff]  ;;  %v149_v53 = vmul.f32 %v2185_v2, %v49_v50  ;;  %v148_v54 = vmul.f32 %v2185_v2, %v48_v51  ;;  %v52_v56 = vld [vmem:[%s4276_s0 + $0xe8] sm:$0xff]  ;;  %v50_v58 = vld [vmem:[%s4276_s0 + $0xd8] sm:$0xff] }
  0x11   :  { %v147_v55 = vmul.f32 %v2185_v2, %v47_v52  ;;  %v51_v57 = vld [vmem:[%s4276_s0 + $0xe0] sm:$0xff]  ;;  %v152_v59 = vmul.f32 %v2185_v2, %v52_v56  ;;  %v150_v61 = vmul.f32 %v2185_v2, %v50_v58  ;;  %v54_v62 = vld [vmem:[%s4276_s0 + $0xf8] sm:$0xff]  ;;  %v53_v63 = vld [vmem:[%s4276_s0 + $0xf0] sm:$0xff] }
  0x12   :  { %v151_v60 = vmul.f32 %v2185_v2, %v51_v57  ;;  %v154_v0 = vmul.f32 %v2185_v2, %v54_v62  ;;  %v153_v1 = vmul.f32 %v2185_v2, %v53_v63  ;;  %v2312_v4 = vld [vmem:[#allocation2] ss:$0 sm:$0xff] }
  0x17   :  { %171 = vadd.xlane.f32.xlu2 %v131_v17  ;;  %169 = vadd.xlane.f32.xlu1 %v130_v18 }
  0x18   :  { %167 = vadd.xlane.f32.xlu0 %v129_v19 }
  0x1f   :  { %177 = vadd.xlane.f32.xlu2 %v134_v23  ;;  %175 = vadd.xlane.f32.xlu1 %v133_v24 }
  0x20   :  { %173 = vadd.xlane.f32.xlu0 %v132_v25 }
  0x27   :  { %183 = vadd.xlane.f32.xlu2 %v137_v29  ;;  %181 = vadd.xlane.f32.xlu1 %v136_v30 }
  0x28   :  { %179 = vadd.xlane.f32.xlu0 %v135_v31 }
  0x2f   :  { %189 = vadd.xlane.f32.xlu2 %v140_v35  ;;  %187 = vadd.xlane.f32.xlu1 %v139_v36 }
  0x30   :  { %185 = vadd.xlane.f32.xlu0 %v138_v37 }
  0x37   :  { %195 = vadd.xlane.f32.xlu2 %v143_v41  ;;  %193 = vadd.xlane.f32.xlu1 %v142_v42 }
  0x38   :  { %191 = vadd.xlane.f32.xlu0 %v141_v43 }
  0x3f   :  { %201 = vadd.xlane.f32.xlu2 %v146_v47  ;;  %199 = vadd.xlane.f32.xlu1 %v145_v48 }
  0x40   :  { %197 = vadd.xlane.f32.xlu0 %v144_v49 }
  0x47   :  { %207 = vadd.xlane.f32.xlu2 %v149_v53  ;;  %205 = vadd.xlane.f32.xlu1 %v148_v54 }
  0x48   :  { %203 = vadd.xlane.f32.xlu0 %v147_v55 }
  0x4f   :  { %213 = vadd.xlane.f32.xlu2 %v152_v59  ;;  %211 = vadd.xlane.f32.xlu1 %v151_v60 }
  0x50   :  { %209 = vadd.xlane.f32.xlu0 %v150_v61 }
  0x57   :  { %217 = vadd.xlane.f32.xlu1 %v154_v0 }
  0x58   :  { %215 = vadd.xlane.f32.xlu0 %v153_v1 }
  0x7a   :  { %v164_v5 = vpop.xlane.xlu2 %163  ;;  %v160_v6 = vpop.xlane.xlu1 %159 }
  0x7b   :  { %v2315_v7 = vadd.f32 %v2312_v4, %v160_v6  ;;  %v156_v8 = vpop.xlane.xlu0 %155  ;;  %v2341_v20 = vadd.f32 %v2312_v4, %v164_v5 }
  0x7c   :  { %v2318_v9 = vadd.f32 %v2312_v4, %v156_v8 }
  0x7d   :  { %267 = vperm.xlu1 %1951, %v2315_v7  }
  0x7e   :  { %257 = vperm.xlu2 %1949, %v2318_v9  }
  0x82   :  { %v166_v2 = vpop.xlane.xlu2 %165  ;;  %v162_v10 = vpop.xlane.xlu1 %161 }
  0x83   :  { %v2323_v11 = vadd.f32 %v2312_v4, %v166_v2  ;;  %v2326_v12 = vadd.f32 %v2312_v4, %v162_v10  ;;  %v158_v13 = vpop.xlane.xlu0 %157 }
  0x84   :  { %v2329_v14 = vadd.f32 %v2312_v4, %v158_v13 }
  0x85   :  { %282 = vperm.xlu1 %1951, %v2323_v11  }
  0x86   :  { %272 = vperm.xlu2 %1949, %v2326_v12   ;;  %262 = vperm.xlu0 %1950, %v2329_v14  }
  0x8a   :  { %v172_v15 = vpop.xlane.xlu2 %171  ;;  %v170_v16 = vpop.xlane.xlu1 %169 }
  0x8b   :  { %v2335_v17 = vadd.f32 %v2312_v4, %v172_v15  ;;  %v2338_v18 = vadd.f32 %v2312_v4, %v170_v16  ;;  %v168_v19 = vpop.xlane.xlu0 %167 }
  0x8c   :  { %v2347_v23 = vadd.f32 %v2312_v4, %v168_v19 }
  0x8d   :  { %4346 = vst [vmem:[#allocation6_spill] sm:$0xff] %v2338_v18  ;;  %292 = vperm.xlu1 %1951, %v2338_v18  }
  0x8e   :  { %277 = vperm.xlu2 %1949, %v2341_v20   ;;  %297 = vperm.xlu0 %1950, %v2335_v17   ;;  %4347 = vst [vmem:[#allocation7_spill] sm:$0xff] %v2347_v23 }
  0x92   :  { %v178_v21 = vpop.xlane.xlu2 %177  ;;  %v176_v22 = vpop.xlane.xlu1 %175 }
  0x93   :  { %v2350_v24 = vadd.f32 %v2312_v4, %v178_v21  ;;  %v2353_v25 = vadd.f32 %v2312_v4, %v176_v22  ;;  %v174_v26 = vpop.xlane.xlu0 %173 }
  0x94   :  { %v2359_v29 = vadd.f32 %v2312_v4, %v174_v26 }
  0x95   :  { %4348 = vst [vmem:[#allocation8_spill] sm:$0xff] %v2350_v24  ;;  %307 = vperm.xlu1 %1951, %v2353_v25  }
  0x96   :  { %4349 = vst [vmem:[#allocation9_spill] sm:$0xff] %v2353_v25  ;;  %312 = vperm.xlu0 %1950, %v2350_v24   ;;  %287 = vperm.xlu2 %1949, %v2347_v23  }
  0x97   :  { %4350 = vst [vmem:[#allocation10_spill] sm:$0xff] %v2359_v29 }
  0x9a   :  { %v184_v27 = vpop.xlane.xlu2 %183  ;;  %v182_v28 = vpop.xlane.xlu1 %181 }
  0x9b   :  { %v2362_v30 = vadd.f32 %v2312_v4, %v184_v27  ;;  %v2365_v31 = vadd.f32 %v2312_v4, %v182_v28  ;;  %v180_v32 = vpop.xlane.xlu0 %179 }
  0x9c   :  { %v2371_v35 = vadd.f32 %v2312_v4, %v180_v32 }
  0x9d   :  { %4351 = vst [vmem:[#allocation11_spill] sm:$0xff] %v2362_v30  ;;  %322 = vperm.xlu1 %1951, %v2365_v31  }
  0x9e   :  { %4352 = vst [vmem:[#allocation12_spill] sm:$0xff] %v2365_v31  ;;  %327 = vperm.xlu0 %1950, %v2362_v30   ;;  %302 = vperm.xlu2 %1949, %v2359_v29   ;;  %v2622_v31 = vld [vmem:[%s4278_s2 + $0x88] sm:$0xff]  ;;  %v2654_v30 = vld [vmem:[%s4278_s2 + $0xb0] sm:$0xff] }
  0x9f   :  { %4353 = vst [vmem:[#allocation13_spill] sm:$0xff] %v2371_v35 }
  0xa2   :  { %v190_v33 = vpop.xlane.xlu2 %189  ;;  %v188_v34 = vpop.xlane.xlu1 %187 }
  0xa3   :  { %v2374_v36 = vadd.f32 %v2312_v4, %v190_v33  ;;  %v2377_v37 = vadd.f32 %v2312_v4, %v188_v34  ;;  %v186_v38 = vpop.xlane.xlu0 %185 }
  0xa4   :  { %v2383_v41 = vadd.f32 %v2312_v4, %v186_v38 }
  0xa5   :  { %4354 = vst [vmem:[#allocation14_spill] sm:$0xff] %v2374_v36  ;;  %337 = vperm.xlu1 %1951, %v2377_v37  }
  0xa6   :  { %4355 = vst [vmem:[#allocation15_spill] sm:$0xff] %v2377_v37  ;;  %342 = vperm.xlu0 %1950, %v2374_v36   ;;  %317 = vperm.xlu2 %1949, %v2371_v35   ;;  %v2609_v37 = vld [vmem:[%s4278_s2 + $0xa8] sm:$0xff] }
  0xa7   :  { %4356 = vst [vmem:[#allocation16_spill] sm:$0xff] %v2383_v41 }
  0xaa   :  { %v196_v39 = vpop.xlane.xlu2 %195  ;;  %v194_v40 = vpop.xlane.xlu1 %193 }
  0xab   :  { %v2386_v42 = vadd.f32 %v2312_v4, %v196_v39  ;;  %v2389_v43 = vadd.f32 %v2312_v4, %v194_v40  ;;  %v192_v44 = vpop.xlane.xlu0 %191  ;;  %v2465_v40 = vld [vmem:[%s4278_s2] sm:$0xff] }
  0xac   :  { %v2395_v47 = vadd.f32 %v2312_v4, %v192_v44  ;;  %v2470_v44 = vld [vmem:[%s4278_s2 + $0x18] sm:$0xff]  ;;  %vm4325_vm0 = vcmp.gt.f32.partialorder %v2465_v40, 0.0 }
  0xad   :  { %4357 = vst [vmem:[#allocation17_spill] sm:$0xff] %v2386_v42  ;;  %352 = vperm.xlu1 %1951, %v2389_v43   ;;  %vm4314_vm1 = vcmp.gt.f32.partialorder %v2470_v44, 0.0 }
  0xae   :  { %4358 = vst [vmem:[#allocation18_spill] sm:$0xff] %v2389_v43  ;;  %357 = vperm.xlu0 %1950, %v2386_v42   ;;  %332 = vperm.xlu2 %1949, %v2383_v41   ;;  %v2604_v42 = vld [vmem:[%s4278_s2 + $0x80] sm:$0xff] }
  0xaf   :  { %4359 = vst [vmem:[#allocation19_spill] sm:$0xff] %v2395_v47 }
  0xb2   :  { %v202_v45 = vpop.xlane.xlu2 %201  ;;  %v200_v46 = vpop.xlane.xlu1 %199 }
  0xb3   :  { %v2398_v48 = vadd.f32 %v2312_v4, %v202_v45  ;;  %v2401_v49 = vadd.f32 %v2312_v4, %v200_v46  ;;  %v198_v50 = vpop.xlane.xlu0 %197  ;;  %v2477_v46 = vld [vmem:[%s4278_s2 + $0x20] sm:$0xff] }
  0xb4   :  { %v2407_v53 = vadd.f32 %v2312_v4, %v198_v50  ;;  %v2482_v50 = vld [vmem:[%s4278_s2 + $0x28] sm:$0xff]  ;;  %vm4306_vm3 = vcmp.gt.f32.partialorder %v2477_v46, 0.0 }
  0xb5   :  { %4360 = vst [vmem:[#allocation20_spill] sm:$0xff] %v2398_v48  ;;  %367 = vperm.xlu1 %1951, %v2401_v49   ;;  %vm4326_vm4 = vcmp.gt.f32.partialorder %v2482_v50, 0.0 }
  0xb6   :  { %4361 = vst [vmem:[#allocation21_spill] sm:$0xff] %v2401_v49  ;;  %372 = vperm.xlu0 %1950, %v2398_v48   ;;  %347 = vperm.xlu2 %1949, %v2395_v47   ;;  %v2559_v49 = vld [vmem:[%s4278_s2 + $0x78] sm:$0xff] }
  0xb7   :  { %4362 = vst [vmem:[#allocation22_spill] sm:$0xff] %v2407_v53  ;;  %vm4316_vm14 = vcmp.gt.f32.partialorder %v2559_v49, 0.0 }
  0xba   :  { %v208_v51 = vpop.xlane.xlu2 %207  ;;  %v206_v52 = vpop.xlane.xlu1 %205 }
  0xbb   :  { %v2410_v54 = vadd.f32 %v2312_v4, %v208_v51  ;;  %v2413_v55 = vadd.f32 %v2312_v4, %v206_v52  ;;  %v204_v56 = vpop.xlane.xlu0 %203  ;;  %v2487_v51 = vld [vmem:[%s4278_s2 + $0x8] sm:$0xff]  ;;  %v2494_v52 = vld [vmem:[%s4278_s2 + $0x10] sm:$0xff] }
  0xbc   :  { %v2419_v59 = vadd.f32 %v2312_v4, %v204_v56  ;;  %vm4342_vm5 = vcmp.gt.f32.partialorder %v2487_v51, 0.0  ;;  %vm4324_vm6 = vcmp.gt.f32.partialorder %v2494_v52, 0.0 }
  0xbd   :  { %4363 = vst [vmem:[#allocation23_spill] sm:$0xff] %v2410_v54  ;;  %382 = vperm.xlu1 %1951, %v2413_v55  }
  0xbe   :  { %4364 = vst [vmem:[#allocation24_spill] sm:$0xff] %v2413_v55  ;;  %387 = vperm.xlu0 %1950, %v2410_v54   ;;  %362 = vperm.xlu2 %1949, %v2407_v53  }
  0xbf   :  { %4365 = vst [vmem:[#allocation25_spill] sm:$0xff] %v2419_v59 }
  0xc2   :  { %v214_v57 = vpop.xlane.xlu2 %213  ;;  %v212_v58 = vpop.xlane.xlu1 %211 }
  0xc3   :  { %v2422_v60 = vadd.f32 %v2312_v4, %v214_v57  ;;  %v2425_v61 = vadd.f32 %v2312_v4, %v212_v58  ;;  %v210_v62 = vpop.xlane.xlu0 %209  ;;  %v2501_v57 = vld [vmem:[%s4278_s2 + $0x30] sm:$0xff]  ;;  %v2506_v58 = vld [vmem:[%s4278_s2 + $0x48] sm:$0xff] }
  0xc4   :  { %v2431_v0 = vadd.f32 %v2312_v4, %v210_v62  ;;  %v2511_v62 = vld [vmem:[%s4278_s2 + $0x40] sm:$0xff]  ;;  %vm4303_vm7 = vcmp.gt.f32.partialorder %v2501_v57, 0.0  ;;  %vm4299_vm8 = vcmp.gt.f32.partialorder %v2506_v58, 0.0 }
  0xc5   :  { %4366 = vst [vmem:[#allocation26_spill] sm:$0xff] %v2422_v60  ;;  %397 = vperm.xlu1 %1951, %v2425_v61   ;;  %vm4305_vm9 = vcmp.gt.f32.partialorder %v2511_v62, 0.0 }
  0xc6   :  { %4367 = vst [vmem:[#allocation27_spill] sm:$0xff] %v2425_v61  ;;  %402 = vperm.xlu0 %1950, %v2422_v60   ;;  %377 = vperm.xlu2 %1949, %v2419_v59   ;;  %v2530_v61 = vld [vmem:[%s4278_s2 + $0x60] sm:$0xff] }
  0xc7   :  { %4368 = vst [vmem:[#allocation28_spill] sm:$0xff] %v2431_v0  ;;  %vm4308_vm11 = vcmp.gt.f32.partialorder %v2530_v61, 0.0 }
  0xca   :  { %v218_v63 = vpop.xlane.xlu1 %217 }
  0xcb   :  { %v2434_v1 = vadd.f32 %v2312_v4, %v218_v63  ;;  %v216_v3 = vpop.xlane.xlu0 %215 }
  0xcc   :  { %v2439_v5 = vadd.f32 %v2312_v4, %v216_v3 }
  0xcd   :  { %4369 = vst [vmem:[#allocation29_spill] sm:$0xff] %v2434_v1  ;;  %412 = vperm.xlu1 %1951, %v2434_v1  }
  0xce   :  { %392 = vperm.xlu2 %1949, %v2431_v0   ;;  %4370 = vst [vmem:[#allocation30_spill] sm:$0xff] %v2439_v5 }
  0xd6   :  { %407 = vperm.xlu2 %1949, %v2439_v5   ;;  %v2525_v5 = vld [vmem:[%s4278_s2 + $0x38] sm:$0xff] }
  0xd7   :  { %vm4300_vm10 = vcmp.gt.f32.partialorder %v2525_v5, 0.0 }
  0xd8   :  { %v258_v6 = vpop.permute.xlu2 %257 }
  0xd9   :  { %v415_v3 = vsel %vm4325_vm0, %v258_v6, -1e+30  ;;  %v2539_v6 = vld [vmem:[%s4278_s2 + $0x50] sm:$0xff] }
  0xda   :  { %v448_v59 = vsel %vm447_vm2, %v415_v3, -inf  ;;  %vm4309_vm12 = vcmp.gt.f32.partialorder %v2539_v6, 0.0 }
  0xe0   :  { %v273_v8 = vpop.permute.xlu2 %272 }
  0xe1   :  { %v418_v1 = vsel %vm4314_vm1, %v273_v8, -1e+30  ;;  %v2544_v8 = vld [vmem:[%s4278_s2 + $0x58] sm:$0xff] }
  0xe2   :  { %v451_v54 = vsel %vm447_vm2, %v418_v1, -inf  ;;  %vm4302_vm13 = vcmp.gt.f32.partialorder %v2544_v8, 0.0 }
  0xe8   :  { %v278_v2 = vpop.permute.xlu2 %277 }
  0xe9   :  { %v419_v0 = vsel %vm4306_vm3, %v278_v2, -1e+30 }
  0xea   :  { %v452_v1 = vsel %vm447_vm2, %v419_v0, -inf  ;;  %v2582_v0 = vld [vmem:[%s4278_s2 + $0x68] sm:$0xff] }
  0xeb   :  { %v453_v41 = vmax.f32 %v448_v59, %v452_v1  ;;  %vm4311_vm15 = vcmp.gt.f32.partialorder %v2582_v0, 0.0  ;;  %v2635_v1 = vld [vmem:[%s4278_s2 + $0xc0] sm:$0xff] }
  0xef   :  { %v268_v10 = vpop.permute.xlu1 %267 }
  0xf0   :  { %v288_v13 = vpop.permute.xlu2 %287  ;;  %v417_v2 = vsel %vm4324_vm6, %v268_v10, -1e+30 }
  0xf7   :  { %v283_v15 = vpop.permute.xlu1 %282 }
  0xf8   :  { %v2442_v16 = vpop.permute.xlu2 %302  ;;  %v263_v19 = vpop.permute.xlu0 %262  ;;  %v420_v60 = vsel %vm4326_vm4, %v283_v15, -1e+30  ;;  %v421_v15 = vsel %vm4303_vm7, %v288_v13, -1e+30  ;;  %vm108_vm7 = vcmp.gt.f32.partialorder %v2609_v37, 0.0 }
  0xf9   :  { %v416_v55 = vsel %vm4342_vm5, %v263_v19, -1e+30  ;;  %v454_v19 = vsel %vm447_vm2, %v420_v60, -inf  ;;  %v2592_v60 = vld [vmem:[%s4278_s2 + $0x70] sm:$0xff]  ;;  %v424_v47 = vsel %vm4299_vm8, %v2442_v16, -1e+30 }
  0xfa   :  { %v449_v3 = vsel %vm447_vm2, %v416_v55, -inf  ;;  %v2587_v55 = vld [vmem:[%s4278_s2 + $0x90] sm:$0xff] }
  0xfb   :  { %v455_v36 = vmax.f32 %v449_v3, %v454_v19  ;;  %vm4320_vm8 = vcmp.gt.f32.partialorder %v2587_v55, 0.0  ;;  %v2640_v19 = vld [vmem:[%s4278_s2 + $0xa0] sm:$0xff] }
  0xff   :  { %v293_v21 = vpop.permute.xlu1 %292 }
 0x100   :  { %v2444_v22 = vpop.permute.xlu2 %317  ;;  %v298_v26 = vpop.permute.xlu0 %297  ;;  %v422_v10 = vsel %vm4300_vm10, %v293_v21, -1e+30  ;;  %v450_v21 = vsel %vm447_vm2, %v417_v2, -inf  ;;  %vm4312_vm10 = vcmp.gt.f32.partialorder %v2592_v60, 0.0 }
 0x101   :  { %v423_v53 = vsel %vm4305_vm9, %v298_v26, -1e+30  ;;  %v456_v26 = vsel %vm447_vm2, %v421_v15, -inf  ;;  %v458_v16 = vsel %vm447_vm2, %v422_v10, -inf  ;;  %v427_v3 = vsel %vm4308_vm11, %v2444_v22, -1e+30 }
 0x102   :  { %v460_v2 = vsel %vm447_vm2, %v423_v53, -inf  ;;  %v2627_v53 = vld [vmem:[%s4278_s2 + $0x98] sm:$0xff]  ;;  %v457_v59 = vmax.f32 %v450_v21, %v456_v26  ;;  %v459_v26 = vmax.f32 %v451_v54, %v458_v16  ;;  %vm104_vm9 = vcmp.gt.f32.partialorder %v2622_v31, 0.0 }
 0x103   :  { %v461_v10 = vmax.f32 %v453_v41, %v460_v2  ;;  %vm4319_vm3 = vcmp.gt.f32.partialorder %v2627_v53, 0.0  ;;  %v2659_v41 = vld [vmem:[%s4278_s2 + $0xd8] sm:$0xff]  ;;  %vm111_vm11 = vcmp.gt.f32.partialorder %v2635_v1, 0.0  ;;  %v468_v2 = vsel %vm447_vm2, %v427_v3, -inf  ;;  %v2690_v3 = vld [vmem:[%s4278_s2 + $0xd0] sm:$0xff] }
 0x104   :  { %v2664_v22 = vld [vmem:[%s4278_s2 + $0xb8] sm:$0xff] }
 0x105   :  { %v469_v25 = vmax.f32 %v461_v10, %v468_v2  ;;  %vm110_vm1 = vcmp.gt.f32.partialorder %v2664_v22, 0.0 }
 0x107   :  { %v2446_v27 = vpop.permute.xlu1 %307 }
 0x108   :  { %v2448_v28 = vpop.permute.xlu0 %312  ;;  %v2450_v4 = vpop.permute.xlu2 %332 }
 0x109   :  { %v426_v15 = vsel %vm4302_vm13, %v2448_v28, -1e+30  ;;  %v462_v28 = vsel %vm447_vm2, %v424_v47, -inf  ;;  %vm4317_vm13 = vcmp.gt.f32.partialorder %v2604_v42, 0.0  ;;  %v425_v47 = vsel %vm4309_vm12, %v2446_v27, -1e+30 }
 0x10a   :  { %v466_v21 = vsel %vm447_vm2, %v426_v15, -inf  ;;  %v463_v35 = vmax.f32 %v455_v36, %v462_v28  ;;  %vm107_vm12 = vcmp.gt.f32.partialorder %v2640_v19, 0.0  ;;  %v464_v15 = vsel %vm447_vm2, %v425_v47, -inf }
 0x10b   :  { %v430_v16 = vsel %vm4316_vm14, %v2450_v4, -1e+30  ;;  %v467_v28 = vmax.f32 %v459_v26, %v466_v21  ;;  %v465_v26 = vmax.f32 %v457_v59, %v464_v15 }
 0x10c   :  { %v474_v2 = vsel %vm447_vm2, %v430_v16, -inf }
 0x10f   :  { %v2452_v32 = vpop.permute.xlu1 %322 }
 0x110   :  { %v2454_v33 = vpop.permute.xlu0 %327  ;;  %v2456_v34 = vpop.permute.xlu2 %347  ;;  %v428_v36 = vsel %vm4311_vm15, %v2452_v32, -1e+30  ;;  %v2682_v32 = vld [vmem:[%s4278_s2 + $0xc8] sm:$0xff]  ;;  %vm109_vm15 = vcmp.gt.f32.partialorder %v2654_v30, 0.0 }
 0x111   :  { %v429_v54 = vsel %vm4312_vm10, %v2454_v33, -1e+30  ;;  %vm114_vm10 = vcmp.gt.f32.partialorder %v2659_v41, 0.0  ;;  %v470_v4 = vsel %vm447_vm2, %v428_v36, -inf  ;;  %v433_v24 = vsel %vm4320_vm8, %v2456_v34, -1e+30 }
 0x112   :  { %v472_v47 = vsel %vm447_vm2, %v429_v54, -inf  ;;  %vm4321_vm14 = vcmp.gt.f32.partialorder %v2682_v32, 0.0  ;;  %v2708_v36 = vld [vmem:[%s4278_s2 + $0xe0] sm:$0xff]  ;;  %v475_v54 = vmax.f32 %v467_v28, %v474_v2  ;;  %v2720_v34 = vld [vmem:[%s4278_s2 + $0xe8] sm:$0xff]  ;;  %v471_v59 = vmax.f32 %v463_v35, %v470_v4 }
 0x113   :  { %v473_v15 = vmax.f32 %v465_v26, %v472_v47  ;;  %vm116_vm8 = vcmp.gt.f32.partialorder %v2720_v34, 0.0 }
 0x117   :  { %v2458_v38 = vpop.permute.xlu1 %337 }
 0x118   :  { %v2460_v39 = vpop.permute.xlu0 %342  ;;  %v2472_v45 = vpop.permute.xlu2 %362  ;;  %v431_v10 = vsel %vm4317_vm13, %v2458_v38, -1e+30  ;;  %vm113_vm13 = vcmp.gt.f32.partialorder %v2690_v3, 0.0 }
 0x119   :  { %v432_v21 = vsel %vm104_vm9, %v2460_v39, -1e+30  ;;  %v476_v16 = vsel %vm447_vm2, %v431_v10, -inf  ;;  %v436_v35 = vsel %vm108_vm7, %v2472_v45, -1e+30 }
 0x11a   :  { %v478_v18 = vsel %vm447_vm2, %v432_v21, -inf }
 0x11b   :  { %v479_v21 = vmax.f32 %v471_v59, %v478_v18 }
 0x11f   :  { %v2496_v56 = vpop.permute.xlu1 %352 }
 0x120   :  { %v2513_v63 = vpop.permute.xlu0 %357  ;;  %v2572_v48 = vpop.permute.xlu2 %377  ;;  %v434_v38 = vsel %vm4319_vm3, %v2496_v56, -1e+30  ;;  %v480_v56 = vsel %vm447_vm2, %v433_v24, -inf  ;;  %vm4322_vm3 = vcmp.gt.f32.partialorder %v2708_v36, 0.0  ;;  %v477_v24 = vmax.f32 %v469_v25, %v476_v16 }
 0x121   :  { %v435_v39 = vsel %vm107_vm12, %v2513_v63, -1e+30  ;;  %v482_v4 = vsel %vm447_vm2, %v434_v38, -inf  ;;  %v439_v2 = vsel %vm111_vm11, %v2572_v48, -1e+30  ;;  %v481_v38 = vmax.f32 %v473_v15, %v480_v56 }
 0x122   :  { %v484_v47 = vsel %vm447_vm2, %v435_v39, -inf  ;;  %v483_v39 = vmax.f32 %v475_v54, %v482_v4  ;;  %v486_v48 = vsel %vm447_vm2, %v436_v35, -inf }
 0x127   :  { %v2574_v43 = vpop.permute.xlu1 %367 }
 0x128   :  { %v2594_v13 = vpop.permute.xlu0 %372  ;;  %v393_v29 = vpop.permute.xlu2 %392  ;;  %v437_v28 = vsel %vm109_vm15, %v2574_v43, -1e+30 }
 0x129   :  { %v438_v63 = vsel %vm110_vm1, %v2594_v13, -1e+30  ;;  %v2743_v13 = vld [vmem:[%s4278_s2 + $0xf0] sm:$0xff]  ;;  %v488_v25 = vsel %vm447_vm2, %v437_v28, -inf }
 0x12a   :  { %v490_v18 = vsel %vm447_vm2, %v438_v63, -inf  ;;  %v489_v28 = vmax.f32 %v481_v38, %v488_v25  ;;  %v442_v63 = vsel %vm114_vm10, %v393_v29, -1e+30 }
 0x12b   :  { %v491_v4 = vmax.f32 %v483_v39, %v490_v18  ;;  %v498_v38 = vsel %vm447_vm2, %v442_v63, -inf }
 0x12f   :  { %v383_v27 = vpop.permute.xlu1 %382 }
 0x130   :  { %v388_v33 = vpop.permute.xlu0 %387  ;;  %v440_v43 = vsel %vm4321_vm14, %v383_v27, -1e+30  ;;  %v485_v27 = vmax.f32 %v477_v24, %v484_v47  ;;  %vm117_vm14 = vcmp.gt.f32.partialorder %v2743_v13, 0.0  ;;  %v408_v56 = vpop.permute.xlu2 %407  ;;  %v487_v47 = vmax.f32 %v479_v21, %v486_v48 }
 0x131   :  { %v441_v45 = vsel %vm113_vm13, %v388_v33, -1e+30  ;;  %v2759_v33 = vld [vmem:[%s4278_s2 + $0xf8] sm:$0xff]  ;;  %v494_v15 = vsel %vm447_vm2, %v440_v43, -inf  ;;  %v445_v43 = vsel %vm117_vm14, %v408_v56, -1e+30 }
 0x132   :  { %v496_v54 = vsel %vm447_vm2, %v441_v45, -inf  ;;  %v495_v35 = vmax.f32 %v487_v47, %v494_v15  ;;  %v504_v39 = vsel %vm447_vm2, %v445_v43, -inf }
 0x133   :  { %v497_v23 = vmax.f32 %v489_v28, %v496_v54 }
 0x137   :  { %v398_v10 = vpop.permute.xlu1 %397 }
 0x138   :  { %v403_v26 = vpop.permute.xlu0 %402  ;;  %v443_v59 = vsel %vm4322_vm3, %v398_v10, -1e+30  ;;  %v492_v10 = vsel %vm447_vm2, %v439_v2, -inf  ;;  %vm118_vm3 = vcmp.gt.f32.partialorder %v2759_v33, 0.0  ;;  %v499_v2 = vmax.f32 %v491_v4, %v498_v38 }
 0x139   :  { %v444_v16 = vsel %vm116_vm8, %v403_v26, -1e+30  ;;  %v500_v24 = vsel %vm447_vm2, %v443_v59, -inf  ;;  %v493_v45 = vmax.f32 %v485_v27, %v492_v10 }
 0x13a   :  { %v502_v26 = vsel %vm447_vm2, %v444_v16, -inf  ;;  %v505_v16 = vmax.f32 %v497_v23, %v504_v39 }
 0x13b   :  { %v501_v29 = vmax.f32 %v493_v45, %v500_v24  ;;  %v503_v18 = vmax.f32 %v495_v35, %v502_v26 }
 0x13d   :  { %v508_v15 = vmax.f32 %v501_v29, %v503_v18 }
 0x13f   :  { %v413_v25 = vpop.permute.xlu1 %412 }
 0x140   :  { %v446_v21 = vsel %vm118_vm3, %v413_v25, -1e+30 }
 0x141   :  { %v506_v59 = vsel %vm447_vm2, %v446_v21, -inf }
 0x142   :  { %v507_v48 = vmax.f32 %v499_v2, %v506_v59 }
 0x144   :  { %v509_v47 = vmax.f32 %v505_v16, %v507_v48 }
 0x146   :  { %v510_v56 = vmax.f32 %v508_v15, %v509_v47 }
 0x148   :  { %v511_v54 = vrot.slane %v510_v56, 4 }
 0x14a   :  { %v512_v27 = vmax.f32 %v510_v56, %v511_v54 }
 0x14c   :  { %v513_v28 = vrot.slane %v512_v27, 2 }
 0x14e   :  { %v514_v63 = vmax.f32 %v512_v27, %v513_v28 }
 0x150   :  { %v515_v10 = vrot.slane %v514_v63, 1 }
 0x152   :  { %v2778_v24 = vmax.f32 %v514_v63, %v515_v10 }
 0x154   :  { %v519_v4 = vsel %vm4324_vm6, %v2778_v24, 0.0  ;;  %v518_v26 = vsel %vm4342_vm5, %v2778_v24, 0.0  ;;  %v517_v23 = vsel %vm4325_vm0, %v2778_v24, 0.0  ;;  %v522_v38 = vsel %vm4326_vm4, %v2778_v24, 0.0 }
 0x155   :  { %v555_v35 = vsel %vm447_vm2, %v519_v4, 0.0  ;;  %v552_v43 = vsel %vm447_vm2, %v518_v26, 0.0  ;;  %v549_v45 = vsel %vm447_vm2, %v517_v23, 0.0  ;;  %vm4371_vm6 = vcmp.gt.f32.partialorder %v2470_v44, 0.0 }
 0x156   :  { %556 = vadd.xlane.f32.xlu1 %v555_v35  ;;  %553 = vadd.xlane.f32.xlu2 %v552_v43  ;;  %v520_v25 = vsel %vm4371_vm6, %v2778_v24, 0.0  ;;  %vm4372_vm0 = vcmp.gt.f32.partialorder %v2477_v46, 0.0  ;;  %v564_v18 = vsel %vm447_vm2, %v522_v38, 0.0  ;;  %vm4373_vm4 = vcmp.gt.f32.partialorder %v2511_v62, 0.0 }
 0x157   :  { %550 = vadd.xlane.f32.xlu0 %v549_v45  ;;  %v521_v29 = vsel %vm4372_vm0, %v2778_v24, 0.0  ;;  %v558_v21 = vsel %vm447_vm2, %v520_v25, 0.0  ;;  %v525_v39 = vsel %vm4373_vm4, %v2778_v24, 0.0  ;;  %vm4374_vm6 = vcmp.gt.f32.partialorder %v2501_v57, 0.0 }
 0x158   :  { %v561_v2 = vsel %vm447_vm2, %v521_v29, 0.0  ;;  %v523_v59 = vsel %vm4374_vm6, %v2778_v24, 0.0  ;;  %vm4375_vm0 = vcmp.gt.f32.partialorder %v2525_v5, 0.0  ;;  %v573_v48 = vsel %vm447_vm2, %v525_v39, 0.0 }
 0x159   :  { %v524_v16 = vsel %vm4375_vm0, %v2778_v24, 0.0  ;;  %v567_v15 = vsel %vm447_vm2, %v523_v59, 0.0  ;;  %vm4376_vm4 = vcmp.gt.f32.partialorder %v2544_v8, 0.0  ;;  %vm4377_vm6 = vcmp.gt.f32.partialorder %v2506_v58, 0.0 }
 0x15a   :  { %v570_v47 = vsel %vm447_vm2, %v524_v16, 0.0  ;;  %v528_v56 = vsel %vm4376_vm4, %v2778_v24, 0.0  ;;  %v526_v54 = vsel %vm4377_vm6, %v2778_v24, 0.0  ;;  %vm4378_vm0 = vcmp.gt.f32.partialorder %v2539_v6, 0.0 }
 0x15b   :  { %v527_v27 = vsel %vm4378_vm0, %v2778_v24, 0.0  ;;  %v582_v28 = vsel %vm447_vm2, %v528_v56, 0.0  ;;  %v576_v63 = vsel %vm447_vm2, %v526_v54, 0.0  ;;  %vm4379_vm4 = vcmp.gt.f32.partialorder %v2592_v60, 0.0 }
 0x15c   :  { %v579_v10 = vsel %vm447_vm2, %v527_v27, 0.0  ;;  %v531_v4 = vsel %vm4379_vm4, %v2778_v24, 0.0  ;;  %vm4380_vm6 = vcmp.gt.f32.partialorder %v2530_v61, 0.0  ;;  %vm4381_vm0 = vcmp.gt.f32.partialorder %v2582_v0, 0.0 }
 0x15d   :  { %v529_v26 = vsel %vm4380_vm6, %v2778_v24, 0.0  ;;  %v530_v23 = vsel %vm4381_vm0, %v2778_v24, 0.0  ;;  %v591_v35 = vsel %vm447_vm2, %v531_v4, 0.0  ;;  %v534_v38 = vsel %vm104_vm9, %v2778_v24, 0.0 }
 0x15e   :  { %565 = vadd.xlane.f32.xlu1 %v564_v18  ;;  %559 = vadd.xlane.f32.xlu2 %v558_v21  ;;  %v585_v43 = vsel %vm447_vm2, %v529_v26, 0.0  ;;  %v588_v45 = vsel %vm447_vm2, %v530_v23, 0.0  ;;  %vm4382_vm4 = vcmp.gt.f32.partialorder %v2559_v49, 0.0  ;;  %vm4383_vm6 = vcmp.gt.f32.partialorder %v2604_v42, 0.0 }
 0x15f   :  { %562 = vadd.xlane.f32.xlu0 %v561_v2  ;;  %v532_v25 = vsel %vm4382_vm4, %v2778_v24, 0.0  ;;  %v533_v29 = vsel %vm4383_vm6, %v2778_v24, 0.0  ;;  %v600_v18 = vsel %vm447_vm2, %v534_v38, 0.0  ;;  %v537_v39 = vsel %vm107_vm12, %v2778_v24, 0.0 }
 0x160   :  { %v594_v21 = vsel %vm447_vm2, %v532_v25, 0.0  ;;  %v597_v2 = vsel %vm447_vm2, %v533_v29, 0.0  ;;  %vm4384_vm0 = vcmp.gt.f32.partialorder %v2587_v55, 0.0  ;;  %vm4385_vm4 = vcmp.gt.f32.partialorder %v2627_v53, 0.0 }
 0x161   :  { %v535_v59 = vsel %vm4384_vm0, %v2778_v24, 0.0  ;;  %v536_v16 = vsel %vm4385_vm4, %v2778_v24, 0.0  ;;  %v540_v56 = vsel %vm110_vm1, %v2778_v24, 0.0  ;;  %v538_v54 = vsel %vm108_vm7, %v2778_v24, 0.0 }
 0x162   :  { %v539_v27 = vsel %vm109_vm15, %v2778_v24, 0.0  ;;  %v543_v4 = vsel %vm113_vm13, %v2778_v24, 0.0  ;;  %v541_v26 = vsel %vm111_vm11, %v2778_v24, 0.0  ;;  %vm4386_vm6 = vcmp.gt.f32.partialorder %v2682_v32, 0.0 }
 0x163   :  { %v542_v23 = vsel %vm4386_vm6, %v2778_v24, 0.0  ;;  %v546_v38 = vsel %vm116_vm8, %v2778_v24, 0.0  ;;  %v544_v25 = vsel %vm114_vm10, %v2778_v24, 0.0  ;;  %vm4387_vm0 = vcmp.gt.f32.partialorder %v2708_v36, 0.0 }
 0x164   :  { %v545_v29 = vsel %vm4387_vm0, %v2778_v24, 0.0  ;;  %vm4431_vm4 = vcmp.gt.f32.partialorder %v2465_v40, 0.0  ;;  %vm4432_vm6 = vcmp.gt.f32.partialorder %v2494_v52, 0.0  ;;  %vm4433_vm0 = vcmp.gt.f32.partialorder %v2470_v44, 0.0 }
 0x166   :  { %574 = vadd.xlane.f32.xlu1 %v573_v48  ;;  %568 = vadd.xlane.f32.xlu2 %v567_v15  ;;  %v609_v48 = vsel %vm447_vm2, %v537_v39, 0.0  ;;  %v603_v15 = vsel %vm447_vm2, %v535_v59, 0.0  ;;  %v547_v39 = vsel %vm117_vm14, %v2778_v24, 0.0  ;;  %v548_v59 = vsel %vm118_vm3, %v2778_v24, 0.0 }
 0x167   :  { %571 = vadd.xlane.f32.xlu0 %v570_v47  ;;  %v606_v47 = vsel %vm447_vm2, %v536_v16, 0.0  ;;  %v639_v16 = vsel %vm447_vm2, %v547_v39, 0.0  ;;  %v4392_v39 = vld [vmem:[#allocation6_spill] sm:$0xff] }
 0x16e   :  { %583 = vadd.xlane.f32.xlu1 %v582_v28  ;;  %577 = vadd.xlane.f32.xlu2 %v576_v63  ;;  %v618_v28 = vsel %vm447_vm2, %v540_v56, 0.0  ;;  %v612_v63 = vsel %vm447_vm2, %v538_v54, 0.0 }
 0x16f   :  { %580 = vadd.xlane.f32.xlu0 %v579_v10  ;;  %v615_v10 = vsel %vm447_vm2, %v539_v27, 0.0 }
 0x176   :  { %592 = vadd.xlane.f32.xlu1 %v591_v35  ;;  %586 = vadd.xlane.f32.xlu2 %v585_v43  ;;  %v627_v35 = vsel %vm447_vm2, %v543_v4, 0.0  ;;  %v621_v43 = vsel %vm447_vm2, %v541_v26, 0.0 }
 0x177   :  { %589 = vadd.xlane.f32.xlu0 %v588_v45  ;;  %v624_v45 = vsel %vm447_vm2, %v542_v23, 0.0 }
 0x17e   :  { %601 = vadd.xlane.f32.xlu1 %v600_v18  ;;  %595 = vadd.xlane.f32.xlu2 %v594_v21  ;;  %v636_v18 = vsel %vm447_vm2, %v546_v38, 0.0  ;;  %v630_v21 = vsel %vm447_vm2, %v544_v25, 0.0 }
 0x17f   :  { %598 = vadd.xlane.f32.xlu0 %v597_v2  ;;  %v633_v2 = vsel %vm447_vm2, %v545_v29, 0.0 }
 0x186   :  { %610 = vadd.xlane.f32.xlu1 %v609_v48  ;;  %604 = vadd.xlane.f32.xlu2 %v603_v15  ;;  %v642_v48 = vsel %vm447_vm2, %v548_v59, 0.0 }
 0x187   :  { %607 = vadd.xlane.f32.xlu0 %v606_v47 }
 0x18e   :  { %619 = vadd.xlane.f32.xlu1 %v618_v28  ;;  %613 = vadd.xlane.f32.xlu2 %v612_v63 }
 0x18f   :  { %616 = vadd.xlane.f32.xlu0 %v615_v10 }
 0x196   :  { %628 = vadd.xlane.f32.xlu1 %v627_v35  ;;  %622 = vadd.xlane.f32.xlu2 %v621_v43 }
 0x197   :  { %625 = vadd.xlane.f32.xlu0 %v624_v45 }
 0x19e   :  { %637 = vadd.xlane.f32.xlu1 %v636_v18  ;;  %631 = vadd.xlane.f32.xlu2 %v630_v21  ;;  %v4391_v18 = vld [vmem:[#allocation7_spill] sm:$0xff] }
 0x19f   :  { %634 = vadd.xlane.f32.xlu0 %v633_v2 }
 0x1a6   :  { %640 = vadd.xlane.f32.xlu2 %v639_v16 }
 0x1a7   :  { %643 = vadd.xlane.f32.xlu0 %v642_v48 }
 0x1c9   :  { %v557_v15 = vpop.xlane.xlu1 %556  ;;  %v554_v47 = vpop.xlane.xlu2 %553 }
 0x1ca   :  { %v647_v56 = vsub.f32 %v2315_v7, %v557_v15  ;;  %v646_v54 = vsub.f32 %v2329_v14, %v554_v47  ;;  %v551_v27 = vpop.xlane.xlu0 %550 }
 0x1cb   :  { %v645_v28 = vsub.f32 %v2318_v9, %v551_v27 }
 0x1cc   :  { %v681_v63 = vmul.f32 1.442695, %v647_v56  ;;  %v679_v10 = vmul.f32 1.442695, %v646_v54 }
 0x1cd   :  { %v677_v4 = vmul.f32 1.442695, %v645_v28  ;;  %v4396_v28 = vld [vmem:[#allocation8_spill] sm:$0xff] }
 0x1ce   :  { %1954 = vpow2.f32 %v681_v63 }
 0x1cf   :  { %1956 = vpow2.f32 %v679_v10  ;;  %v4397_v10 = vld [vmem:[#allocation10_spill] sm:$0xff] }
 0x1d0   :  { %1958 = vpow2.f32 %v677_v4 }
 0x1d1   :  { %v566_v24 = vpop.xlane.xlu1 %565  ;;  %v560_v26 = vpop.xlane.xlu2 %559 }
 0x1d2   :  { %v650_v23 = vsub.f32 %v2323_v11, %v566_v24  ;;  %v648_v35 = vsub.f32 %v2326_v12, %v560_v26  ;;  %v563_v43 = vpop.xlane.xlu0 %562  ;;  %v4398_v26 = vld [vmem:[#allocation9_spill] sm:$0xff] }
 0x1d3   :  { %v649_v7 = vsub.f32 %v2341_v20, %v563_v43 }
 0x1d4   :  { %v2914_v45 = vpop.eup %1954  ;;  %v687_v14 = vmul.f32 1.442695, %v650_v23  ;;  %v683_v38 = vmul.f32 1.442695, %v648_v35 }
 0x1d5   :  { %4388 = vst [vmem:[#allocation31_spill] sm:$0xff] %v2914_v45  ;;  %v2916_v9 = vpop.eup %1956  ;;  %v685_v25 = vmul.f32 1.442695, %v649_v7  ;;  %753 = vperm.xlu0 %1950, %v2914_v45  }
 0x1d6   :  { %4389 = vst [vmem:[#allocation32_spill] sm:$0xff] %v2916_v9  ;;  %v2919_v29 = vpop.eup %1958  ;;  %1960 = vpow2.f32 %v687_v14  ;;  %748 = vperm.xlu2 %1949, %v2916_v9  }
 0x1d7   :  { %4390 = vst [vmem:[#allocation33_spill] sm:$0xff] %v2919_v29  ;;  %1962 = vpow2.f32 %v683_v38  ;;  %743 = vperm.xlu1 %1951, %v2919_v29  }
 0x1d8   :  { %1964 = vpow2.f32 %v685_v25 }
 0x1d9   :  { %v575_v11 = vpop.xlane.xlu1 %574  ;;  %v569_v12 = vpop.xlane.xlu2 %568 }
 0x1da   :  { %v653_v20 = vsub.f32 %v2335_v17, %v575_v11  ;;  %v651_v21 = vsub.f32 %v4391_v18, %v569_v12  ;;  %v572_v2 = vpop.xlane.xlu0 %571 }
 0x1db   :  { %v652_v59 = vsub.f32 %v4392_v39, %v572_v2 }
 0x1dc   :  { %v2926_v16 = vpop.eup %1960  ;;  %v693_v48 = vmul.f32 1.442695, %v653_v20  ;;  %v689_v15 = vmul.f32 1.442695, %v651_v21  ;;  %v4402_v20 = vld [vmem:[#allocation11_spill] sm:$0xff]  ;;  %v4403_v21 = vld [vmem:[#allocation13_spill] sm:$0xff] }
 0x1dd   :  { %4393 = vst [vmem:[#allocation7_spill] sm:$0xff] %v2926_v16  ;;  %v2928_v47 = vpop.eup %1962  ;;  %v691_v56 = vmul.f32 1.442695, %v652_v59  ;;  %v4404_v59 = vld [vmem:[#allocation12_spill] sm:$0xff] }
 0x1de   :  { %4394 = vst [vmem:[#allocation6_spill] sm:$0xff] %v2928_v47  ;;  %v2930_v54 = vpop.eup %1964  ;;  %1966 = vpow2.f32 %v693_v48  ;;  %768 = vperm.xlu2 %1949, %v2926_v16  }
 0x1df   :  { %4395 = vst [vmem:[#allocation34_spill] sm:$0xff] %v2930_v54  ;;  %1968 = vpow2.f32 %v689_v15  ;;  %758 = vperm.xlu1 %1951, %v2928_v47   ;;  %763 = vperm.xlu0 %1950, %v2930_v54  }
 0x1e0   :  { %1970 = vpow2.f32 %v691_v56 }
 0x1e1   :  { %v584_v17 = vpop.xlane.xlu1 %583  ;;  %v578_v27 = vpop.xlane.xlu2 %577 }
 0x1e2   :  { %v656_v63 = vsub.f32 %v4396_v28, %v584_v17  ;;  %v654_v4 = vsub.f32 %v4397_v10, %v578_v27  ;;  %v581_v24 = vpop.xlane.xlu0 %580 }
 0x1e3   :  { %v655_v23 = vsub.f32 %v4398_v26, %v581_v24  ;;  %v4405_v24 = vld [vmem:[#allocation14_spill] sm:$0xff] }
 0x1e4   :  { %v2938_v35 = vpop.eup %1966  ;;  %v699_v43 = vmul.f32 1.442695, %v656_v63  ;;  %v695_v7 = vmul.f32 1.442695, %v654_v4 }
 0x1e5   :  { %4399 = vst [vmem:[#allocation8_spill] sm:$0xff] %v2938_v35  ;;  %v2940_v14 = vpop.eup %1968  ;;  %v697_v38 = vmul.f32 1.442695, %v655_v23  ;;  %v4406_v23 = vld [vmem:[#allocation16_spill] sm:$0xff] }
 0x1e6   :  { %4400 = vst [vmem:[#allocation10_spill] sm:$0xff] %v2940_v14  ;;  %v2942_v25 = vpop.eup %1970  ;;  %1972 = vpow2.f32 %v699_v43  ;;  %783 = vperm.xlu2 %1949, %v2938_v35  }
 0x1e7   :  { %4401 = vst [vmem:[#allocation9_spill] sm:$0xff] %v2942_v25  ;;  %1974 = vpow2.f32 %v695_v7  ;;  %773 = vperm.xlu1 %1951, %v2940_v14   ;;  %778 = vperm.xlu0 %1950, %v2942_v25  }
 0x1e8   :  { %1976 = vpow2.f32 %v697_v38  ;;  %v4407_v38 = vld [vmem:[#allocation15_spill] sm:$0xff] }
 0x1e9   :  { %v593_v11 = vpop.xlane.xlu1 %592  ;;  %v587_v12 = vpop.xlane.xlu2 %586 }
 0x1ea   :  { %v659_v18 = vsub.f32 %v4402_v20, %v593_v11  ;;  %v657_v2 = vsub.f32 %v4403_v21, %v587_v12  ;;  %v590_v39 = vpop.xlane.xlu0 %589 }
 0x1eb   :  { %v658_v48 = vsub.f32 %v4404_v59, %v590_v39 }
 0x1ec   :  { %v2950_v15 = vpop.eup %1972  ;;  %v705_v56 = vmul.f32 1.442695, %v659_v18  ;;  %v701_v17 = vmul.f32 1.442695, %v657_v2 }
 0x1ed   :  { %v2952_v27 = vpop.eup %1974  ;;  %v703_v28 = vmul.f32 1.442695, %v658_v48 }
 0x1ee   :  { %v2954_v63 = vpop.eup %1976  ;;  %1978 = vpow2.f32 %v705_v56  ;;  %798 = vperm.xlu2 %1949, %v2950_v15   ;;  %v4408_v56 = vld [vmem:[#allocation17_spill] sm:$0xff] }
 0x1ef   :  { %1980 = vpow2.f32 %v701_v17  ;;  %788 = vperm.xlu1 %1951, %v2952_v27   ;;  %793 = vperm.xlu0 %1950, %v2954_v63  }
 0x1f0   :  { %1982 = vpow2.f32 %v703_v28  ;;  %v4409_v28 = vld [vmem:[#allocation19_spill] sm:$0xff] }
 0x1f1   :  { %v602_v10 = vpop.xlane.xlu1 %601  ;;  %v596_v4 = vpop.xlane.xlu2 %595 }
 0x1f2   :  { %v662_v26 = vsub.f32 %v4405_v24, %v602_v10  ;;  %v660_v43 = vsub.f32 %v4406_v23, %v596_v4  ;;  %v599_v7 = vpop.xlane.xlu0 %598  ;;  %v4410_v24 = vld [vmem:[#allocation18_spill] sm:$0xff] }
 0x1f3   :  { %v661_v11 = vsub.f32 %v4407_v38, %v599_v7 }
 0x1f4   :  { %v2962_v12 = vpop.eup %1978  ;;  %v711_v20 = vmul.f32 1.442695, %v662_v26  ;;  %v707_v18 = vmul.f32 1.442695, %v660_v43 }
 0x1f5   :  { %v2964_v21 = vpop.eup %1980  ;;  %v709_v2 = vmul.f32 1.442695, %v661_v11 }
 0x1f6   :  { %v2966_v39 = vpop.eup %1982  ;;  %1984 = vpow2.f32 %v711_v20  ;;  %813 = vperm.xlu2 %1949, %v2962_v12  }
 0x1f7   :  { %1986 = vpow2.f32 %v707_v18  ;;  %803 = vperm.xlu1 %1951, %v2964_v21   ;;  %808 = vperm.xlu0 %1950, %v2966_v39  }
 0x1f8   :  { %1988 = vpow2.f32 %v709_v2 }
 0x1f9   :  { %v611_v59 = vpop.xlane.xlu1 %610  ;;  %v605_v48 = vpop.xlane.xlu2 %604 }
 0x1fa   :  { %v665_v17 = vsub.f32 %v4408_v56, %v611_v59  ;;  %v663_v10 = vsub.f32 %v4409_v28, %v605_v48  ;;  %v608_v4 = vpop.xlane.xlu0 %607  ;;  %v4413_v59 = vld [vmem:[#allocation20_spill] sm:$0xff]  ;;  %v4414_v56 = vld [vmem:[#allocation22_spill] sm:$0xff] }
 0x1fb   :  { %v664_v26 = vsub.f32 %v4410_v24, %v608_v4 }
 0x1fc   :  { %v2974_v23 = vpop.eup %1984  ;;  %v717_v43 = vmul.f32 1.442695, %v665_v17  ;;  %v713_v7 = vmul.f32 1.442695, %v663_v10  ;;  %v4415_v10 = vld [vmem:[#allocation21_spill] sm:$0xff] }
 0x1fd   :  { %4411 = vst [vmem:[#allocation11_spill] sm:$0xff] %v2974_v23  ;;  %v2976_v38 = vpop.eup %1986  ;;  %v715_v11 = vmul.f32 1.442695, %v664_v26 }
 0x1fe   :  { %v2978_v20 = vpop.eup %1988  ;;  %1990 = vpow2.f32 %v717_v43  ;;  %828 = vperm.xlu2 %1949, %v2974_v23  }
 0x1ff   :  { %4412 = vst [vmem:[#allocation13_spill] sm:$0xff] %v2978_v20  ;;  %1992 = vpow2.f32 %v713_v7  ;;  %818 = vperm.xlu1 %1951, %v2976_v38   ;;  %823 = vperm.xlu0 %1950, %v2978_v20  }
 0x200   :  { %1994 = vpow2.f32 %v715_v11 }
 0x201   :  { %v620_v18 = vpop.xlane.xlu1 %619  ;;  %v614_v2 = vpop.xlane.xlu2 %613 }
 0x202   :  { %v668_v48 = vsub.f32 %v4413_v59, %v620_v18  ;;  %v666_v17 = vsub.f32 %v4414_v56, %v614_v2  ;;  %v617_v28 = vpop.xlane.xlu0 %616  ;;  %v4419_v2 = vld [vmem:[#allocation23_spill] sm:$0xff] }
 0x203   :  { %v667_v4 = vsub.f32 %v4415_v10, %v617_v28  ;;  %v4421_v28 = vld [vmem:[#allocation24_spill] sm:$0xff] }
 0x204   :  { %v2986_v24 = vpop.eup %1990  ;;  %v723_v26 = vmul.f32 1.442695, %v668_v48  ;;  %v719_v43 = vmul.f32 1.442695, %v666_v17  ;;  %v4420_v48 = vld [vmem:[#allocation25_spill] sm:$0xff] }
 0x205   :  { %4416 = vst [vmem:[#allocation12_spill] sm:$0xff] %v2986_v24  ;;  %v2988_v23 = vpop.eup %1992  ;;  %v721_v7 = vmul.f32 1.442695, %v667_v4 }
 0x206   :  { %4417 = vst [vmem:[#allocation14_spill] sm:$0xff] %v2988_v23  ;;  %v2990_v29 = vpop.eup %1994  ;;  %1996 = vpow2.f32 %v723_v26  ;;  %843 = vperm.xlu2 %1949, %v2986_v24  }
 0x207   :  { %4418 = vst [vmem:[#allocation16_spill] sm:$0xff] %v2990_v29  ;;  %1998 = vpow2.f32 %v719_v43  ;;  %833 = vperm.xlu1 %1951, %v2988_v23   ;;  %838 = vperm.xlu0 %1950, %v2990_v29  }
 0x208   :  { %2000 = vpow2.f32 %v721_v7 }
 0x209   :  { %v629_v11 = vpop.xlane.xlu1 %628  ;;  %v623_v18 = vpop.xlane.xlu2 %622 }
 0x20a   :  { %v671_v59 = vsub.f32 %v4419_v2, %v629_v11  ;;  %v669_v56 = vsub.f32 %v4420_v48, %v623_v18  ;;  %v626_v17 = vpop.xlane.xlu0 %625  ;;  %v4425_v18 = vld [vmem:[#allocation26_spill] sm:$0xff] }
 0x20b   :  { %v670_v10 = vsub.f32 %v4421_v28, %v626_v17  ;;  %v4427_v17 = vld [vmem:[#allocation27_spill] sm:$0xff] }
 0x20c   :  { %v2998_v4 = vpop.eup %1996  ;;  %v729_v26 = vmul.f32 1.442695, %v671_v59  ;;  %v725_v20 = vmul.f32 1.442695, %v669_v56  ;;  %v4426_v59 = vld [vmem:[#allocation28_spill] sm:$0xff] }
 0x20d   :  { %4422 = vst [vmem:[#allocation15_spill] sm:$0xff] %v2998_v4  ;;  %v3000_v9 = vpop.eup %1998  ;;  %v727_v43 = vmul.f32 1.442695, %v670_v10 }
 0x20e   :  { %4423 = vst [vmem:[#allocation17_spill] sm:$0xff] %v3000_v9  ;;  %v3002_v45 = vpop.eup %2000  ;;  %2002 = vpow2.f32 %v729_v26  ;;  %858 = vperm.xlu2 %1949, %v2998_v4  }
 0x20f   :  { %4424 = vst [vmem:[#allocation19_spill] sm:$0xff] %v3002_v45  ;;  %2004 = vpow2.f32 %v725_v20  ;;  %848 = vperm.xlu1 %1951, %v3000_v9   ;;  %853 = vperm.xlu0 %1950, %v3002_v45  }
 0x210   :  { %2006 = vpow2.f32 %v727_v43 }
 0x211   :  { %v638_v7 = vpop.xlane.xlu1 %637  ;;  %v632_v11 = vpop.xlane.xlu2 %631 }
 0x212   :  { %v674_v2 = vsub.f32 %v4425_v18, %v638_v7  ;;  %v672_v48 = vsub.f32 %v4426_v59, %v632_v11  ;;  %v635_v56 = vpop.xlane.xlu0 %634  ;;  %v4429_v7 = vld [vmem:[#allocation30_spill] sm:$0xff] }
 0x213   :  { %v673_v28 = vsub.f32 %v4427_v17, %v635_v56 }
 0x214   :  { %v3010_v10 = vpop.eup %2002  ;;  %v735_v26 = vmul.f32 1.442695, %v674_v2  ;;  %v731_v23 = vmul.f32 1.442695, %v672_v48  ;;  %v4430_v2 = vld [vmem:[#allocation29_spill] sm:$0xff] }
 0x215   :  { %v3012_v29 = vpop.eup %2004  ;;  %v733_v20 = vmul.f32 1.442695, %v673_v28 }
 0x216   :  { %4428 = vst [vmem:[#allocation18_spill] sm:$0xff] %v3012_v29  ;;  %v3014_v47 = vpop.eup %2006  ;;  %2008 = vpow2.f32 %v735_v26  ;;  %873 = vperm.xlu2 %1949, %v3010_v10  }
 0x217   :  { %2010 = vpow2.f32 %v731_v23  ;;  %863 = vperm.xlu1 %1951, %v3012_v29   ;;  %868 = vperm.xlu0 %1950, %v3014_v47  }
 0x218   :  { %2012 = vpow2.f32 %v733_v20 }
 0x219   :  { %v641_v43 = vpop.xlane.xlu2 %640 }
 0x21a   :  { %v675_v11 = vsub.f32 %v4429_v7, %v641_v43  ;;  %v644_v18 = vpop.xlane.xlu0 %643 }
 0x21b   :  { %v676_v59 = vsub.f32 %v4430_v2, %v644_v18 }
 0x21c   :  { %v3021_v48 = vpop.eup %2008  ;;  %v737_v56 = vmul.f32 1.442695, %v675_v11 }
 0x21d   :  { %v3023_v17 = vpop.eup %2010  ;;  %v739_v28 = vmul.f32 1.442695, %v676_v59 }
 0x21e   :  { %v3025_v26 = vpop.eup %2012  ;;  %2014 = vpow2.f32 %v737_v56  ;;  %888 = vperm.xlu2 %1949, %v3021_v48  }
 0x21f   :  { %2016 = vpow2.f32 %v739_v28  ;;  %878 = vperm.xlu1 %1951, %v3023_v17   ;;  %883 = vperm.xlu0 %1950, %v3025_v26  }
 0x224   :  { %v3030_v23 = vpop.eup %2014 }
 0x225   :  { %v3032_v20 = vpop.eup %2016 }
 0x227   :  { %893 = vperm.xlu1 %1951, %v3030_v23   ;;  %898 = vperm.xlu0 %1950, %v3032_v20  }
 0x230   :  { %v749_v43 = vpop.permute.xlu2 %748 }
 0x231   :  { %v902_v2 = vsel %vm4342_vm5, %v749_v43, 0.0  ;;  %vm4434_vm5 = vcmp.gt.f32.partialorder %v2477_v46, 0.0 }
 0x232   :  { %v934_v24 = vsel %vm447_vm2, %v902_v2, 0.0 }
 0x238   :  { %v769_v7 = vpop.permute.xlu2 %768 }
 0x240   :  { %v784_v28 = vpop.permute.xlu2 %783 }
 0x247   :  { %v754_v11 = vpop.permute.xlu0 %753 }
 0x248   :  { %v903_v9 = vsel %vm4432_vm6, %v754_v11, 0.0  ;;  %v799_v11 = vpop.permute.xlu2 %798  ;;  %vm4436_vm6 = vcmp.gt.f32.partialorder %v2501_v57, 0.0 }
 0x249   :  { %v744_v18 = vpop.permute.xlu1 %743  ;;  %v936_v16 = vsel %vm447_vm2, %v903_v9, 0.0 }
 0x24a   :  { %v901_v59 = vsel %vm4431_vm4, %v744_v18, 0.0  ;;  %vm4435_vm4 = vcmp.gt.f32.partialorder %v2482_v50, 0.0 }
 0x24b   :  { %v933_v56 = vsel %vm447_vm2, %v901_v59, 0.0 }
 0x24c   :  { %v935_v54 = vadd.f32 %v934_v24, %v933_v56  ;;  %v906_v24 = vsel %vm4435_vm4, %v769_v7, 0.0  ;;  %vm4439_vm4 = vcmp.gt.f32.partialorder %v2506_v58, 0.0 }
 0x24d   :  { %v942_v9 = vsel %vm447_vm2, %v906_v24, 0.0 }
 0x24e   :  { %v937_v4 = vadd.f32 %v936_v16, %v935_v54 }
 0x251   :  { %v759_v45 = vpop.permute.xlu1 %758  ;;  %v764_v14 = vpop.permute.xlu0 %763 }
 0x252   :  { %v904_v43 = vsel %vm4433_vm0, %v759_v45, 0.0  ;;  %v905_v18 = vsel %vm4434_vm5, %v764_v14, 0.0  ;;  %vm4437_vm5 = vcmp.gt.f32.partialorder %v2525_v5, 0.0  ;;  %vm4438_vm0 = vcmp.gt.f32.partialorder %v2511_v62, 0.0 }
 0x253   :  { %v938_v59 = vsel %vm447_vm2, %v904_v43, 0.0  ;;  %v940_v2 = vsel %vm447_vm2, %v905_v18, 0.0  ;;  %v909_v7 = vsel %vm4438_vm0, %v784_v28, 0.0  ;;  %vm4442_vm0 = vcmp.gt.f32.partialorder %v2530_v61, 0.0 }
 0x254   :  { %v939_v25 = vadd.f32 %v938_v59, %v937_v4  ;;  %v814_v59 = vpop.permute.xlu2 %813 }
 0x256   :  { %v941_v56 = vadd.f32 %v940_v2, %v939_v25  ;;  %v948_v2 = vsel %vm447_vm2, %v909_v7, 0.0 }
 0x258   :  { %v943_v54 = vadd.f32 %v942_v9, %v941_v56 }
 0x259   :  { %v774_v29 = vpop.permute.xlu1 %773  ;;  %v779_v16 = vpop.permute.xlu0 %778 }
 0x25a   :  { %v907_v45 = vsel %vm4436_vm6, %v774_v29, 0.0  ;;  %v908_v14 = vsel %vm4437_vm5, %v779_v16, 0.0  ;;  %vm4440_vm6 = vcmp.gt.f32.partialorder %v2539_v6, 0.0  ;;  %vm4441_vm5 = vcmp.gt.f32.partialorder %v2544_v8, 0.0 }
 0x25b   :  { %v944_v4 = vsel %vm447_vm2, %v907_v45, 0.0  ;;  %v946_v18 = vsel %vm447_vm2, %v908_v14, 0.0  ;;  %v912_v28 = vsel %vm4441_vm5, %v799_v11, 0.0  ;;  %vm4445_vm5 = vcmp.gt.f32.partialorder %v2559_v49, 0.0 }
 0x25c   :  { %v945_v43 = vadd.f32 %v944_v4, %v943_v54  ;;  %v954_v4 = vsel %vm447_vm2, %v912_v28, 0.0  ;;  %v829_v7 = vpop.permute.xlu2 %828 }
 0x25e   :  { %v947_v25 = vadd.f32 %v946_v18, %v945_v43 }
 0x260   :  { %v949_v56 = vadd.f32 %v948_v2, %v947_v25 }
 0x261   :  { %v789_v24 = vpop.permute.xlu1 %788  ;;  %v794_v35 = vpop.permute.xlu0 %793 }
 0x262   :  { %v910_v29 = vsel %vm4439_vm4, %v789_v24, 0.0  ;;  %v911_v9 = vsel %vm4440_vm6, %v794_v35, 0.0  ;;  %vm4443_vm4 = vcmp.gt.f32.partialorder %v2582_v0, 0.0  ;;  %vm4444_vm6 = vcmp.gt.f32.partialorder %v2592_v60, 0.0 }
 0x263   :  { %v950_v16 = vsel %vm447_vm2, %v910_v29, 0.0  ;;  %v952_v54 = vsel %vm447_vm2, %v911_v9, 0.0  ;;  %v915_v11 = vsel %vm4444_vm6, %v814_v59, 0.0  ;;  %v918_v59 = vsel %vm104_vm9, %v829_v7, 0.0 }
 0x264   :  { %v951_v45 = vadd.f32 %v950_v16, %v949_v56  ;;  %v960_v16 = vsel %vm447_vm2, %v915_v11, 0.0  ;;  %vm4448_vm6 = vcmp.gt.f32.partialorder %v2627_v53, 0.0 }
 0x266   :  { %v953_v14 = vadd.f32 %v952_v54, %v951_v45 }
 0x268   :  { %v955_v2 = vadd.f32 %v954_v4, %v953_v14 }
 0x269   :  { %v804_v43 = vpop.permute.xlu1 %803  ;;  %v809_v18 = vpop.permute.xlu0 %808 }
 0x26a   :  { %v913_v25 = vsel %vm4442_vm0, %v804_v43, 0.0  ;;  %v914_v35 = vsel %vm4443_vm4, %v809_v18, 0.0  ;;  %vm4446_vm0 = vcmp.gt.f32.partialorder %v2604_v42, 0.0  ;;  %v844_v18 = vpop.permute.xlu2 %843  ;;  %vm4447_vm4 = vcmp.gt.f32.partialorder %v2587_v55, 0.0 }
 0x26b   :  { %v956_v24 = vsel %vm447_vm2, %v913_v25, 0.0  ;;  %v958_v56 = vsel %vm447_vm2, %v914_v35, 0.0  ;;  %v921_v7 = vsel %vm107_vm12, %v844_v18, 0.0 }
 0x26c   :  { %v957_v29 = vadd.f32 %v956_v24, %v955_v2  ;;  %v966_v24 = vsel %vm447_vm2, %v918_v59, 0.0 }
 0x26e   :  { %v959_v9 = vadd.f32 %v958_v56, %v957_v29 }
 0x270   :  { %v961_v14 = vadd.f32 %v960_v16, %v959_v9 }
 0x271   :  { %v819_v45 = vpop.permute.xlu1 %818  ;;  %v824_v54 = vpop.permute.xlu0 %823 }
 0x272   :  { %v916_v28 = vsel %vm4445_vm5, %v819_v45, 0.0  ;;  %v917_v4 = vsel %vm4446_vm0, %v824_v54, 0.0  ;;  %vm4449_vm5 = vcmp.gt.f32.partialorder %v2682_v32, 0.0  ;;  %vm4450_vm0 = vcmp.gt.f32.partialorder %v2708_v36, 0.0 }
 0x273   :  { %v962_v43 = vsel %vm447_vm2, %v916_v28, 0.0  ;;  %v964_v2 = vsel %vm447_vm2, %v917_v4, 0.0 }
 0x274   :  { %v963_v25 = vadd.f32 %v962_v43, %v961_v14  ;;  %v859_v14 = vpop.permute.xlu2 %858  ;;  %v972_v43 = vsel %vm447_vm2, %v921_v7, 0.0 }
 0x275   :  { %v924_v18 = vsel %vm110_vm1, %v859_v14, 0.0 }
 0x276   :  { %v965_v35 = vadd.f32 %v964_v2, %v963_v25 }
 0x278   :  { %v967_v9 = vadd.f32 %v966_v24, %v965_v35 }
 0x279   :  { %v834_v29 = vpop.permute.xlu1 %833  ;;  %v839_v56 = vpop.permute.xlu0 %838 }
 0x27a   :  { %v919_v11 = vsel %vm4447_vm4, %v834_v29, 0.0  ;;  %v920_v16 = vsel %vm4448_vm6, %v839_v56, 0.0  ;;  %vm4451_vm4 = vcmp.gt.f32.partialorder %v2559_v49, 0.0  ;;  %vm4452_vm6 = vcmp.gt.f32.partialorder %v2592_v60, 0.0 }
 0x27b   :  { %v968_v45 = vsel %vm447_vm2, %v919_v11, 0.0  ;;  %v970_v28 = vsel %vm447_vm2, %v920_v16, 0.0 }
 0x27c   :  { %v969_v54 = vadd.f32 %v968_v45, %v967_v9  ;;  %v874_v16 = vpop.permute.xlu2 %873  ;;  %v978_v45 = vsel %vm447_vm2, %v924_v18, 0.0 }
 0x27d   :  { %v927_v14 = vsel %vm113_vm13, %v874_v16, 0.0 }
 0x27e   :  { %v971_v4 = vadd.f32 %v970_v28, %v969_v54 }
 0x280   :  { %v973_v35 = vadd.f32 %v972_v43, %v971_v4 }
 0x281   :  { %v849_v25 = vpop.permute.xlu1 %848  ;;  %v854_v2 = vpop.permute.xlu0 %853 }
 0x282   :  { %v922_v59 = vsel %vm108_vm7, %v849_v25, 0.0  ;;  %v923_v24 = vsel %vm109_vm15, %v854_v2, 0.0 }
 0x283   :  { %v974_v29 = vsel %vm447_vm2, %v922_v59, 0.0  ;;  %v976_v11 = vsel %vm447_vm2, %v923_v24, 0.0  ;;  %v984_v24 = vsel %vm447_vm2, %v927_v14, 0.0 }
 0x284   :  { %v975_v56 = vadd.f32 %v974_v29, %v973_v35 }
 0x286   :  { %v977_v9 = vadd.f32 %v976_v11, %v975_v56 }
 0x288   :  { %v979_v4 = vadd.f32 %v978_v45, %v977_v9  ;;  %v889_v45 = vpop.permute.xlu2 %888 }
 0x289   :  { %v864_v54 = vpop.permute.xlu1 %863  ;;  %v869_v28 = vpop.permute.xlu0 %868  ;;  %v930_v16 = vsel %vm116_vm8, %v889_v45, 0.0 }
 0x28a   :  { %v925_v7 = vsel %vm111_vm11, %v864_v54, 0.0  ;;  %v926_v43 = vsel %vm4449_vm5, %v869_v28, 0.0  ;;  %vm4455_vm5 = vcmp.gt.f32.partialorder %v2530_v61, 0.0 }
 0x28b   :  { %v980_v25 = vsel %vm447_vm2, %v925_v7, 0.0  ;;  %v982_v59 = vsel %vm447_vm2, %v926_v43, 0.0  ;;  %v990_v43 = vsel %vm447_vm2, %v930_v16, 0.0 }
 0x28c   :  { %v981_v2 = vadd.f32 %v980_v25, %v979_v4 }
 0x28e   :  { %v983_v35 = vadd.f32 %v982_v59, %v981_v2 }
 0x290   :  { %v985_v18 = vadd.f32 %v984_v24, %v983_v35 }
 0x291   :  { %v879_v29 = vpop.permute.xlu1 %878  ;;  %v884_v56 = vpop.permute.xlu0 %883 }
 0x292   :  { %v928_v11 = vsel %vm114_vm10, %v879_v29, 0.0  ;;  %v929_v9 = vsel %vm4450_vm0, %v884_v56, 0.0 }
 0x293   :  { %v986_v54 = vsel %vm447_vm2, %v928_v11, 0.0  ;;  %v988_v7 = vsel %vm447_vm2, %v929_v9, 0.0 }
 0x294   :  { %v987_v28 = vadd.f32 %v986_v54, %v985_v18 }
 0x296   :  { %v989_v4 = vadd.f32 %v988_v7, %v987_v28 }
 0x298   :  { %v991_v14 = vadd.f32 %v990_v43, %v989_v4 }
 0x299   :  { %v894_v25 = vpop.permute.xlu1 %893  ;;  %v899_v2 = vpop.permute.xlu0 %898 }
 0x29a   :  { %v931_v59 = vsel %vm117_vm14, %v894_v25, 0.0  ;;  %v932_v35 = vsel %vm118_vm3, %v899_v2, 0.0 }
 0x29b   :  { %v992_v24 = vsel %vm447_vm2, %v931_v59, 0.0  ;;  %v994_v56 = vsel %vm447_vm2, %v932_v35, 0.0 }
 0x29c   :  { %v993_v29 = vadd.f32 %v992_v24, %v991_v14 }
 0x29e   :  { %v995_v11 = vadd.f32 %v994_v56, %v993_v29 }
 0x2a0   :  { %v996_v18 = vrot.slane %v995_v11, 4 }
 0x2a2   :  { %v997_v9 = vadd.f32 %v996_v18, %v995_v11 }
 0x2a4   :  { %v998_v45 = vrot.slane %v997_v9, 2 }
 0x2a6   :  { %v999_v54 = vadd.f32 %v998_v45, %v997_v9 }
 0x2a8   :  { %v1000_v28 = vrot.slane %v999_v54, 1 }
 0x2aa   :  { %v3132_v7 = vadd.f32 %v1000_v28, %v999_v54 }
 0x2ac   :  { %v1033_v16 = vsel %vm118_vm3, %v3132_v7, 0.0  ;;  %v1017_v4 = vsel %vm4451_vm4, %v3132_v7, 0.0  ;;  %v1016_v43 = vsel %vm4452_vm6, %v3132_v7, 0.0  ;;  %v1032_v33 = vsel %vm117_vm14, %v3132_v7, 0.0  ;;  %vm4454_vm14 = vmmov %vm4450_vm0 }
 0x2ad   :  { %v1127_v25 = vsel %vm447_vm2, %v1033_v16, 0.0  ;;  %v1079_v2 = vsel %vm447_vm2, %v1017_v4, 0.0  ;;  %v1076_v59 = vsel %vm447_vm2, %v1016_v43, 0.0  ;;  %vm4453_vm3 = vcmp.gt.f32.partialorder %v2582_v0, 0.0 }
 0x2ae   :  { %1128 = vadd.xlane.f32.xlu1 %v1127_v25  ;;  %1080 = vadd.xlane.f32.xlu2 %v1079_v2  ;;  %v1015_v49 = vsel %vm4453_vm3, %v3132_v7, 0.0  ;;  %v1031_v60 = vsel %vm116_vm8, %v3132_v7, 0.0  ;;  %v1124_v14 = vsel %vm447_vm2, %v1032_v33, 0.0  ;;  %v1030_v13 = vsel %vm4454_vm14, %v3132_v7, 0.0 }
 0x2af   :  { %1077 = vadd.xlane.f32.xlu0 %v1076_v59  ;;  %v1073_v35 = vsel %vm447_vm2, %v1015_v49, 0.0  ;;  %v1121_v24 = vsel %vm447_vm2, %v1031_v60, 0.0  ;;  %v1014_v0 = vsel %vm4455_vm5, %v3132_v7, 0.0  ;;  %vm4456_vm8 = vcmp.gt.f32.partialorder %v2544_v8, 0.0 }
 0x2b0   :  { %v1013_v34 = vsel %vm4456_vm8, %v3132_v7, 0.0  ;;  %v1118_v29 = vsel %vm447_vm2, %v1030_v13, 0.0  ;;  %v1070_v56 = vsel %vm447_vm2, %v1014_v0, 0.0  ;;  %v1029_v36 = vsel %vm114_vm10, %v3132_v7, 0.0 }
 0x2b1   :  { %v1067_v11 = vsel %vm447_vm2, %v1013_v34, 0.0  ;;  %vm4457_vm0 = vcmp.gt.f32.partialorder %v2539_v6, 0.0  ;;  %v1028_v8 = vsel %vm113_vm13, %v3132_v7, 0.0  ;;  %v1115_v18 = vsel %vm447_vm2, %v1029_v36, 0.0 }
 0x2b2   :  { %v1012_v61 = vsel %vm4457_vm0, %v3132_v7, 0.0  ;;  %v1112_v45 = vsel %vm447_vm2, %v1028_v8, 0.0  ;;  %vm4458_vm10 = vcmp.gt.f32.partialorder %v2682_v32, 0.0  ;;  %vm4459_vm4 = vcmp.gt.f32.partialorder %v2506_v58, 0.0 }
 0x2b3   :  { %v1064_v9 = vsel %vm447_vm2, %v1012_v61, 0.0  ;;  %v1027_v41 = vsel %vm4458_vm10, %v3132_v7, 0.0  ;;  %v1011_v6 = vsel %vm4459_vm4, %v3132_v7, 0.0  ;;  %vm4460_vm13 = vcmp.gt.f32.partialorder %v2511_v62, 0.0 }
 0x2b4   :  { %v1010_v3 = vsel %vm4460_vm13, %v3132_v7, 0.0  ;;  %v1109_v54 = vsel %vm447_vm2, %v1027_v41, 0.0  ;;  %v1061_v28 = vsel %vm447_vm2, %v1011_v6, 0.0  ;;  %v1026_v32 = vsel %vm111_vm11, %v3132_v7, 0.0 }
 0x2b5   :  { %v1058_v16 = vsel %vm447_vm2, %v1010_v3, 0.0  ;;  %vm4461_vm6 = vcmp.gt.f32.partialorder %v2525_v5, 0.0  ;;  %v1025_v62 = vsel %vm110_vm1, %v3132_v7, 0.0  ;;  %v1106_v4 = vsel %vm447_vm2, %v1026_v32, 0.0 }
 0x2b6   :  { %1125 = vadd.xlane.f32.xlu2 %v1124_v14  ;;  %1074 = vadd.xlane.f32.xlu1 %v1073_v35  ;;  %v1009_v58 = vsel %vm4461_vm6, %v3132_v7, 0.0  ;;  %v1103_v25 = vsel %vm447_vm2, %v1025_v62, 0.0  ;;  %v1024_v1 = vsel %vm109_vm15, %v3132_v7, 0.0  ;;  %vm4462_vm11 = vcmp.gt.f32.partialorder %v2501_v57, 0.0 }
 0x2b7   :  { %1122 = vadd.xlane.f32.xlu0 %v1121_v24  ;;  %v1055_v43 = vsel %vm447_vm2, %v1009_v58, 0.0  ;;  %v1008_v5 = vsel %vm4462_vm11, %v3132_v7, 0.0  ;;  %vm4463_vm1 = vcmp.gt.f32.partialorder %v2482_v50, 0.0  ;;  %v1100_v2 = vsel %vm447_vm2, %v1024_v1, 0.0 }
 0x2b8   :  { %v1007_v22 = vsel %vm4463_vm1, %v3132_v7, 0.0  ;;  %v1052_v59 = vsel %vm447_vm2, %v1008_v5, 0.0  ;;  %v1023_v30 = vsel %vm108_vm7, %v3132_v7, 0.0  ;;  %vm4464_vm15 = vcmp.gt.f32.partialorder %v2477_v46, 0.0 }
 0x2b9   :  { %v1049_v33 = vsel %vm447_vm2, %v1007_v22, 0.0  ;;  %v1006_v57 = vsel %vm4464_vm15, %v3132_v7, 0.0  ;;  %v1022_v50 = vsel %vm107_vm12, %v3132_v7, 0.0  ;;  %v1097_v49 = vsel %vm447_vm2, %v1023_v30, 0.0 }
 0x2ba   :  { %v1046_v60 = vsel %vm447_vm2, %v1006_v57, 0.0  ;;  %v1094_v14 = vsel %vm447_vm2, %v1022_v50, 0.0  ;;  %vm4465_vm7 = vcmp.gt.f32.partialorder %v2627_v53, 0.0  ;;  %vm4466_vm3 = vcmp.gt.f32.partialorder %v2470_v44, 0.0 }
 0x2bb   :  { %v1021_v37 = vsel %vm4465_vm7, %v3132_v7, 0.0  ;;  %v1005_v46 = vsel %vm4466_vm3, %v3132_v7, 0.0  ;;  %vm4467_vm12 = vcmp.gt.f32.partialorder %v2494_v52, 0.0  ;;  %vm4468_vm14 = vcmp.gt.f32.partialorder %v2587_v55, 0.0 }
 0x2bc   :  { %v1004_v19 = vsel %vm4467_vm12, %v3132_v7, 0.0  ;;  %v1091_v35 = vsel %vm447_vm2, %v1021_v37, 0.0  ;;  %v1043_v24 = vsel %vm447_vm2, %v1005_v46, 0.0  ;;  %v1020_v53 = vsel %vm4468_vm14, %v3132_v7, 0.0 }
 0x2bd   :  { %v1040_v13 = vsel %vm447_vm2, %v1004_v19, 0.0  ;;  %vm4469_vm5 = vcmp.gt.f32.partialorder %v2487_v51, 0.0  ;;  %v1019_v52 = vsel %vm104_vm9, %v3132_v7, 0.0  ;;  %v1088_v0 = vsel %vm447_vm2, %v1020_v53, 0.0 }
 0x2be   :  { %1119 = vadd.xlane.f32.xlu1 %v1118_v29  ;;  %1071 = vadd.xlane.f32.xlu2 %v1070_v56  ;;  %v1003_v44 = vsel %vm4469_vm5, %v3132_v7, 0.0  ;;  %v1085_v29 = vsel %vm447_vm2, %v1019_v52, 0.0  ;;  %vm4470_vm8 = vcmp.gt.f32.partialorder %v2604_v42, 0.0  ;;  %vm4471_vm0 = vcmp.gt.f32.partialorder %v2465_v40, 0.0 }
 0x2bf   :  { %1068 = vadd.xlane.f32.xlu0 %v1067_v11  ;;  %v1037_v34 = vsel %vm447_vm2, %v1003_v44, 0.0  ;;  %v1018_v55 = vsel %vm4470_vm8, %v3132_v7, 0.0  ;;  %v1002_v51 = vsel %vm4471_vm0, %v3132_v7, 0.0 }
 0x2c0   :  { %v1082_v31 = vsel %vm447_vm2, %v1018_v55, 0.0  ;;  %v1034_v56 = vsel %vm447_vm2, %v1002_v51, 0.0 }
 0x2c6   :  { %1116 = vadd.xlane.f32.xlu2 %v1115_v18  ;;  %1065 = vadd.xlane.f32.xlu1 %v1064_v9 }
 0x2c7   :  { %1113 = vadd.xlane.f32.xlu0 %v1112_v45 }
 0x2ce   :  { %1110 = vadd.xlane.f32.xlu1 %v1109_v54  ;;  %1062 = vadd.xlane.f32.xlu2 %v1061_v28 }
 0x2cf   :  { %1059 = vadd.xlane.f32.xlu0 %v1058_v16 }
 0x2d6   :  { %1107 = vadd.xlane.f32.xlu2 %v1106_v4  ;;  %1056 = vadd.xlane.f32.xlu1 %v1055_v43 }
 0x2d7   :  { %1104 = vadd.xlane.f32.xlu0 %v1103_v25 }
 0x2de   :  { %1101 = vadd.xlane.f32.xlu1 %v1100_v2  ;;  %1053 = vadd.xlane.f32.xlu2 %v1052_v59 }
 0x2df   :  { %1050 = vadd.xlane.f32.xlu0 %v1049_v33 }
 0x2e6   :  { %1098 = vadd.xlane.f32.xlu2 %v1097_v49  ;;  %1047 = vadd.xlane.f32.xlu1 %v1046_v60 }
 0x2e7   :  { %1095 = vadd.xlane.f32.xlu0 %v1094_v14 }
 0x2ee   :  { %1092 = vadd.xlane.f32.xlu1 %v1091_v35  ;;  %1044 = vadd.xlane.f32.xlu2 %v1043_v24 }
 0x2ef   :  { %1041 = vadd.xlane.f32.xlu0 %v1040_v13 }
 0x2f6   :  { %1089 = vadd.xlane.f32.xlu2 %v1088_v0  ;;  %1038 = vadd.xlane.f32.xlu1 %v1037_v34 }
 0x2f7   :  { %1086 = vadd.xlane.f32.xlu0 %v1085_v29 }
 0x2fe   :  { %1083 = vadd.xlane.f32.xlu1 %v1082_v31  ;;  %1035 = vadd.xlane.f32.xlu2 %v1034_v56 }
 0x321   :  { %v1129_v11 = vpop.xlane.xlu1 %1128  ;;  %v1081_v36 = vpop.xlane.xlu2 %1080 }
 0x322   :  { %vm1161_vm9 = vcmp.gt.f32.partialorder %v1129_v11, 0.0  ;;  %vm1145_vm10 = vcmp.gt.f32.partialorder %v1081_v36, 0.0  ;;  %v1078_v61 = vpop.xlane.xlu0 %1077 }
 0x323   :  { %v3262_v8 = vsel %vm1161_vm9, %v1129_v11, 1.0  ;;  %v1177_v18 = vsel %vm1145_vm10, %v1081_v36, 1.0  ;;  %vm1144_vm4 = vcmp.gt.f32.partialorder %v1078_v61, 0.0 }
 0x324   :  { %2018 = vrcp.f32 %v1177_v18  ;;  %v3265_v42 = vsel %vm1144_vm4, %v1078_v61, 1.0  ;;  %v1668_v59 = vand.u32 2147483647, %v3262_v8  ;;  %v1670_v33 = vand.u32 2147483648, %v3262_v8 }
 0x325   :  { %2020 = vrcp.f32 %v3262_v8  ;;  %v1428_v30 = vand.u32 2147483647, %v1177_v18  ;;  %v1430_v49 = vand.u32 2147483648, %v1177_v18  ;;  %vm1424_vm3 = vweird.f32 %v1177_v18 }
 0x326   :  { %2022 = vrcp.f32 %v3265_v42  ;;  %v1415_v46 = vand.u32 2147483648, %v3265_v42  ;;  %vm1409_vm14 = vweird.f32 %v3265_v42  ;;  %v1413_v24 = vand.u32 2147483647, %v3265_v42 }
 0x327   :  { %vm3314_vm5 = vcmp.eq.f32.partialorder %v1428_v30, 8.507059e+37  ;;  %v1431_v0 = vor.u32 1.1754944e-38, %v1430_v49  ;;  %vm1664_vm10 = vweird.f32 %v3262_v8 }
 0x328   :  { %v1416_v11 = vor.u32 1.1754944e-38, %v1415_v46  ;;  %vm1414_vm4 = vcmp.eq.f32.partialorder %v1413_v24, 8.507059e+37 }
 0x329   :  { %v1126_v40 = vpop.xlane.xlu2 %1125  ;;  %v1075_v45 = vpop.xlane.xlu1 %1074 }
 0x32a   :  { %vm1160_vm2 = vcmp.gt.f32.partialorder %v1126_v40, 0.0  ;;  %v3268_v7 = vpop.eup %2018  ;;  %vm1143_vm13 = vcmp.gt.f32.partialorder %v1075_v45, 0.0  ;;  %v1123_v58 = vpop.xlane.xlu0 %1122 }
 0x32b   :  { %v3270_v9 = vsel %vm1160_vm2, %v1126_v40, 1.0  ;;  %v3272_v41 = vpop.eup %2020  ;;  %v1420_v6 = vmul.f32 %v3268_v7, %v1177_v18  ;;  %v3282_v62 = vsel %vm1143_vm13, %v1075_v45, 1.0  ;;  %vm1159_vm6 = vcmp.gt.f32.partialorder %v1123_v58, 0.0 }
 0x32c   :  { %2024 = vrcp.f32 %v3270_v9  ;;  %v3276_v3 = vpop.eup %2022  ;;  %v1660_v16 = vmul.f32 %v3272_v41, %v3262_v8  ;;  %v3293_v57 = vsel %vm1159_vm6, %v1123_v58, 1.0  ;;  %vm1425_vm11 = vweird.f32 %v3268_v7 }
 0x32d   :  { %v1405_v54 = vmul.f32 %v3276_v3, %v3265_v42  ;;  %v1421_v28 = vsub.f32 1.0, %v1420_v6  ;;  %2026 = vrcp.f32 %v3282_v62  ;;  %vm1410_vm1 = vweird.f32 %v3276_v3  ;;  %vm3304_vm12 = vmor %vm1424_vm3, %vm1425_vm11 }
 0x32e   :  { %v1661_v25 = vsub.f32 1.0, %v1660_v16  ;;  %2028 = vrcp.f32 %v3293_v57  ;;  %vm3320_vm8 = vmor %vm1409_vm14, %vm1410_vm1  ;;  %vm1665_vm0 = vweird.f32 %v3272_v41  ;;  %vm1669_vm13 = vcmp.eq.f32.partialorder %v1668_v59, 8.507059e+37 }
 0x32f   :  { %v1406_v32 = vsub.f32 1.0, %v1405_v54  ;;  %v1422_v43 = vmul.f32 %v3268_v7, %v1421_v28  ;;  %vm1666_vm2 = vmor %vm1664_vm10, %vm1665_vm0  ;;  %v1671_v42 = vor.u32 1.1754944e-38, %v1670_v33  ;;  %vm1649_vm1 = vweird.f32 %v3270_v9 }
 0x330   :  { %v1662_v60 = vmul.f32 %v3272_v41, %v1661_v25  ;;  %v1640_v35 = vand.u32 2147483648, %v3293_v57 }
 0x331   :  { %v1407_v1 = vmul.f32 %v3276_v3, %v1406_v32  ;;  %v1120_v22 = vpop.xlane.xlu1 %1119  ;;  %v1072_v2 = vpop.xlane.xlu2 %1071  ;;  %v1423_v50 = vadd.f32 %v3268_v7, %v1422_v43  ;;  %v1655_v32 = vand.u32 2147483648, %v3270_v9 }
 0x332   :  { %v3284_v4 = vpop.eup %2024  ;;  %vm1158_vm15 = vcmp.gt.f32.partialorder %v1120_v22, 0.0  ;;  %vm1142_vm7 = vcmp.gt.f32.partialorder %v1072_v2, 0.0  ;;  %v1069_v44 = vpop.xlane.xlu0 %1068  ;;  %v1663_v51 = vadd.f32 %v3272_v41, %v1662_v60 }
 0x333   :  { %v1645_v5 = vmul.f32 %v3284_v4, %v3270_v9  ;;  %v1408_v14 = vadd.f32 %v3276_v3, %v1407_v1  ;;  %v3300_v37 = vpop.eup %2026  ;;  %v3312_v53 = vsel %vm1142_vm7, %v1072_v2, 1.0  ;;  %v3325_v29 = vsel %vm1158_vm15, %v1120_v22, 1.0 }
 0x334   :  { %v1390_v13 = vmul.f32 %v3300_v37, %v3282_v62  ;;  %v1427_v55 = vsel %vm3304_vm12, %v3268_v7, %v1423_v50  ;;  %2030 = vrcp.f32 %v3312_v53  ;;  %vm1141_vm9 = vcmp.gt.f32.partialorder %v1069_v44, 0.0  ;;  %v3341_v18 = vpop.eup %2028 }
 0x335   :  { %v1646_v19 = vsub.f32 1.0, %v1645_v5  ;;  %v1412_v56 = vsel %vm3320_vm8, %v3276_v3, %v1408_v14  ;;  %2032 = vrcp.f32 %v3325_v29  ;;  %v1432_v61 = vsel %vm3314_vm5, %v1431_v0, %v1427_v55 }
 0x336   :  { %v1391_v31 = vsub.f32 1.0, %v1390_v13  ;;  %v1433_v40 = vmul.f32 %v2976_v38, %v1432_v61  ;;  %v1417_v7 = vsel %vm1414_vm4, %v1416_v11, %v1412_v56  ;;  %v3345_v3 = vsel %vm1141_vm9, %v1069_v44, 1.0 }
 0x337   :  { %v1647_v36 = vmul.f32 %v3284_v4, %v1646_v19  ;;  %v1418_v8 = vmul.f32 %v2962_v12, %v1417_v7  ;;  %v1667_v54 = vsel %vm1666_vm2, %v3272_v41, %v1663_v51  ;;  %vm1650_vm6 = vweird.f32 %v3284_v4 }
 0x338   :  { %v1392_v6 = vmul.f32 %v3300_v37, %v1391_v31  ;;  %1752 = vperm.xlu0 %1950, %v1433_v40   ;;  %v1672_v16 = vsel %vm1669_vm13, %v1671_v42, %v1667_v54  ;;  %v1630_v38 = vmul.f32 %v3341_v18, %v3293_v57  ;;  %v1653_v12 = vand.u32 2147483647, %v3270_v9  ;;  %vm3362_vm15 = vmor %vm1649_vm1, %vm1650_vm6 }
 0x339   :  { %v1117_v45 = vpop.xlane.xlu2 %1116  ;;  %v1648_v28 = vadd.f32 %v3284_v4, %v1647_v36  ;;  %1747 = vperm.xlu1 %1951, %v1418_v8   ;;  %v1673_v58 = vmul.f32 %v3032_v20, %v1672_v16  ;;  %v1066_v43 = vpop.xlane.xlu1 %1065  ;;  %2034 = vrcp.f32 %v3345_v3  ;;  %vm1395_vm7 = vweird.f32 %v3300_v37 }
 0x33a   :  { %vm1157_vm11 = vcmp.gt.f32.partialorder %v1117_v45, 0.0  ;;  %v3355_v25 = vpop.eup %2030  ;;  %v1393_v5 = vadd.f32 %v3300_v37, %v1392_v6  ;;  %v1398_v20 = vand.u32 2147483647, %v3282_v62  ;;  %v1400_v22 = vand.u32 2147483648, %v3282_v62  ;;  %v1114_v14 = vpop.xlane.xlu0 %1113 }
 0x33b   :  { %v3360_v41 = vpop.eup %2032  ;;  %1832 = vperm.xlu2 %1949, %v1673_v58   ;;  %v3370_v2 = vsel %vm1157_vm11, %v1117_v45, 1.0  ;;  %vm1140_vm3 = vcmp.gt.f32.partialorder %v1066_v43, 0.0  ;;  %v1652_v9 = vsel %vm3362_vm15, %v3284_v4, %v1648_v28  ;;  %v1656_v59 = vor.u32 1.1754944e-38, %v1655_v32 }
 0x33c   :  { %v1631_v33 = vsub.f32 1.0, %v1630_v38  ;;  %vm1394_vm12 = vweird.f32 %v3282_v62  ;;  %v1375_v30 = vmul.f32 %v3355_v25, %v3312_v53  ;;  %vm1654_vm14 = vcmp.eq.f32.partialorder %v1653_v12, 8.507059e+37 }
 0x33d   :  { %v1638_v50 = vand.u32 2147483647, %v3293_v57  ;;  %vm3379_vm5 = vmor %vm1394_vm12, %vm1395_vm7  ;;  %v1615_v60 = vmul.f32 %v3360_v41, %v3325_v29  ;;  %2036 = vrcp.f32 %v3370_v2  ;;  %v3386_v4 = vsel %vm1140_vm3, %v1066_v43, 1.0 }
 0x33e   :  { %v1657_v46 = vsel %vm1654_vm14, %v1656_v59, %v1652_v9  ;;  %v1397_v62 = vsel %vm3379_vm5, %v3300_v37, %v1393_v5  ;;  %vm1399_vm8 = vcmp.eq.f32.partialorder %v1398_v20, 8.507059e+37  ;;  %v1401_v24 = vor.u32 1.1754944e-38, %v1400_v22 }
 0x33f   :  { %v3391_v19 = vpop.eup %2034  ;;  %2038 = vrcp.f32 %v3386_v4  ;;  %v1632_v13 = vmul.f32 %v3341_v18, %v1631_v33  ;;  %v1623_v44 = vand.u32 2147483647, %v3325_v29  ;;  %v1376_v52 = vsub.f32 1.0, %v1375_v30 }
 0x340   :  { %vm1156_vm0 = vcmp.gt.f32.partialorder %v1114_v14, 0.0  ;;  %v1616_v0 = vsub.f32 1.0, %v1615_v60  ;;  %v1625_v34 = vand.u32 2147483648, %v3325_v29  ;;  %v1658_v55 = vmul.f32 %v3030_v23, %v1657_v46 }
 0x341   :  { %v1402_v37 = vsel %vm1399_vm8, %v1401_v24, %v1397_v62  ;;  %v1360_v51 = vmul.f32 %v3391_v19, %v3345_v3  ;;  %v1063_v56 = vpop.xlane.xlu2 %1062  ;;  %vm1634_vm9 = vweird.f32 %v3293_v57  ;;  %vm3403_vm10 = vcmp.eq.f32.partialorder %v1638_v50, 8.507059e+37  ;;  %v1111_v42 = vpop.xlane.xlu1 %1110 }
 0x342   :  { %v1403_v31 = vmul.f32 %v2966_v39, %v1402_v37  ;;  %v1641_v36 = vor.u32 1.1754944e-38, %v1640_v35  ;;  %v3407_v61 = vsel %vm1156_vm0, %v1114_v14, 1.0  ;;  %1827 = vperm.xlu0 %1950, %v1658_v55   ;;  %v1633_v23 = vadd.f32 %v3341_v18, %v1632_v13  ;;  %v1060_v43 = vpop.xlane.xlu0 %1059 }
 0x343   :  { %v3409_v40 = vpop.eup %2036  ;;  %vm1635_vm4 = vweird.f32 %v3341_v18  ;;  %vm1619_vm2 = vweird.f32 %v3325_v29  ;;  %v1377_v39 = vmul.f32 %v3355_v25, %v1376_v52  ;;  %v1617_v45 = vmul.f32 %v3360_v41, %v1616_v0 }
 0x344   :  { %1742 = vperm.xlu2 %1949, %v1403_v31   ;;  %vm3418_vm13 = vcmp.eq.f32.partialorder %v1623_v44, 8.507059e+37  ;;  %v1626_v8 = vor.u32 1.1754944e-38, %v1625_v34  ;;  %v1383_v54 = vand.u32 2147483647, %v3312_v53  ;;  %vm1139_vm6 = vcmp.gt.f32.partialorder %v1063_v56, 0.0  ;;  %vm3427_vm1 = vmor %vm1634_vm9, %vm1635_vm4 }
 0x345   :  { %v3415_v7 = vpop.eup %2038  ;;  %v1385_v28 = vand.u32 2147483648, %v3312_v53  ;;  %v1361_v16 = vsub.f32 1.0, %v1360_v51  ;;  %2040 = vrcp.f32 %v3407_v61  ;;  %vm1155_vm11 = vcmp.gt.f32.partialorder %v1111_v42, 0.0 }
 0x346   :  { %vm1379_vm15 = vweird.f32 %v3312_v53  ;;  %vm1380_vm7 = vweird.f32 %v3355_v25  ;;  %v1368_v38 = vand.u32 2147483647, %v3345_v3  ;;  %v1600_v58 = vmul.f32 %v3409_v40, %v3370_v2 }
 0x347   :  { %v1378_v12 = vadd.f32 %v3355_v25, %v1377_v39  ;;  %v1345_v1 = vmul.f32 %v3415_v7, %v3386_v4  ;;  %v3439_v57 = vsel %vm1139_vm6, %v1063_v56, 1.0  ;;  %v1637_v5 = vsel %vm3427_vm1, %v3341_v18, %v1633_v23  ;;  %vm3459_vm5 = vmor %vm1379_vm15, %vm1380_vm7 }
 0x348   :  { %v1618_v20 = vadd.f32 %v3360_v41, %v1617_v45  ;;  %vm1620_vm3 = vweird.f32 %v3360_v41  ;;  %vm1364_vm12 = vweird.f32 %v3345_v3  ;;  %v3447_v22 = vsel %vm1155_vm11, %v1111_v42, 1.0 }
 0x349   :  { %vm3449_vm14 = vcmp.eq.f32.partialorder %v1383_v54, 8.507059e+37  ;;  %v1386_v59 = vor.u32 1.1754944e-38, %v1385_v28  ;;  %v1362_v33 = vmul.f32 %v3391_v19, %v1361_v16  ;;  %v1370_v30 = vand.u32 2147483648, %v3345_v3  ;;  %vm3471_vm8 = vmor %vm1619_vm2, %vm1620_vm3  ;;  %v1108_v13 = vpop.xlane.xlu2 %1107  ;;  %v1057_v51 = vpop.xlane.xlu1 %1056 }
 0x34a   :  { %v1601_v50 = vsub.f32 1.0, %v1600_v58  ;;  %v1608_v49 = vand.u32 2147483647, %v3370_v2  ;;  %2042 = vrcp.f32 %v3439_v57  ;;  %v1642_v60 = vsel %vm3403_vm10, %v1641_v36, %v1637_v5  ;;  %v1105_v39 = vpop.xlane.xlu0 %1104 }
 0x34b   :  { %v3467_v14 = vpop.eup %2040  ;;  %vm3475_vm0 = vcmp.eq.f32.partialorder %v1368_v38, 8.507059e+37  ;;  %v1346_v62 = vsub.f32 1.0, %v1345_v1  ;;  %2044 = vrcp.f32 %v3447_v22  ;;  %v1643_v35 = vmul.f32 %v3021_v48, %v1642_v60 }
 0x34c   :  { %v1382_v24 = vsel %vm3459_vm5, %v3355_v25, %v1378_v12  ;;  %v1610_v29 = vand.u32 2147483648, %v3370_v2  ;;  %vm1138_vm9 = vcmp.gt.f32.partialorder %v1060_v43, 0.0  ;;  %v1622_v52 = vsel %vm3471_vm8, %v3360_v41, %v1618_v20 }
 0x34d   :  { %v1387_v44 = vsel %vm3449_vm14, %v1386_v59, %v1382_v24  ;;  %v1363_v0 = vadd.f32 %v3391_v19, %v1362_v33  ;;  %vm1365_vm10 = vweird.f32 %v3391_v19  ;;  %1822 = vperm.xlu0 %1950, %v1643_v35   ;;  %v1627_v25 = vsel %vm3418_vm13, %v1626_v8, %v1622_v52 }
 0x34e   :  { %v1388_v48 = vmul.f32 %v2964_v21, %v1387_v44  ;;  %v1371_v34 = vor.u32 1.1754944e-38, %v1370_v30  ;;  %v1585_v55 = vmul.f32 %v3467_v14, %v3407_v61  ;;  %v1628_v37 = vmul.f32 %v3025_v26, %v1627_v25  ;;  %vm3510_vm13 = vmor %vm1364_vm12, %vm1365_vm10 }
 0x34f   :  { %vm1154_vm4 = vcmp.gt.f32.partialorder %v1108_v13, 0.0  ;;  %v1602_v41 = vmul.f32 %v3409_v40, %v1601_v50  ;;  %vm1604_vm2 = vweird.f32 %v3370_v2  ;;  %v1347_v31 = vmul.f32 %v3415_v7, %v1346_v62 }
 0x350   :  { %v3502_v56 = vsel %vm1138_vm9, %v1060_v43, 1.0  ;;  %1737 = vperm.xlu1 %1951, %v1388_v48   ;;  %v3504_v21 = vpop.eup %2042  ;;  %vm3514_vm6 = vcmp.eq.f32.partialorder %v1608_v49, 8.507059e+37  ;;  %v1611_v36 = vor.u32 1.1754944e-38, %v1610_v29  ;;  %v1593_v42 = vand.u32 2147483647, %v3407_v61  ;;  %1817 = vperm.xlu2 %1949, %v1628_v37  }
 0x351   :  { %v1595_v23 = vand.u32 2147483648, %v3407_v61  ;;  %v3520_v45 = vpop.eup %2044  ;;  %v1353_v6 = vand.u32 2147483647, %v3386_v4  ;;  %v3524_v3 = vsel %vm1154_vm4, %v1108_v13, 1.0  ;;  %vm1137_vm11 = vcmp.gt.f32.partialorder %v1057_v51, 0.0  ;;  %v1102_v62 = vpop.xlane.xlu1 %1101 }
 0x352   :  { %v1367_v8 = vsel %vm3510_vm13, %v3391_v19, %v1363_v0  ;;  %vm1605_vm1 = vweird.f32 %v3409_v40  ;;  %v1586_v54 = vsub.f32 1.0, %v1585_v55  ;;  %v1355_v28 = vand.u32 2147483648, %v3386_v4  ;;  %v1054_v35 = vpop.xlane.xlu2 %1053  ;;  %v1051_v44 = vpop.xlane.xlu0 %1050 }
 0x353   :  { %2046 = vrcp.f32 %v3502_v56  ;;  %v1603_v16 = vadd.f32 %v3409_v40, %v1602_v41  ;;  %v1348_v32 = vadd.f32 %v3415_v7, %v1347_v31  ;;  %vm1350_vm15 = vweird.f32 %v3415_v7  ;;  %vm3546_vm7 = vmor %vm1604_vm2, %vm1605_vm1 }
 0x354   :  { %v1330_v38 = vmul.f32 %v3504_v21, %v3439_v57  ;;  %v1570_v58 = vmul.f32 %v3520_v45, %v3447_v22  ;;  %2048 = vrcp.f32 %v3524_v3  ;;  %v3540_v19 = vsel %vm1137_vm11, %v1057_v51, 1.0 }
 0x355   :  { %v1372_v43 = vsel %vm3475_vm0, %v1371_v34, %v1367_v8  ;;  %v3550_v1 = vor.u32 1.1754944e-38, %v1595_v23  ;;  %vm1349_vm3 = vweird.f32 %v3386_v4  ;;  %vm3553_vm12 = vcmp.eq.f32.partialorder %v1353_v6, 8.507059e+37 }
 0x356   :  { %2050 = vrcp.f32 %v3540_v19  ;;  %v1587_v20 = vmul.f32 %v3467_v14, %v1586_v54  ;;  %vm1351_vm14 = vmor %vm1349_vm3, %vm1350_vm15  ;;  %v1356_v9 = vor.u32 1.1754944e-38, %v1355_v28  ;;  %v1580_v2 = vand.u32 2147483648, %v3447_v22 }
 0x357   :  { %vm1153_vm5 = vcmp.gt.f32.partialorder %v1105_v39, 0.0  ;;  %v1331_v59 = vsub.f32 1.0, %v1330_v38  ;;  %v1373_v33 = vmul.f32 %v2950_v15, %v1372_v43  ;;  %v1607_v4 = vsel %vm3546_vm7, %v3409_v40, %v1603_v16 }
 0x358   :  { %v1352_v30 = vsel %vm1351_vm14, %v3415_v7, %v1348_v32  ;;  %vm1589_vm8 = vweird.f32 %v3407_v61  ;;  %v1571_v50 = vsub.f32 1.0, %v1570_v58  ;;  %v1578_v49 = vand.u32 2147483647, %v3447_v22 }
 0x359   :  { %v3565_v18 = vpop.eup %2046  ;;  %v1612_v60 = vsel %vm3514_vm6, %v1611_v36, %v1607_v4  ;;  %v1357_v46 = vsel %vm3553_vm12, %v1356_v9, %v1352_v30  ;;  %v1338_v15 = vand.u32 2147483647, %v3439_v57  ;;  %v3574_v53 = vsel %vm1153_vm5, %v1105_v39, 1.0  ;;  %1732 = vperm.xlu0 %1950, %v1373_v33   ;;  %v1048_v4 = vpop.xlane.xlu1 %1047 }
 0x35a   :  { %v1613_v40 = vmul.f32 %v3023_v17, %v1612_v60  ;;  %v1358_v7 = vmul.f32 %v2954_v63, %v1357_v46  ;;  %v3578_v24 = vpop.eup %2048  ;;  %vm1590_vm0 = vweird.f32 %v3467_v14  ;;  %vm3581_vm9 = vcmp.eq.f32.partialorder %v1593_v42, 8.507059e+37  ;;  %v1099_v9 = vpop.xlane.xlu2 %1098 }
 0x35b   :  { %vm1574_vm10 = vweird.f32 %v3447_v22  ;;  %v1581_v29 = vor.u32 1.1754944e-38, %v1580_v2  ;;  %vm1334_vm4 = vweird.f32 %v3439_v57  ;;  %v1588_v63 = vadd.f32 %v3467_v14, %v1587_v20  ;;  %vm3625_vm3 = vmor %vm1589_vm8, %vm1590_vm0  ;;  %v1096_v33 = vpop.xlane.xlu0 %1095 }
 0x35c   :  { %v3587_v52 = vpop.eup %2050  ;;  %v1332_v17 = vmul.f32 %v3504_v21, %v1331_v59  ;;  %v1340_v0 = vand.u32 2147483648, %v3439_v57  ;;  %v1315_v48 = vmul.f32 %v3565_v18, %v3502_v56  ;;  %1812 = vperm.xlu1 %1951, %v1613_v40   ;;  %1727 = vperm.xlu2 %1949, %v1358_v7   ;;  %v1572_v25 = vmul.f32 %v3520_v45, %v1571_v50 }
 0x35d   :  { %vm3595_vm2 = vcmp.eq.f32.partialorder %v1578_v49, 8.507059e+37  ;;  %v1325_v55 = vand.u32 2147483648, %v3502_v56  ;;  %2052 = vrcp.f32 %v3574_v53  ;;  %vm1152_vm13 = vcmp.gt.f32.partialorder %v1102_v62, 0.0 }
 0x35e   :  { %vm1575_vm6 = vweird.f32 %v3520_v45  ;;  %vm1335_vm11 = vweird.f32 %v3504_v21  ;;  %vm3603_vm1 = vcmp.eq.f32.partialorder %v1338_v15, 8.507059e+37  ;;  %vm1136_vm15 = vcmp.gt.f32.partialorder %v1054_v35, 0.0 }
 0x35f   :  { %v1555_v51 = vmul.f32 %v3578_v24, %v3524_v3  ;;  %v1300_v41 = vmul.f32 %v3587_v52, %v3540_v19  ;;  %v3611_v31 = vsel %vm1136_vm15, %v1054_v35, 1.0  ;;  %vm1135_vm7 = vcmp.gt.f32.partialorder %v1051_v44, 0.0  ;;  %vm3640_vm14 = vmor %vm1334_vm4, %vm1335_vm11 }
 0x360   :  { %v1333_v26 = vadd.f32 %v3504_v21, %v1332_v17  ;;  %v1316_v11 = vsub.f32 1.0, %v1315_v48  ;;  %v3614_v36 = vsel %vm1152_vm13, %v1102_v62, 1.0  ;;  %2054 = vrcp.f32 %v3611_v31  ;;  %vm3653_vm8 = vmor %vm1574_vm10, %vm1575_vm6 }
 0x361   :  { %v1573_v42 = vadd.f32 %v3520_v45, %v1572_v25  ;;  %v1341_v23 = vor.u32 1.1754944e-38, %v1340_v0  ;;  %v1323_v39 = vand.u32 2147483647, %v3502_v56  ;;  %v3619_v6 = vor.u32 1.1754944e-38, %v1325_v55 }
 0x362   :  { %vm1320_vm12 = vweird.f32 %v3565_v18  ;;  %v1563_v54 = vand.u32 2147483647, %v3524_v3  ;;  %v1565_v28 = vand.u32 2147483648, %v3524_v3  ;;  %v3632_v16 = vsel %vm1135_vm7, %v1051_v44, 1.0 }
 0x363   :  { %v3634_v32 = vpop.eup %2052  ;;  %vm1319_vm5 = vweird.f32 %v3502_v56  ;;  %v1556_v38 = vsub.f32 1.0, %v1555_v51  ;;  %v1301_v58 = vsub.f32 1.0, %v1300_v41  ;;  %2056 = vrcp.f32 %v3614_v36 }
 0x364   :  { %v1592_v43 = vsel %vm3625_vm3, %v3467_v14, %v1588_v63  ;;  %v1317_v12 = vmul.f32 %v3565_v18, %v1316_v11  ;;  %vm1559_vm0 = vweird.f32 %v3524_v3  ;;  %v1550_v5 = vand.u32 2147483648, %v3574_v53  ;;  %vm3722_vm15 = vmor %vm1319_vm5, %vm1320_vm12 }
 0x365   :  { %v1597_v20 = vsel %vm3581_vm9, %v3550_v1, %v1592_v43  ;;  %v1337_v14 = vsel %vm3640_vm14, %v3504_v21, %v1333_v26  ;;  %2058 = vrcp.f32 %v3632_v16  ;;  %v1577_v59 = vsel %vm3653_vm8, %v3520_v45, %v1573_v42  ;;  %v1045_v43 = vpop.xlane.xlu2 %1044 }
 0x366   :  { %v1598_v22 = vmul.f32 %v3010_v10, %v1597_v20  ;;  %v1342_v2 = vsel %vm3603_vm1, %v1341_v23, %v1337_v14  ;;  %v3673_v30 = vpop.eup %2054  ;;  %v1540_v1 = vmul.f32 %v3634_v32, %v3574_v53  ;;  %v1308_v21 = vand.u32 2147483647, %v3540_v19 }
 0x367   :  { %v1343_v50 = vmul.f32 %v2952_v27, %v1342_v2  ;;  %v1582_v10 = vsel %vm3595_vm2, %v1581_v29, %v1577_v59  ;;  %vm3681_vm9 = vcmp.eq.f32.partialorder %v1323_v39, 8.507059e+37  ;;  %v1557_v45 = vmul.f32 %v3578_v24, %v1556_v38  ;;  %v4533_v59 = vld [vmem:[#allocation18_spill] sm:$0xff] }
 0x368   :  { %v1302_v60 = vmul.f32 %v3587_v52, %v1301_v58  ;;  %1807 = vperm.xlu0 %1950, %v1598_v22   ;;  %v1583_v46 = vmul.f32 %v3014_v47, %v1582_v10  ;;  %vm1151_vm10 = vcmp.gt.f32.partialorder %v1099_v9, 0.0  ;;  %v1566_v15 = vor.u32 1.1754944e-38, %v1565_v28  ;;  %v4547_v22 = vld [vmem:[#allocation19_spill] sm:$0xff] }
 0x369   :  { %v1548_v40 = vand.u32 2147483647, %v3574_v53  ;;  %v1310_v27 = vand.u32 2147483648, %v3540_v19  ;;  %1722 = vperm.xlu1 %1951, %v1343_v50   ;;  %vm1150_vm4 = vcmp.gt.f32.partialorder %v1096_v33, 0.0  ;;  %v3690_v7 = vpop.eup %2056  ;;  %v1318_v62 = vadd.f32 %v3565_v18, %v1317_v12 }
 0x36a   :  { %vm1560_vm2 = vweird.f32 %v3578_v24  ;;  %vm3694_vm13 = vcmp.eq.f32.partialorder %v1563_v54, 8.507059e+37  ;;  %vm1304_vm6 = vweird.f32 %v3540_v19  ;;  %v1285_v47 = vmul.f32 %v3673_v30, %v3611_v31  ;;  %1802 = vperm.xlu2 %1949, %v1583_v46   ;;  %v1093_v54 = vpop.xlane.xlu1 %1092 }
 0x36b   :  { %v1541_v13 = vsub.f32 1.0, %v1540_v1  ;;  %v3701_v29 = vor.u32 1.1754944e-38, %v1550_v5  ;;  %vm3703_vm11 = vcmp.eq.f32.partialorder %v1308_v21, 8.507059e+37  ;;  %v3708_v63 = vsel %vm1151_vm10, %v1099_v9, 1.0  ;;  %v3710_v17 = vpop.eup %2058  ;;  %vm3733_vm14 = vmor %vm1559_vm0, %vm1560_vm2 }
 0x36c   :  { %v1558_v0 = vadd.f32 %v3578_v24, %v1557_v45  ;;  %v1303_v48 = vadd.f32 %v3587_v52, %v1302_v60  ;;  %vm1305_vm1 = vweird.f32 %v3587_v52  ;;  %v3716_v25 = vsel %vm1150_vm4, %v1096_v33, 1.0 }
 0x36d   :  { %vm1545_vm7 = vweird.f32 %v3634_v32  ;;  %v1311_v55 = vor.u32 1.1754944e-38, %v1310_v27  ;;  %v1525_v37 = vmul.f32 %v3690_v7, %v3614_v36  ;;  %vm1134_vm3 = vcmp.gt.f32.partialorder %v1048_v4, 0.0  ;;  %vm3745_vm5 = vmor %vm1304_vm6, %vm1305_vm1  ;;  %v1090_v42 = vpop.xlane.xlu2 %1089 }
 0x36e   :  { %v1535_v56 = vand.u32 2147483648, %v3614_v36  ;;  %v1286_v41 = vsub.f32 1.0, %v1285_v47  ;;  %2060 = vrcp.f32 %v3708_v63  ;;  %v3739_v26 = vsel %vm1134_vm3, %v1048_v4, 1.0  ;;  %v4534_v4 = vld [vmem:[#allocation9_spill] sm:$0xff] }
 0x36f   :  { %v1542_v11 = vmul.f32 %v3634_v32, %v1541_v13  ;;  %vm1544_vm12 = vweird.f32 %v3574_v53  ;;  %v1293_v3 = vand.u32 2147483647, %v3611_v31  ;;  %v1270_v23 = vmul.f32 %v3710_v17, %v3632_v16 }
 0x370   :  { %2062 = vrcp.f32 %v3716_v25  ;;  %v1322_v39 = vsel %vm3722_vm15, %v3565_v18, %v1318_v62  ;;  %v1562_v19 = vsel %vm3733_vm14, %v3578_v24, %v1558_v0  ;;  %v1307_v8 = vsel %vm3745_vm5, %v3587_v52, %v1303_v48  ;;  %v4528_v24 = vld [vmem:[#allocation8_spill] sm:$0xff]  ;;  %v1042_v52 = vpop.xlane.xlu0 %1041  ;;  %vm3815_vm15 = vmor %vm1544_vm12, %vm1545_vm7 }
 0x371   :  { %2064 = vrcp.f32 %v3739_v26  ;;  %v1526_v28 = vsub.f32 1.0, %v1525_v37  ;;  %v1533_v61 = vand.u32 2147483647, %v3614_v36  ;;  %v1295_v38 = vand.u32 2147483648, %v3611_v31 }
 0x372   :  { %v1327_v58 = vsel %vm3681_vm9, %v3619_v6, %v1322_v39  ;;  %v3768_v18 = vor.u32 1.1754944e-38, %v1535_v56  ;;  %v1287_v57 = vmul.f32 %v3673_v30, %v1286_v41  ;;  %vm1289_vm8 = vweird.f32 %v3611_v31 }
 0x373   :  { %v1328_v12 = vmul.f32 %v4528_v24, %v1327_v58  ;;  %v1543_v5 = vadd.f32 %v3634_v32, %v1542_v11  ;;  %vm1529_vm0 = vweird.f32 %v3614_v36  ;;  %v1567_v20 = vsel %vm3694_vm13, %v1566_v15, %v1562_v19  ;;  %v4545_v24 = vld [vmem:[#allocation15_spill] sm:$0xff] }
 0x374   :  { %v1312_v6 = vsel %vm3703_vm11, %v1311_v55, %v1307_v8  ;;  %vm1149_vm9 = vcmp.gt.f32.partialorder %v1093_v54, 0.0  ;;  %v3779_v14 = vpop.eup %2060  ;;  %vm3781_vm10 = vcmp.eq.f32.partialorder %v1548_v40, 8.507059e+37  ;;  %vm3785_vm4 = vcmp.eq.f32.partialorder %v1293_v3, 8.507059e+37  ;;  %v1039_v8 = vpop.xlane.xlu1 %1038 }
 0x375   :  { %v1271_v2 = vsub.f32 1.0, %v1270_v23  ;;  %1717 = vperm.xlu0 %1950, %v1328_v12   ;;  %v1568_v33 = vmul.f32 %v4533_v59, %v1567_v20  ;;  %v1313_v1 = vmul.f32 %v4534_v4, %v1312_v6  ;;  %v3791_v21 = vsel %vm1149_vm9, %v1093_v54, 1.0 }
 0x376   :  { %v3793_v50 = vpop.eup %2062  ;;  %v1527_v10 = vmul.f32 %v3690_v7, %v1526_v28  ;;  %v1296_v49 = vor.u32 1.1754944e-38, %v1295_v38  ;;  %v1278_v45 = vand.u32 2147483647, %v3632_v16  ;;  %v1280_v60 = vand.u32 2147483648, %v3632_v16  ;;  %v1036_v28 = vpop.xlane.xlu2 %1035 }
 0x377   :  { %v3798_v46 = vpop.eup %2064  ;;  %vm1530_vm2 = vweird.f32 %v3690_v7  ;;  %vm3801_vm13 = vcmp.eq.f32.partialorder %v1533_v61, 8.507059e+37  ;;  %v1288_v40 = vadd.f32 %v3673_v30, %v1287_v57  ;;  %vm1290_vm6 = vweird.f32 %v3673_v30  ;;  %1797 = vperm.xlu1 %1951, %v1568_v33   ;;  %1712 = vperm.xlu2 %1949, %v1313_v1  }
 0x378   :  { %v1520_v27 = vand.u32 2147483648, %v3708_v63  ;;  %v1510_v62 = vmul.f32 %v3779_v14, %v3708_v63  ;;  %2066 = vrcp.f32 %v3791_v21  ;;  %vm1133_vm11 = vcmp.gt.f32.partialorder %v1045_v43, 0.0  ;;  %vm3828_vm3 = vmor %vm1289_vm8, %vm1290_vm6  ;;  %v1087_v19 = vpop.xlane.xlu0 %1086 }
 0x379   :  { %vm1132_vm1 = vcmp.gt.f32.partialorder %v1042_v52, 0.0  ;;  %v1272_v47 = vmul.f32 %v3710_v17, %v1271_v2  ;;  %v1495_v13 = vmul.f32 %v3793_v50, %v3716_v25  ;;  %v1505_v44 = vand.u32 2147483648, %v3716_v25  ;;  %vm3854_vm12 = vmor %vm1529_vm0, %vm1530_vm2 }
 0x37a   :  { %v3823_v0 = vsel %vm1133_vm11, %v1045_v43, 1.0  ;;  %v1528_v48 = vadd.f32 %v3690_v7, %v1527_v10  ;;  %vm1274_vm7 = vweird.f32 %v3632_v16  ;;  %v3833_v53 = vor.u32 1.1754944e-38, %v1280_v60  ;;  %v4587_v10 = vld [vmem:[#allocation31_spill] sm:$0xff] }
 0x37b   :  { %v1255_v55 = vmul.f32 %v3798_v46, %v3739_v26  ;;  %2068 = vrcp.f32 %v3823_v0  ;;  %vm1275_vm14 = vweird.f32 %v3710_v17  ;;  %v3839_v37 = vsel %vm1132_vm1, %v1042_v52, 1.0  ;;  %v4546_v52 = vld [vmem:[#allocation10_spill] sm:$0xff] }
 0x37c   :  { %v1547_v31 = vsel %vm3815_vm15, %v3634_v32, %v1543_v5  ;;  %v1292_v51 = vsel %vm3828_vm3, %v3673_v30, %v1288_v40  ;;  %v1511_v56 = vsub.f32 1.0, %v1510_v62  ;;  %v1518_v41 = vand.u32 2147483647, %v3708_v63  ;;  %vm3906_vm2 = vmor %vm1274_vm7, %vm1275_vm14 }
 0x37d   :  { %v1503_v11 = vand.u32 2147483647, %v3716_v25  ;;  %2070 = vrcp.f32 %v3839_v37  ;;  %v1273_v32 = vadd.f32 %v3710_v17, %v1272_v47  ;;  %v3859_v23 = vor.u32 1.1754944e-38, %v1520_v27 }
 0x37e   :  { %v1496_v30 = vsub.f32 1.0, %v1495_v13  ;;  %v3861_v39 = vor.u32 1.1754944e-38, %v1505_v44  ;;  %v3863_v54 = vpop.eup %2066  ;;  %vm3865_vm5 = vcmp.eq.f32.partialorder %v1278_v45, 8.507059e+37  ;;  %v1256_v36 = vsub.f32 1.0, %v1255_v55 }
 0x37f   :  { %v1552_v61 = vsel %vm3781_vm10, %v3701_v29, %v1547_v31  ;;  %v1297_v38 = vsel %vm3785_vm4, %v1296_v49, %v1292_v51  ;;  %v1532_v58 = vsel %vm3854_vm12, %v3690_v7, %v1528_v48  ;;  %vm1514_vm8 = vweird.f32 %v3708_v63 }
 0x380   :  { %v1263_v43 = vand.u32 2147483647, %v3739_v26  ;;  %v1265_v57 = vand.u32 2147483648, %v3739_v26  ;;  %v1553_v12 = vmul.f32 %v4545_v24, %v1552_v61  ;;  %v1298_v5 = vmul.f32 %v4546_v52, %v1297_v38 }
 0x381   :  { %v3882_v20 = vpop.eup %2068  ;;  %v1512_v29 = vmul.f32 %v3779_v14, %v1511_v56  ;;  %vm1259_vm0 = vweird.f32 %v3739_v26  ;;  %v1537_v7 = vsel %vm3801_vm13, %v3768_v18, %v1532_v58  ;;  %vm1148_vm9 = vcmp.gt.f32.partialorder %v1090_v42, 0.0  ;;  %v1084_v56 = vpop.xlane.xlu1 %1083 }
 0x382   :  { %vm1147_vm10 = vcmp.gt.f32.partialorder %v1087_v19, 0.0  ;;  %vm1515_vm4 = vweird.f32 %v3779_v14  ;;  %v1497_v6 = vmul.f32 %v3793_v50, %v1496_v30  ;;  %v1480_v9 = vmul.f32 %v3863_v54, %v3791_v21  ;;  %1792 = vperm.xlu0 %1950, %v1553_v12   ;;  %1707 = vperm.xlu1 %1951, %v1298_v5  }
 0x383   :  { %v1538_v2 = vmul.f32 %v4547_v22, %v1537_v7  ;;  %v3894_v59 = vpop.eup %2070  ;;  %v1257_v33 = vmul.f32 %v3798_v46, %v1256_v36  ;;  %v1490_v4 = vand.u32 2147483648, %v3791_v21  ;;  %v3898_v18 = vsel %vm1148_vm9, %v1090_v42, 1.0  ;;  %vm3950_vm7 = vmor %vm1514_vm8, %vm1515_vm4  ;;  %v4565_v7 = vld [vmem:[#allocation17_spill] sm:$0xff] }
 0x384   :  { %v3900_v1 = vsel %vm1147_vm10, %v1087_v19, 1.0  ;;  %vm3910_vm13 = vcmp.eq.f32.partialorder %v1518_v41, 8.507059e+37  ;;  %vm3914_vm6 = vcmp.eq.f32.partialorder %v1263_v43, 8.507059e+37  ;;  %v1266_v60 = vor.u32 1.1754944e-38, %v1265_v57  ;;  %v4558_v19 = vld [vmem:[#allocation7_spill] sm:$0xff] }
 0x385   :  { %v1488_v15 = vand.u32 2147483647, %v3791_v21  ;;  %v1240_v40 = vmul.f32 %v3882_v20, %v3823_v0  ;;  %v1250_v16 = vand.u32 2147483648, %v3823_v0  ;;  %1787 = vperm.xlu2 %1949, %v1538_v2   ;;  %vm1500_vm11 = vweird.f32 %v3793_v50 }
 0x386   :  { %v1225_v27 = vmul.f32 %v3894_v59, %v3839_v37  ;;  %2072 = vrcp.f32 %v3898_v18  ;;  %vm1131_vm1 = vcmp.gt.f32.partialorder %v1039_v8, 0.0  ;;  %v1277_v62 = vsel %vm3906_vm2, %v3710_v17, %v1273_v32 }
 0x387   :  { %vm1260_vm15 = vweird.f32 %v3798_v46  ;;  %v1481_v35 = vsub.f32 1.0, %v1480_v9  ;;  %v1235_v47 = vand.u32 2147483648, %v3839_v37  ;;  %2074 = vrcp.f32 %v3900_v1  ;;  %v4566_v9 = vld [vmem:[#allocation34_spill] sm:$0xff] }
 0x388   :  { %v1513_v13 = vadd.f32 %v3779_v14, %v1512_v29  ;;  %v3934_v44 = vadd.f32 %v3793_v50, %v1497_v6  ;;  %vm1499_vm3 = vweird.f32 %v3716_v25  ;;  %v1258_v48 = vadd.f32 %v3798_v46, %v1257_v33 }
 0x389   :  { %v3938_v34 = vor.u32 1.1754944e-38, %v1490_v4  ;;  %v1241_v55 = vsub.f32 1.0, %v1240_v40  ;;  %v1248_v17 = vand.u32 2147483647, %v3823_v0  ;;  %v3941_v31 = vsel %vm1131_vm1, %v1039_v8, 1.0 }
 0x38a   :  { %v1282_v51 = vsel %vm3865_vm5, %v3833_v53, %v1277_v62  ;;  %vm1484_vm14 = vweird.f32 %v3791_v21  ;;  %vm1485_vm12 = vweird.f32 %v3863_v54  ;;  %v3956_v42 = vor.u32 1.1754944e-38, %v1250_v16  ;;  %vm3963_vm5 = vmor %vm1259_vm0, %vm1260_vm15 }
 0x38b   :  { %v1226_v3 = vsub.f32 1.0, %v1225_v27  ;;  %2076 = vrcp.f32 %v3941_v31  ;;  %v1482_v63 = vmul.f32 %v3863_v54, %v1481_v35  ;;  %vm1244_vm8 = vweird.f32 %v3823_v0 }
 0x38c   :  { %v1233_v32 = vand.u32 2147483647, %v3839_v37  ;;  %v3970_v30 = vor.u32 1.1754944e-38, %v1235_v47  ;;  %v1283_v8 = vmul.f32 %v4558_v19, %v1282_v51  ;;  %v3973_v36 = vpop.eup %2072  ;;  %vm3977_vm9 = vcmp.eq.f32.partialorder %v1503_v11, 8.507059e+37  ;;  %v4582_v19 = vld [vmem:[#allocation6_spill] sm:$0xff] }
 0x38d   :  { %vm1245_vm0 = vweird.f32 %v3882_v20  ;;  %v1517_v61 = vsel %vm3950_vm7, %v3779_v14, %v1513_v13  ;;  %v1262_v38 = vsel %vm3963_vm5, %v3798_v46, %v1258_v48  ;;  %vm1146_vm10 = vcmp.gt.f32.partialorder %v1084_v56, 0.0  ;;  %v3988_v58 = vpop.eup %2074 }
 0x38e   :  { %v1242_v43 = vmul.f32 %v3882_v20, %v1241_v55  ;;  %vm3991_vm4 = vcmp.eq.f32.partialorder %v1248_v17, 8.507059e+37  ;;  %vm1229_vm2 = vweird.f32 %v3839_v37  ;;  %v1465_v57 = vmul.f32 %v3973_v36, %v3898_v18  ;;  %1702 = vperm.xlu0 %1950, %v1283_v8  }
 0x38f   :  { %v1473_v14 = vand.u32 2147483647, %v3898_v18  ;;  %v1475_v24 = vand.u32 2147483648, %v3898_v18  ;;  %v1227_v46 = vmul.f32 %v3894_v59, %v1226_v3  ;;  %v1522_v12 = vsel %vm3910_vm13, %v3859_v23, %v1517_v61  ;;  %v4579_v3 = vld [vmem:[#allocation12_spill] sm:$0xff] }
 0x390   :  { %v1267_v52 = vsel %vm3914_vm6, %v1266_v60, %v1262_v38  ;;  %vm1130_vm1 = vcmp.gt.f32.partialorder %v1036_v28, 0.0  ;;  %vm4006_vm15 = vcmp.eq.f32.partialorder %v1488_v15, 8.507059e+37  ;;  %v1466_v29 = vsub.f32 1.0, %v1465_v57  ;;  %vm4026_vm6 = vmor %vm1499_vm3, %vm1500_vm11  ;;  %v4585_v57 = vld [vmem:[#allocation16_spill] sm:$0xff] }
 0x391   :  { %v1523_v6 = vmul.f32 %v4565_v7, %v1522_v12  ;;  %v1268_v22 = vmul.f32 %v4566_v9, %v1267_v52  ;;  %v4013_v2 = vsel %vm1146_vm10, %v1084_v56, 1.0  ;;  %v4015_v33 = vpop.eup %2076  ;;  %v1483_v23 = vadd.f32 %v3863_v54, %v1482_v63  ;;  %vm4054_vm11 = vmor %vm1484_vm14, %vm1485_vm12  ;;  %v2086_v12 = vld [vmem:[%s4276_s0 + $0xf8] sm:$0xff] }
 0x392   :  { %vm1230_vm13 = vweird.f32 %v3894_v59  ;;  %v1450_v4 = vmul.f32 %v3988_v58, %v3900_v1  ;;  %2078 = vrcp.f32 %v4013_v2  ;;  %v1243_v49 = vadd.f32 %v3882_v20, %v1242_v43  ;;  %vm4065_vm3 = vmor %vm1244_vm8, %vm1245_vm0  ;;  %v4590_v15 = vld [vmem:[#allocation32_spill] sm:$0xff] }
 0x393   :  { %v1467_v45 = vmul.f32 %v3973_v36, %v1466_v29  ;;  %vm1469_vm7 = vweird.f32 %v3898_v18  ;;  %v1210_v60 = vmul.f32 %v4015_v33, %v3941_v31  ;;  %1782 = vperm.xlu1 %1951, %v1523_v6   ;;  %1697 = vperm.xlu2 %1949, %v1268_v22   ;;  %vm4035_vm5 = vcmp.eq.f32.partialorder %v1233_v32, 8.507059e+37  ;;  %vm4088_vm12 = vmor %vm1229_vm2, %vm1230_vm13  ;;  %v4586_v22 = vld [vmem:[#allocation14_spill] sm:$0xff]  ;;  %v2093_v43 = vld [vmem:[%s4276_s0 + $0x60] sm:$0xff] }
 0x394   :  { %vm4039_vm10 = vcmp.eq.f32.partialorder %v1473_v14, 8.507059e+37  ;;  %v1476_v40 = vor.u32 1.1754944e-38, %v1475_v24  ;;  %v4044_v16 = vsel %vm1130_vm1, %v1036_v28, 1.0  ;;  %v1502_v27 = vsel %vm4026_vm6, %v3793_v50, %v3934_v44 }
 0x395   :  { %v1228_v35 = vadd.f32 %v3894_v59, %v1227_v46  ;;  %v1458_v47 = vand.u32 2147483647, %v3900_v1  ;;  %v1211_v13 = vsub.f32 1.0, %v1210_v60  ;;  %2080 = vrcp.f32 %v4044_v16  ;;  %v1833_v61 = vpop.permute.xlu2 %1832 }
 0x396   :  { %v1468_v21 = vadd.f32 %v3973_v36, %v1467_v45  ;;  %vm1470_vm14 = vweird.f32 %v3973_v36  ;;  %v1451_v44 = vsub.f32 1.0, %v1450_v4  ;;  %v1218_v48 = vand.u32 2147483647, %v3941_v31 }
 0x397   :  { %v1212_v55 = vmul.f32 %v4015_v33, %v1211_v13  ;;  %v1507_v17 = vsel %vm3977_vm9, %v3861_v39, %v1502_v27  ;;  %v1247_v0 = vsel %vm4065_vm3, %v3882_v20, %v1243_v49  ;;  %v1487_v51 = vsel %vm4054_vm11, %v3863_v54, %v1483_v23  ;;  %vm4101_vm9 = vmor %vm1469_vm7, %vm1470_vm14 }
 0x398   :  { %v4082_v56 = vpop.eup %2078  ;;  %vm1454_vm8 = vweird.f32 %v3900_v1  ;;  %v1460_v39 = vand.u32 2147483648, %v3900_v1  ;;  %v1220_v20 = vand.u32 2147483648, %v3941_v31  ;;  %v1508_v53 = vmul.f32 %v4579_v3, %v1507_v17  ;;  %v4594_v17 = vld [vmem:[#allocation11_spill] sm:$0xff] }
 0x399   :  { %v1252_v54 = vsel %vm3991_vm4, %v3956_v42, %v1247_v0  ;;  %v1213_v63 = vadd.f32 %v4015_v33, %v1212_v55  ;;  %vm1215_vm0 = vweird.f32 %v4015_v33  ;;  %v1435_v32 = vmul.f32 %v4082_v56, %v4013_v2  ;;  %v2088_v3 = vld [vmem:[%s4276_s0 + $0x70] sm:$0xff] }
 0x39a   :  { %v1253_v8 = vmul.f32 %v4582_v19, %v1252_v54  ;;  %v1452_v28 = vmul.f32 %v3988_v58, %v1451_v44  ;;  %1777 = vperm.xlu0 %1950, %v1508_v53   ;;  %v1492_v18 = vsel %vm4006_vm15, %v3938_v34, %v1487_v51  ;;  %v1232_v42 = vsel %vm4088_vm12, %v3894_v59, %v1228_v35  ;;  %v4595_v51 = vld [vmem:[#allocation13_spill] sm:$0xff] }
 0x39b   :  { %v1472_v26 = vsel %vm4101_vm9, %v3973_v36, %v1468_v21  ;;  %v2081_v38 = vpop.eup %2080  ;;  %vm1214_vm4 = vweird.f32 %v3941_v31  ;;  %vm4121_vm2 = vcmp.eq.f32.partialorder %v1218_v48, 8.507059e+37  ;;  %v1436_v11 = vsub.f32 1.0, %v1435_v32  ;;  %v2089_v54 = vld [vmem:[%s4276_s0 + $0x68] sm:$0xff]  ;;  %v2090_v32 = vld [vmem:[%s4276_s0 + $0xf0] sm:$0xff] }
 0x39c   :  { %1692 = vperm.xlu1 %1951, %v1253_v8   ;;  %v1493_v34 = vmul.f32 %v4585_v57, %v1492_v18  ;;  %vm1455_vm1 = vweird.f32 %v3988_v58  ;;  %vm1216_vm15 = vmor %vm1214_vm4, %vm1215_vm0  ;;  %v1221_v59 = vor.u32 1.1754944e-38, %v1220_v20  ;;  %v1195_v36 = vmul.f32 %v2081_v38, %v4044_v16  ;;  %v2091_v18 = vld [vmem:[%s4276_s0 + $0xe8] sm:$0xff] }
 0x39d   :  { %v1477_v14 = vsel %vm4039_vm10, %v1476_v40, %v1472_v26  ;;  %v1437_v31 = vmul.f32 %v4082_v56, %v1436_v11  ;;  %v1237_v24 = vsel %vm4035_vm5, %v3970_v30, %v1232_v42  ;;  %v1217_v46 = vsel %vm1216_vm15, %v4015_v33, %v1213_v63  ;;  %vm4154_vm7 = vmor %vm1454_vm8, %vm1455_vm1 }
 0x39e   :  { %1772 = vperm.xlu2 %1949, %v1493_v34   ;;  %v1866_v52 = vmul.f32 %v2086_v12, %v1833_v61  ;;  %v1453_v5 = vadd.f32 %v3988_v58, %v1452_v28  ;;  %v1445_v29 = vand.u32 2147483648, %v4013_v2  ;;  %v1196_v7 = vsub.f32 1.0, %v1195_v36  ;;  %v1743_v20 = vpop.permute.xlu2 %1742  ;;  %v2092_v61 = vld [vmem:[%s4276_s0 + $0xe0] sm:$0xff] }
 0x39f   :  { %v1222_v6 = vsel %vm4121_vm2, %v1221_v59, %v1217_v46  ;;  %v1438_v9 = vadd.f32 %v4082_v56, %v1437_v31  ;;  %vm1440_vm13 = vweird.f32 %v4082_v56  ;;  %v1205_v30 = vand.u32 2147483648, %v4044_v16  ;;  %v2094_v59 = vld [vmem:[%s4276_s0 + $0x58] sm:$0xff]  ;;  %v2095_v31 = vld [vmem:[%s4276_s0 + $0x50] sm:$0xff] }
 0x3a0   :  { %v1478_v33 = vmul.f32 %v4586_v22, %v1477_v14  ;;  %1893 = vmatpush.msra.mxu1 %v1866_v52  ;;  %v1197_v23 = vmul.f32 %v2081_v38, %v1196_v7  ;;  %vm1200_vm6 = vweird.f32 %v2081_v38  ;;  %v1203_v4 = vand.u32 2147483647, %v4044_v16  ;;  %v2096_v46 = vld [vmem:[%s4276_s0 + $0xd8] sm:$0xff]  ;;  %v2099_v22 = vld [vmem:[%s4276_s0 + $0xc8] sm:$0xff] }
 0x3a1   :  { %v1238_v49 = vmul.f32 %v4587_v10, %v1237_v24  ;;  %vm1439_vm5 = vweird.f32 %v4013_v2  ;;  %v1443_v60 = vand.u32 2147483647, %v4013_v2  ;;  %v1223_v25 = vmul.f32 %v4590_v15, %v1222_v6  ;;  %v2100_v10 = vld [vmem:[%s4276_s0 + $0x40] sm:$0xff] }
 0x3a2   :  { %vm4161_vm10 = vmor %vm1439_vm5, %vm1440_vm13  ;;  %v1198_v27 = vadd.f32 %v2081_v38, %v1197_v23  ;;  %vm1199_vm11 = vweird.f32 %v4044_v16  ;;  %v1457_v62 = vsel %vm4154_vm7, %v3988_v58, %v1453_v5  ;;  %v1461_v35 = vor.u32 1.1754944e-38, %v1460_v39  ;;  %v4593_v58 = vld [vmem:[#allocation33_spill] sm:$0xff] }
 0x3a3   :  { %1687 = vperm.xlu0 %1950, %v1238_v49   ;;  %vm1201_vm3 = vmor %vm1199_vm11, %vm1200_vm6  ;;  %v1206_v13 = vor.u32 1.1754944e-38, %v1205_v30  ;;  %v1442_v2 = vsel %vm4161_vm10, %v4082_v56, %v1438_v9  ;;  %vm1459_vm14 = vcmp.eq.f32.partialorder %v1458_v47, 8.507059e+37  ;;  %v1446_v50 = vor.u32 1.1754944e-38, %v1445_v29  ;;  %v2087_v47 = vld [vmem:[%s4276_s0 + $0x78] sm:$0xff]  ;;  %v2097_v29 = vld [vmem:[%s4276_s0 + $0xd0] sm:$0xff] }
 0x3a4   :  { %1767 = vperm.xlu1 %1951, %v1478_v33   ;;  %vm1204_vm12 = vcmp.eq.f32.partialorder %v1203_v4, 8.507059e+37  ;;  %v1202_v21 = vsel %vm1201_vm3, %v2081_v38, %v1198_v27  ;;  %vm1444_vm8 = vcmp.eq.f32.partialorder %v1443_v60, 8.507059e+37  ;;  %v1462_v16 = vsel %vm1459_vm14, %v1461_v35, %v1457_v62  ;;  %v2098_v9 = vld [vmem:[%s4276_s0 + $0x48] sm:$0xff]  ;;  %v2101_v60 = vld [vmem:[%s4276_s0 + $0x38] sm:$0xff] }
 0x3a5   :  { %v1207_v44 = vsel %vm1204_vm12, %v1206_v13, %v1202_v21  ;;  %v1447_v48 = vsel %vm1444_vm8, %v1446_v50, %v1442_v2  ;;  %v1463_v0 = vmul.f32 %v4594_v17, %v1462_v16  ;;  %v1848_v37 = vmul.f32 %v2089_v54, %v1743_v20  ;;  %v2103_v35 = vld [vmem:[%s4276_s0 + $0xb8] sm:$0xff]  ;;  %v2104_v50 = vld [vmem:[%s4276_s0 + $0x30] sm:$0xff]  ;;  %v2106_v17 = vld [vmem:[%s4276_s0 + $0x28] sm:$0xff] }
 0x3a6   :  { %1682 = vperm.xlu2 %1949, %v1223_v25   ;;  %v1208_v55 = vmul.f32 %v4593_v58, %v1207_v44  ;;  %v1448_v41 = vmul.f32 %v4595_v51, %v1447_v48  ;;  %v2102_v25 = vld [vmem:[%s4276_s0 + $0xc0] sm:$0xff]  ;;  %v2105_v16 = vld [vmem:[%s4276_s0 + $0xb0] sm:$0xff]  ;;  %vm1917_vm0 = vcmask 1041408  }
 0x3a7   :  { %v2107_v51 = vld [vmem:[%s4276_s0 + $0x20] sm:$0xff] }
 0x3aa   :  { %v1753_v56 = vpop.permute.xlu0 %1752  ;;  %v1818_v8 = vpop.permute.xlu2 %1817 }
 0x3ab   :  { %1762 = vperm.xlu0 %1950, %v1463_v0   ;;  %v1748_v1 = vpop.permute.xlu1 %1747  ;;  %v1850_v39 = vmul.f32 %v2087_v47, %v1753_v56  ;;  %v1863_v38 = vmul.f32 %v2092_v61, %v1818_v8  ;;  %v2113_v61 = vld [vmem:[%s4276_s0 + $0x90] sm:$0xff] }
 0x3ac   :  { %1677 = vperm.xlu1 %1951, %v1208_v55   ;;  %v1849_v53 = vmul.f32 %v2088_v3, %v1748_v1  ;;  %v1674_v55 = vld [vmem:[%s4277_s1] sm:$0xf]  ;;  %v2108_v1 = vld [vmem:[%s4276_s0 + $0xa8] sm:$0xff] }
 0x3ad   :  { %1873 = vmatpush.msra.mxu0 %v1850_v39  ;;  %1868 = vst [vmem:[#allocation1] ss:$4 sm:$0xff] %v1674_v55  ;;  %v2109_v3 = vld [vmem:[%s4276_s0 + $0xa0] sm:$0xff] }
 0x3ae   :  { %1757 = vperm.xlu2 %1949, %v1448_v41  }
 0x3af   :  { %1874 = vmatpush.msra.mxu0 %v1849_v53 }
 0x3b1   :  { %1875 = vmatpush.msra.mxu0 %v1848_v37  ;;  %v2110_v37 = vld [vmem:[%s4276_s0 + $0x18] sm:$0xff] }
 0x3b4   :  { %v1828_v63 = vpop.permute.xlu0 %1827 }
 0x3b5   :  { %v1865_v19 = vmul.f32 %v2090_v32, %v1828_v63  ;;  %v2111_v32 = vld [vmem:[%s4276_s0 + $0x98] sm:$0xff] }
 0x3b6   :  { %v1728_v57 = vpop.permute.xlu2 %1727 }
 0x3b7   :  { %1894 = vmatpush.msra.mxu1 %v1865_v19  ;;  %v1845_v24 = vmul.f32 %v2095_v31, %v1728_v57  ;;  %v2116_v31 = vld [vmem:[%s4276_s0] sm:$0xff] }
 0x3bf   :  { %v1823_v28 = vpop.permute.xlu0 %1822 }
 0x3c0   :  { %v1864_v42 = vmul.f32 %v2091_v18, %v1823_v28  ;;  %v2112_v18 = vld [vmem:[%s4276_s0 + $0x10] sm:$0xff] }
 0x3c2   :  { %v1738_v26 = vpop.permute.xlu1 %1737  ;;  %1895 = vmatpush.msra.mxu1 %v1864_v42 }
 0x3c3   :  { %v1847_v11 = vmul.f32 %v2093_v43, %v1738_v26  ;;  %v2114_v43 = vld [vmem:[%s4276_s0 + $0x8] sm:$0xff] }
 0x3c4   :  { %1896 = vmatpush.msra.mxu1 %v1863_v38  ;;  %v1803_v52 = vpop.permute.xlu2 %1802 }
 0x3c5   :  { %1876 = vmatpush.msra.mxu0 %v1847_v11  ;;  %v1860_v33 = vmul.f32 %v2099_v22, %v1803_v52 }
 0x3cb   :  { %v1733_v34 = vpop.permute.xlu0 %1732 }
 0x3cc   :  { %v1846_v36 = vmul.f32 %v2094_v59, %v1733_v34  ;;  %v2115_v59 = vld [vmem:[%s4276_s0 + $0x88] sm:$0xff] }
 0x3ce   :  { %v1813_v14 = vpop.permute.xlu1 %1812  ;;  %1877 = vmatpush.msra.mxu0 %v1846_v36 }
 0x3cf   :  { %v1862_v12 = vmul.f32 %v2096_v46, %v1813_v14  ;;  %v1869_v46 = vld.sshfl [vmem:[#allocation1] sm:$0xff pattern:$0x73625140] }
 0x3d0   :  { %1878 = vmatpush.msra.mxu0 %v1845_v24 }
 0x3d1   :  { %1897 = vmatpush.msra.mxu1 %v1862_v12  ;;  %v1713_v23 = vpop.permute.xlu2 %1712  ;;  %v2117_v12 = vld [vmem:[%s4276_s0 + $0x80] sm:$0xff]  ;;  %s2145_s0 = smov [#allocation3]  }
 0x3d2   :  { %v1842_v15 = vmul.f32 %v2101_v60, %v1713_v23  ;;  %s1936_s23 = sshll.u32 %s2145_s0, 4  ;;  %s1937_s23 = int_to_ptr.vmem [resolvable:$true] %s1936_s23 }
 0x3da   :  { %v1808_v5 = vpop.permute.xlu0 %1807 }
 0x3db   :  { %v1861_v7 = vmul.f32 %v2097_v29, %v1808_v5  ;;  %v1723_v6 = vpop.permute.xlu1 %1722  ;;  %v1870_v5 = vld.sshfl [vmem:[#allocation1 + $0x8] sm:$0xff pattern:$0x73625140]  ;;  %v1913_v29 = vlaneseq }
 0x3dc   :  { %v1844_v30 = vmul.f32 %v2098_v9, %v1723_v6 }
 0x3dd   :  { %1898 = vmatpush.msra.mxu1 %v1861_v7  ;;  %v1914_v7 = vand.u32 127, %v1913_v29 }
 0x3de   :  { %1879 = vmatpush.msra.mxu0 %v1844_v30 }
 0x3df   :  { %1899 = vmatpush.msra.mxu1 %v1860_v33  ;;  %v1788_v27 = vpop.permute.xlu2 %1787  ;;  %vm1915_vm9 = vcmp.lt.s32.totalorder %v1914_v7, 8 }
 0x3e0   :  { %v1857_v44 = vmul.f32 %v2105_v16, %v1788_v27 }
 0x3e7   :  { %v1718_v4 = vpop.permute.xlu0 %1717 }
 0x3e8   :  { %v1843_v49 = vmul.f32 %v2100_v10, %v1718_v4 }
 0x3e9   :  { %v1798_v45 = vpop.permute.xlu1 %1797 }
 0x3ea   :  { %v1859_v40 = vmul.f32 %v2102_v25, %v1798_v45  ;;  %1880 = vmatpush.msra.mxu0 %v1843_v49 }
 0x3ec   :  { %1900 = vmatpush.msra.mxu1 %v1859_v40  ;;  %1881 = vmatpush.msra.mxu0 %v1842_v15 }
 0x3ed   :  { %v1698_v48 = vpop.permute.xlu2 %1697 }
 0x3ee   :  { %v1839_v41 = vmul.f32 %v2107_v51, %v1698_v48 }
 0x3f4   :  { %v1793_v62 = vpop.permute.xlu0 %1792  ;;  %v1708_v2 = vpop.permute.xlu1 %1707 }
 0x3f5   :  { %v1858_v13 = vmul.f32 %v2103_v35, %v1793_v62  ;;  %v1841_v21 = vmul.f32 %v2104_v50, %v1708_v2 }
 0x3f7   :  { %1901 = vmatpush.msra.mxu1 %v1858_v13  ;;  %1882 = vmatpush.msra.mxu0 %v1841_v21 }
 0x3f8   :  { %v1773_v39 = vpop.permute.xlu2 %1772 }
 0x3f9   :  { %1902 = vmatpush.msra.mxu1 %v1857_v44  ;;  %v1854_v19 = vmul.f32 %v2111_v32, %v1773_v39 }
 0x400   :  { %v1703_v58 = vpop.permute.xlu0 %1702  ;;  %v1683_v8 = vpop.permute.xlu2 %1682 }
 0x401   :  { %v1840_v0 = vmul.f32 %v2106_v17, %v1703_v58  ;;  %v1836_v11 = vmul.f32 %v2114_v43, %v1683_v8 }
 0x403   :  { %1883 = vmatpush.msra.mxu0 %v1840_v0 }
 0x405   :  { %v1783_v56 = vpop.permute.xlu1 %1782  ;;  %1884 = vmatpush.msra.mxu0 %v1839_v41 }
 0x406   :  { %v1856_v47 = vmul.f32 %v2108_v1, %v1783_v56 }
 0x408   :  { %1903 = vmatpush.msra.mxu1 %v1856_v47  ;;  %v1758_v57 = vpop.permute.xlu2 %1757 }
 0x409   :  { %v1851_v52 = vmul.f32 %v2117_v12, %v1758_v57 }
 0x40c   :  { %v1778_v20 = vpop.permute.xlu0 %1777 }
 0x40d   :  { %v1855_v53 = vmul.f32 %v2109_v3, %v1778_v20 }
 0x40e   :  { %v1693_v54 = vpop.permute.xlu1 %1692 }
 0x40f   :  { %v1838_v63 = vmul.f32 %v2110_v37, %v1693_v54  ;;  %1904 = vmatpush.msra.mxu1 %v1855_v53 }
 0x411   :  { %1885 = vmatpush.msra.mxu0 %v1838_v63  ;;  %1905 = vmatpush.msra.mxu1 %v1854_v19 }
 0x415   :  { %v1688_v28 = vpop.permute.xlu0 %1687 }
 0x416   :  { %v1837_v42 = vmul.f32 %v2112_v18, %v1688_v28  ;;  %v1768_v26 = vpop.permute.xlu1 %1767 }
 0x417   :  { %v1853_v38 = vmul.f32 %v2113_v61, %v1768_v26 }
 0x418   :  { %1886 = vmatpush.msra.mxu0 %v1837_v42 }
 0x419   :  { %1906 = vmatpush.msra.mxu1 %v1853_v38 }
 0x41a   :  { %1887 = vmatpush.msra.mxu0 %v1836_v11 }
 0x41d   :  { %v1763_v34 = vpop.permute.xlu0 %1762 }
 0x41e   :  { %v1852_v36 = vmul.f32 %v2115_v59, %v1763_v34  ;;  %v1678_v14 = vpop.permute.xlu1 %1677 }
 0x41f   :  { %v1835_v24 = vmul.f32 %v2116_v31, %v1678_v14 }
 0x420   :  { %1907 = vmatpush.msra.mxu1 %v1852_v36 }
 0x421   :  { %1888 = vmatpush.msra.mxu0 %v1835_v24 }
 0x422   :  { %1908 = vmatpush.msra.mxu1 %v1851_v52  ;;  %1889 = vmatmul.f32.vlgmr.msra.gmra.mxu0 %v1869_v46 }
 0x423   :  { %1909 = vmatmul.f32.vlgmr.msra.gmra.mxu1 %v1870_v5 }
 0x49f   :  { %v1890_v6 = vpop.f32.mrf.mxu0 }
 0x4a0   :  { %v1910_v9 = vpop.f32.mrf.mxu1 }
 0x4a1   :  { %v1911_v30 = vadd.f32 %v1910_v9, %v1890_v6 }
 0x4a3   :  { %v1916_v22 = vsel %vm1915_vm9, %v1911_v30, -1e+30 }
 0x4a4   :  { %v1918_v33 = vsel %vm1917_vm0, %v1916_v22, -inf }
 0x4a5   :  { %1919 = vmax.xlane.f32.xlu0 %v1918_v33 }
 0x518   :  { %v1920_v23 = vpop.xlane.xlu0 %1919 }
 0x519   :  { %v1921_v4 = vsub.f32 %v1916_v22, %v1920_v23 }
 0x51b   :  { %v1922_v10 = vmul.f32 1.442695, %v1921_v4 }
 0x51d   :  { %2082 = vpow2.f32 %v1922_v10 }
 0x523   :  { %v2083_v49 = vpop.eup %2082 }
 0x524   :  { %v1924_v45 = vsel %vm1917_vm0, %v2083_v49, 0.0 }
 0x525   :  { %1925 = vadd.xlane.f32.xlu1 %v1924_v45 }
 0x598   :  { %v1926_v60 = vpop.xlane.xlu1 %1925 }
 0x599   :  { %2084 = vlog2.f32 %v1926_v60 }
 0x59f   :  { %v2085_v15 = vpop.eup %2084 }
 0x5a0   :  { %v1928_v25 = vmul.f32 0.6931472, %v2085_v15 }
 0x5a2   :  { %v1929_v40 = vsub.f32 %v1921_v4, %v1928_v25 }
 0x5a4   :  { %1930 = vst [vmem:[#allocation3] sm:$0x3] %v1929_v40 }
 0x5a5   :  { %1941 = dma.vmem_to_hbm [thread:$0]  %s1937_s23, 32, %s1939_s26, [#allocation4]  }
 0x5a6   :  { %2142 = dma.done.wait [#allocation4], 32  }
 0x5a7   :  { %2143 = vsyncadd [#allocation4], 4294967264 }
 0x5a8   :  { %1946 = vsyncpa [#allocation4], 1 }

</bundles_post_ra>
